<compile_context>
chip_gen: v7x
topology: tpu7x:2x2x1
jax: 0.10.0
libtpu: 0.0.40
codegen_flags: <defaults>
</compile_context>

<pallas_src>
import functools

import jax
import jax.numpy as jnp
from jax.experimental import pallas as pl
from jax.experimental.pallas import tpu as pltpu

EPS = 1e-5
LANE = 128


def _round_up(x, m):
    return (x + m - 1) // m * m


def _bn_train(acc, g, b, m):
    """Training-mode BN, two-pass mean / centered variance, all in f32."""
    mean = jnp.sum(acc, axis=0, keepdims=True) * (1.0 / m)
    d = acc - mean
    var = jnp.sum(d * d, axis=0, keepdims=True) * (1.0 / m)
    return d * (g * jax.lax.rsqrt(var + EPS)) + b


def _residual_block_kernel(*refs, n, ho, wo, cout, has_downsample):
    if has_downsample:
        (patch_ref, w1_ref, g1_ref, b1_ref, w2_ref, g2_ref, b2_ref,
         wd_ref, gd_ref, bd_ref, out_ref, ypad_ref) = refs
        res_ref = None
    else:
        (patch_ref, res_ref, w1_ref, g1_ref, b1_ref, w2_ref, g2_ref, b2_ref,
         out_ref, ypad_ref) = refs
        wd_ref = gd_ref = bd_ref = None

    m = n * ho * wo
    cout_p = w1_ref.shape[-1]

    # ---- conv1: ONE matmul over the (kh,kw,cin)-packed patch, K = rnd128(9*cin)
    patch = patch_ref[...]                                        # (M, K1p) bf16
    acc1 = jnp.dot(patch, w1_ref[...], preferred_element_type=jnp.float32)

    # ---- bn1 (batch stats) + ReLU
    y = jnp.maximum(_bn_train(acc1, g1_ref[...], b1_ref[...], m), 0.0)

    # ---- padded intermediate for conv2: one unmasked full-buffer zero,
    #      then write the interior.  Padded lanes stay exactly zero.
    ypad_ref[...] = jnp.zeros_like(ypad_ref)
    ypad_ref[:, 1:ho + 1, 1:wo + 1, :] = (
        y.reshape(n, ho, wo, cout_p).astype(ypad_ref.dtype))

    # ---- conv2: 9 accumulating matmuls; window slices feed jnp.dot directly
    #      (no (M, 9*C) concat slab).
    # TODO(synk): on v6e/v7x (256-deep MXU K) pairwise K=256 tap concat would
    # halve MXU pushes; MXU is not the binding slot at these widths.
    acc2 = jnp.zeros((m, cout_p), jnp.float32)
    for kh in range(3):
        for kw in range(3):
            tap = ypad_ref[:, kh:kh + ho, kw:kw + wo, :].reshape(m, cout_p)
            acc2 = acc2 + jnp.dot(tap, w2_ref[kh * 3 + kw],
                                  preferred_element_type=jnp.float32)

    # ---- bn2
    y2 = _bn_train(acc2, g2_ref[...], b2_ref[...], m)

    # ---- identity branch
    if has_downsample:
        # 1x1 strided conv == matmul of the packed patch with a weight whose
        # only nonzero rows are the center-tap (kh=1,kw=1) cin rows.
        idn = jnp.dot(patch, wd_ref[...], preferred_element_type=jnp.float32)
        idn = _bn_train(idn, gd_ref[...], bd_ref[...], m)
        out_ref[...] = jnp.maximum(y2 + idn, 0.0)[:, :cout]
    else:
        # Residual carried at f32 for PyTorch parity.
        out_ref[...] = jnp.maximum(y2[:, :cout] + res_ref[...], 0.0)


def residual_block_forward(x_nchw, params, stride):
    n, cin, h, w = x_nchw.shape
    cout = params["w1"].shape[0]
    has_downsample = (stride != 1) or (cin != cout)
    s = stride

    ho = (h + 2 - 3) // s + 1
    wo = (w + 2 - 3) // s + 1
    m = n * ho * wo

    cout_p = _round_up(cout, LANE)
    k1 = 9 * cin
    k1p = _round_up(k1, LANE)

    # ---- glue: NCHW -> NHWC, spatial pad=1, packed (kh,kw,cin) im2col.
    #      K is 9*cin rounded to 128 (NOT 9 * 128-padded-cin).
    x = jnp.transpose(x_nchw, (0, 2, 3, 1)).astype(jnp.float32)
    xpad = jnp.pad(x, ((0, 0), (1, 1), (1, 1), (0, 0)))
    taps = []
    for kh in range(3):
        for kw in range(3):
            taps.append(xpad[:, kh:kh + (ho - 1) * s + 1:s,
                             kw:kw + (wo - 1) * s + 1:s, :])
    patch = jnp.concatenate(taps, axis=-1).reshape(m, k1)
    patch = jnp.pad(patch, ((0, 0), (0, k1p - k1))).astype(jnp.bfloat16)

    # ---- weights / BN params in packed-K and per-tap layouts (bf16 operands)
    def bn_p(g, b):
        g = jnp.pad(g.astype(jnp.float32), (0, cout_p - cout), constant_values=1.0)
        b = jnp.pad(b.astype(jnp.float32), (0, cout_p - cout))
        return g.reshape(1, cout_p), b.reshape(1, cout_p)

    w1 = jnp.transpose(params["w1"], (2, 3, 1, 0)).astype(jnp.float32)
    w1 = w1.reshape(k1, cout)                                   # rows = (kh,kw,cin)
    w1 = jnp.pad(w1, ((0, k1p - k1), (0, cout_p - cout))).astype(jnp.bfloat16)

    w2 = jnp.transpose(params["w2"], (2, 3, 1, 0)).astype(jnp.float32)
    w2 = w2.reshape(9, cout, cout)                              # (tap, cin, cout)
    w2 = jnp.pad(w2, ((0, 0), (0, cout_p - cout),
                      (0, cout_p - cout))).astype(jnp.bfloat16)

    g1, b1 = bn_p(params["g1"], params["b1"])
    g2, b2 = bn_p(params["g2"], params["b2"])

    if has_downsample:
        wdm = params["wd"][:, :, 0, 0].T.astype(jnp.float32)    # (cin, cout)
        wd = jnp.zeros((k1p, cout_p), jnp.float32)
        wd = wd.at[4 * cin:5 * cin, :cout].set(wdm).astype(jnp.bfloat16)
        gd, bd = bn_p(params["gd"], params["bd"])
        args = [patch, w1, g1, b1, w2, g2, b2, wd, gd, bd]
    else:
        res = x.reshape(m, cout)                                # f32 residual (x itself)
        args = [patch, res, w1, g1, b1, w2, g2, b2]

    def fs(a):
        nd = a.ndim
        return pl.BlockSpec(a.shape, lambda i, nd=nd: (0,) * nd)

    kernel = functools.partial(_residual_block_kernel, n=n, ho=ho, wo=wo,
                               cout=cout, has_downsample=has_downsample)

    out2d = pl.pallas_call(
        kernel,
        out_shape=jax.ShapeDtypeStruct((m, cout), jnp.float32),   # unpadded output
        grid=(1,),
        in_specs=[fs(a) for a in args],
        out_specs=pl.BlockSpec((m, cout), lambda i: (0, 0)),
        scratch_shapes=[pltpu.VMEM((n, ho + 2, wo + 2, cout_p), jnp.bfloat16)],
        compiler_params=pltpu.CompilerParams(
            dimension_semantics=("arbitrary",),
            vmem_limit_bytes=32 * 1024 * 1024),
    )(*args)

    out = out2d.reshape(n, ho, wo, cout)
    return jnp.transpose(out, (0, 3, 1, 2))                      # back to NCHW


def _ref_forward(x, p, stride, conv_dtype=jnp.float32):
    """Pure-JAX reference mirroring the PyTorch module (training-mode BN).
    conv_dtype=bfloat16 replicates the kernel's bf16 conv-operand casts;
    the residual identity stays f32, as in the kernel."""
    def cast(a):
        return a.astype(conv_dtype).astype(jnp.float32)

    def conv(t, wt, s_, pad):
        return jax.lax.conv_general_dilated(
            cast(t), cast(wt), (s_, s_), ((pad, pad), (pad, pad)),
            dimension_numbers=("NCHW", "OIHW", "NCHW"))

    def bn(t, g, b):
        mu = jnp.mean(t, axis=(0, 2, 3), keepdims=True)
        var = jnp.mean((t - mu) ** 2, axis=(0, 2, 3), keepdims=True)
        return ((t - mu) * jax.lax.rsqrt(var + EPS)
                * g.reshape(1, -1, 1, 1) + b.reshape(1, -1, 1, 1))

    cin = x.shape[1]
    cout = p["w1"].shape[0]
    has_ds = (stride != 1) or (cin != cout)
    out = jnp.maximum(bn(conv(x, p["w1"], stride, 1), p["g1"], p["b1"]), 0.0)
    out = bn(conv(out, p["w2"], 1, 1), p["g2"], p["b2"])
    idn = (bn(conv(x, p["wd"], stride, 0), p["gd"], p["bd"]) if has_ds
           else x.astype(jnp.float32))
    return jnp.maximum(out + idn, 0.0)


def _make_params(key, cin, cout, has_ds):
    ks = jax.random.split(key, 9)
    p = {
        "w1": 0.1 * jax.random.normal(ks[0], (cout, cin, 3, 3), jnp.float32),
        "g1": 1.0 + 0.1 * jax.random.normal(ks[1], (cout,), jnp.float32),
        "b1": 0.1 * jax.random.normal(ks[2], (cout,), jnp.float32),
        "w2": 0.1 * jax.random.normal(ks[3], (cout, cout, 3, 3), jnp.float32),
        "g2": 1.0 + 0.1 * jax.random.normal(ks[4], (cout,), jnp.float32),
        "b2": 0.1 * jax.random.normal(ks[5], (cout,), jnp.float32),
    }
    if has_ds:
        p["wd"] = 0.1 * jax.random.normal(ks[6], (cout, cin, 1, 1), jnp.float32)
        p["gd"] = 1.0 + 0.1 * jax.random.normal(ks[7], (cout,), jnp.float32)
        p["bd"] = 0.1 * jax.random.normal(ks[8], (cout,), jnp.float32)
    return p


if __name__ == "__main__":
    k1, k2, k3, k4 = jax.random.split(jax.random.PRNGKey(0), 4)

    # Case 1: downsample block (stride=2, 4 -> 8 channels, 16x16 -> 8x8).
    x1 = jax.random.normal(k1, (2, 4, 16, 16), jnp.float32)
    p1 = _make_params(k2, 4, 8, True)
    out1 = jax.block_until_ready(residual_block_forward(x1, p1, stride=2))
    assert out1.shape == (2, 8, 8, 8), out1.shape
    err1_m = float(jnp.max(jnp.abs(out1 - _ref_forward(x1, p1, 2, jnp.bfloat16))))
    err1_f = float(jnp.max(jnp.abs(out1 - _ref_forward(x1, p1, 2, jnp.float32))))
    assert err1_m < 2e-2, f"downsample block: matched-precision error {err1_m}"
    assert err1_f < 2.5e-1, f"downsample block: f32-reference error {err1_f}"

    # Case 2: identity block (stride=1, in == out channels) -> no downsample args.
    x2 = jax.random.normal(k3, (2, 8, 16, 16), jnp.float32)
    p2 = _make_params(k4, 8, 8, False)
    out2 = jax.block_until_ready(residual_block_forward(x2, p2, stride=1))
    assert out2.shape == (2, 8, 16, 16), out2.shape
    err2_m = float(jnp.max(jnp.abs(out2 - _ref_forward(x2, p2, 1, jnp.bfloat16))))
    err2_f = float(jnp.max(jnp.abs(out2 - _ref_forward(x2, p2, 1, jnp.float32))))
    assert err2_m < 2e-2, f"identity block: matched-precision error {err2_m}"
    assert err2_f < 2.5e-1, f"identity block: f32-reference error {err2_f}"

    print("KERNEL_OK")
</pallas_src>

<mosaic_0001>
module attributes {stable_mosaic.version = 11 : i64} {
  func.func @_residual_block_kernel(%arg0: i32, %arg1: memref<128x128xbf16, #tpu.memory_space<vmem>>, %arg2: memref<128x128xbf16, #tpu.memory_space<vmem>>, %arg3: memref<1x128xf32, #tpu.memory_space<vmem>>, %arg4: memref<1x128xf32, #tpu.memory_space<vmem>>, %arg5: memref<9x128x128xbf16, #tpu.memory_space<vmem>>, %arg6: memref<1x128xf32, #tpu.memory_space<vmem>>, %arg7: memref<1x128xf32, #tpu.memory_space<vmem>>, %arg8: memref<128x128xbf16, #tpu.memory_space<vmem>>, %arg9: memref<1x128xf32, #tpu.memory_space<vmem>>, %arg10: memref<1x128xf32, #tpu.memory_space<vmem>>, %arg11: memref<128x8xf32, #tpu.memory_space<vmem>>, %arg12: memref<2x10x10x128xbf16, #tpu.memory_space<vmem>>) attributes {dimension_semantics = [#tpu.dimension_semantics<arbitrary>], iteration_bounds = array<i64: 1>, scalar_prefetch = 0 : i64, scratch_operands = 1 : i64, tpu.core_type = #tpu.core_type<tc>, window_params = [{pipeline_mode = #tpu.pipeline_mode<synchronous>, transform_indices = @transform_0, window_bounds = array<i64: 128, 128>}, {pipeline_mode = #tpu.pipeline_mode<synchronous>, transform_indices = @transform_1, window_bounds = array<i64: 128, 128>}, {pipeline_mode = #tpu.pipeline_mode<synchronous>, transform_indices = @transform_2, window_bounds = array<i64: 1, 128>}, {pipeline_mode = #tpu.pipeline_mode<synchronous>, transform_indices = @transform_3, window_bounds = array<i64: 1, 128>}, {pipeline_mode = #tpu.pipeline_mode<synchronous>, transform_indices = @transform_4, window_bounds = array<i64: 9, 128, 128>}, {pipeline_mode = #tpu.pipeline_mode<synchronous>, transform_indices = @transform_5, window_bounds = array<i64: 1, 128>}, {pipeline_mode = #tpu.pipeline_mode<synchronous>, transform_indices = @transform_6, window_bounds = array<i64: 1, 128>}, {pipeline_mode = #tpu.pipeline_mode<synchronous>, transform_indices = @transform_7, window_bounds = array<i64: 128, 128>}, {pipeline_mode = #tpu.pipeline_mode<synchronous>, transform_indices = @transform_8, window_bounds = array<i64: 1, 128>}, {pipeline_mode = #tpu.pipeline_mode<synchronous>, transform_indices = @transform_9, window_bounds = array<i64: 1, 128>}, {pipeline_mode = #tpu.pipeline_mode<synchronous>, transform_indices = @transform_10, window_bounds = array<i64: 128, 8>}]} {
    %c0 = arith.constant 0 : index
    %c0_0 = arith.constant 0 : index
    %0 = vector.load %arg1[%c0, %c0_0] : memref<128x128xbf16, #tpu.memory_space<vmem>>, vector<128x128xbf16>
    %c0_1 = arith.constant 0 : index
    %c0_2 = arith.constant 0 : index
    %1 = vector.load %arg2[%c0_1, %c0_2] : memref<128x128xbf16, #tpu.memory_space<vmem>>, vector<128x128xbf16>
    %cst = arith.constant dense<0.000000e+00> : vector<128x128xf32>
    %2 = tpu.matmul %0, %1, %cst {dimension_numbers = #tpu.dot_dimension_numbers<[1], [0], [0], [1], [0, 0, 1, 1], [], []>} : vector<128x128xbf16>, vector<128x128xbf16>, vector<128x128xf32> -> vector<128x128xf32>
    %c0_3 = arith.constant 0 : index
    %c0_4 = arith.constant 0 : index
    %3 = vector.load %arg3[%c0_3, %c0_4] : memref<1x128xf32, #tpu.memory_space<vmem>>, vector<1x128xf32>
    %c0_5 = arith.constant 0 : index
    %c0_6 = arith.constant 0 : index
    %4 = vector.load %arg4[%c0_5, %c0_6] : memref<1x128xf32, #tpu.memory_space<vmem>>, vector<1x128xf32>
    %cst_7 = arith.constant dense<0.000000e+00> : vector<128xf32>
    %5 = vector.multi_reduction <add>, %2, %cst_7 [0] : vector<128x128xf32> to vector<128xf32>
    %6 = vector.shape_cast %5 : vector<128xf32> to vector<1x128xf32>
    %cst_8 = arith.constant 7.812500e-03 : f32
    %7 = vector.broadcast %cst_8 : f32 to vector<1x128xf32>
    %8 = arith.mulf %6, %7 : vector<1x128xf32>
    %9 = vector.broadcast %8 : vector<1x128xf32> to vector<128x128xf32>
    %10 = arith.subf %2, %9 : vector<128x128xf32>
    %11 = arith.mulf %10, %10 : vector<128x128xf32>
    %cst_9 = arith.constant dense<0.000000e+00> : vector<128xf32>
    %12 = vector.multi_reduction <add>, %11, %cst_9 [0] : vector<128x128xf32> to vector<128xf32>
    %13 = vector.shape_cast %12 : vector<128xf32> to vector<1x128xf32>
    %cst_10 = arith.constant 7.812500e-03 : f32
    %14 = vector.broadcast %cst_10 : f32 to vector<1x128xf32>
    %15 = arith.mulf %13, %14 : vector<1x128xf32>
    %cst_11 = arith.constant 9.99999974E-6 : f32
    %16 = vector.broadcast %cst_11 : f32 to vector<1x128xf32>
    %17 = arith.addf %15, %16 : vector<1x128xf32>
    %18 = math.rsqrt %17 : vector<1x128xf32>
    %19 = arith.mulf %3, %18 : vector<1x128xf32>
    %20 = vector.broadcast %19 : vector<1x128xf32> to vector<128x128xf32>
    %21 = arith.mulf %10, %20 : vector<128x128xf32>
    %22 = vector.broadcast %4 : vector<1x128xf32> to vector<128x128xf32>
    %23 = arith.addf %21, %22 : vector<128x128xf32>
    %cst_12 = arith.constant 0.000000e+00 : f32
    %24 = vector.broadcast %cst_12 : f32 to vector<128x128xf32>
    %25 = arith.maximumf %23, %24 : vector<128x128xf32>
    %cst_13 = arith.constant 0.000000e+00 : bf16
    %26 = vector.broadcast %cst_13 : bf16 to vector<2x10x10x128xbf16>
    %c0_14 = arith.constant 0 : index
    %c0_15 = arith.constant 0 : index
    %c0_16 = arith.constant 0 : index
    %c0_17 = arith.constant 0 : index
    %27 = vector.load %arg12[%c0_14, %c0_15, %c0_16, %c0_17] : memref<2x10x10x128xbf16, #tpu.memory_space<vmem>>, vector<2x10x10x128xbf16>
    tpu.vector_store %arg12[%c0_14, %c0_15, %c0_16, %c0_17], %26 {strides = array<i32>} : memref<2x10x10x128xbf16, #tpu.memory_space<vmem>>, vector<2x10x10x128xbf16>,
    %28 = vector.shape_cast %25 : vector<128x128xf32> to vector<2x8x8x128xf32>
    %29 = arith.truncf %28 : vector<2x8x8x128xf32> to vector<2x8x8x128xbf16>
    %c0_18 = arith.constant 0 : index
    %c1 = arith.constant 1 : index
    %c1_19 = arith.constant 1 : index
    %c0_20 = arith.constant 0 : index
    %30 = vector.load %arg12[%c0_18, %c1, %c1_19, %c0_20] : memref<2x10x10x128xbf16, #tpu.memory_space<vmem>>, vector<2x8x8x128xbf16>
    tpu.vector_store %arg12[%c0_18, %c1, %c1_19, %c0_20], %29 {strides = array<i32>} : memref<2x10x10x128xbf16, #tpu.memory_space<vmem>>, vector<2x8x8x128xbf16>,
    %cst_21 = arith.constant 0.000000e+00 : f32
    %31 = vector.broadcast %cst_21 : f32 to vector<128x128xf32>
    %c0_22 = arith.constant 0 : index
    %c0_23 = arith.constant 0 : index
    %c0_24 = arith.constant 0 : index
    %c0_25 = arith.constant 0 : index
    %32 = vector.load %arg12[%c0_22, %c0_23, %c0_24, %c0_25] : memref<2x10x10x128xbf16, #tpu.memory_space<vmem>>, vector<2x8x8x128xbf16>
    %33 = vector.shape_cast %32 : vector<2x8x8x128xbf16> to vector<128x128xbf16>
    %c0_26 = arith.constant 0 : index
    %c0_27 = arith.constant 0 : index
    %c0_28 = arith.constant 0 : index
    %34 = vector.load %arg5[%c0_26, %c0_27, %c0_28] : memref<9x128x128xbf16, #tpu.memory_space<vmem>>, vector<1x128x128xbf16>
    %35 = vector.shape_cast %34 : vector<1x128x128xbf16> to vector<128x128xbf16>
    %cst_29 = arith.constant dense<0.000000e+00> : vector<128x128xf32>
    %36 = tpu.matmul %33, %35, %cst_29 {dimension_numbers = #tpu.dot_dimension_numbers<[1], [0], [0], [1], [0, 0, 1, 1], [], []>} : vector<128x128xbf16>, vector<128x128xbf16>, vector<128x128xf32> -> vector<128x128xf32>
    %37 = arith.addf %31, %36 : vector<128x128xf32>
    %c0_30 = arith.constant 0 : index
    %c0_31 = arith.constant 0 : index
    %c1_32 = arith.constant 1 : index
    %c0_33 = arith.constant 0 : index
    %38 = vector.load %arg12[%c0_30, %c0_31, %c1_32, %c0_33] : memref<2x10x10x128xbf16, #tpu.memory_space<vmem>>, vector<2x8x8x128xbf16>
    %39 = vector.shape_cast %38 : vector<2x8x8x128xbf16> to vector<128x128xbf16>
    %c1_34 = arith.constant 1 : index
    %c0_35 = arith.constant 0 : index
    %c0_36 = arith.constant 0 : index
    %40 = vector.load %arg5[%c1_34, %c0_35, %c0_36] : memref<9x128x128xbf16, #tpu.memory_space<vmem>>, vector<1x128x128xbf16>
    %41 = vector.shape_cast %40 : vector<1x128x128xbf16> to vector<128x128xbf16>
    %cst_37 = arith.constant dense<0.000000e+00> : vector<128x128xf32>
    %42 = tpu.matmul %39, %41, %cst_37 {dimension_numbers = #tpu.dot_dimension_numbers<[1], [0], [0], [1], [0, 0, 1, 1], [], []>} : vector<128x128xbf16>, vector<128x128xbf16>, vector<128x128xf32> -> vector<128x128xf32>
    %43 = arith.addf %37, %42 : vector<128x128xf32>
    %c0_38 = arith.constant 0 : index
    %c0_39 = arith.constant 0 : index
    %c2 = arith.constant 2 : index
    %c0_40 = arith.constant 0 : index
    %44 = vector.load %arg12[%c0_38, %c0_39, %c2, %c0_40] : memref<2x10x10x128xbf16, #tpu.memory_space<vmem>>, vector<2x8x8x128xbf16>
    %45 = vector.shape_cast %44 : vector<2x8x8x128xbf16> to vector<128x128xbf16>
    %c2_41 = arith.constant 2 : index
    %c0_42 = arith.constant 0 : index
    %c0_43 = arith.constant 0 : index
    %46 = vector.load %arg5[%c2_41, %c0_42, %c0_43] : memref<9x128x128xbf16, #tpu.memory_space<vmem>>, vector<1x128x128xbf16>
    %47 = vector.shape_cast %46 : vector<1x128x128xbf16> to vector<128x128xbf16>
    %cst_44 = arith.constant dense<0.000000e+00> : vector<128x128xf32>
    %48 = tpu.matmul %45, %47, %cst_44 {dimension_numbers = #tpu.dot_dimension_numbers<[1], [0], [0], [1], [0, 0, 1, 1], [], []>} : vector<128x128xbf16>, vector<128x128xbf16>, vector<128x128xf32> -> vector<128x128xf32>
    %49 = arith.addf %43, %48 : vector<128x128xf32>
    %c0_45 = arith.constant 0 : index
    %c1_46 = arith.constant 1 : index
    %c0_47 = arith.constant 0 : index
    %c0_48 = arith.constant 0 : index
    %50 = vector.load %arg12[%c0_45, %c1_46, %c0_47, %c0_48] : memref<2x10x10x128xbf16, #tpu.memory_space<vmem>>, vector<2x8x8x128xbf16>
    %51 = vector.shape_cast %50 : vector<2x8x8x128xbf16> to vector<128x128xbf16>
    %c3 = arith.constant 3 : index
    %c0_49 = arith.constant 0 : index
    %c0_50 = arith.constant 0 : index
    %52 = vector.load %arg5[%c3, %c0_49, %c0_50] : memref<9x128x128xbf16, #tpu.memory_space<vmem>>, vector<1x128x128xbf16>
    %53 = vector.shape_cast %52 : vector<1x128x128xbf16> to vector<128x128xbf16>
    %cst_51 = arith.constant dense<0.000000e+00> : vector<128x128xf32>
    %54 = tpu.matmul %51, %53, %cst_51 {dimension_numbers = #tpu.dot_dimension_numbers<[1], [0], [0], [1], [0, 0, 1, 1], [], []>} : vector<128x128xbf16>, vector<128x128xbf16>, vector<128x128xf32> -> vector<128x128xf32>
    %55 = arith.addf %49, %54 : vector<128x128xf32>
    %c0_52 = arith.constant 0 : index
    %c1_53 = arith.constant 1 : index
    %c1_54 = arith.constant 1 : index
    %c0_55 = arith.constant 0 : index
    %56 = vector.load %arg12[%c0_52, %c1_53, %c1_54, %c0_55] : memref<2x10x10x128xbf16, #tpu.memory_space<vmem>>, vector<2x8x8x128xbf16>
    %57 = vector.shape_cast %56 : vector<2x8x8x128xbf16> to vector<128x128xbf16>
    %c4 = arith.constant 4 : index
    %c0_56 = arith.constant 0 : index
    %c0_57 = arith.constant 0 : index
    %58 = vector.load %arg5[%c4, %c0_56, %c0_57] : memref<9x128x128xbf16, #tpu.memory_space<vmem>>, vector<1x128x128xbf16>
    %59 = vector.shape_cast %58 : vector<1x128x128xbf16> to vector<128x128xbf16>
    %cst_58 = arith.constant dense<0.000000e+00> : vector<128x128xf32>
    %60 = tpu.matmul %57, %59, %cst_58 {dimension_numbers = #tpu.dot_dimension_numbers<[1], [0], [0], [1], [0, 0, 1, 1], [], []>} : vector<128x128xbf16>, vector<128x128xbf16>, vector<128x128xf32> -> vector<128x128xf32>
    %61 = arith.addf %55, %60 : vector<128x128xf32>
    %c0_59 = arith.constant 0 : index
    %c1_60 = arith.constant 1 : index
    %c2_61 = arith.constant 2 : index
    %c0_62 = arith.constant 0 : index
    %62 = vector.load %arg12[%c0_59, %c1_60, %c2_61, %c0_62] : memref<2x10x10x128xbf16, #tpu.memory_space<vmem>>, vector<2x8x8x128xbf16>
    %63 = vector.shape_cast %62 : vector<2x8x8x128xbf16> to vector<128x128xbf16>
    %c5 = arith.constant 5 : index
    %c0_63 = arith.constant 0 : index
    %c0_64 = arith.constant 0 : index
    %64 = vector.load %arg5[%c5, %c0_63, %c0_64] : memref<9x128x128xbf16, #tpu.memory_space<vmem>>, vector<1x128x128xbf16>
    %65 = vector.shape_cast %64 : vector<1x128x128xbf16> to vector<128x128xbf16>
    %cst_65 = arith.constant dense<0.000000e+00> : vector<128x128xf32>
    %66 = tpu.matmul %63, %65, %cst_65 {dimension_numbers = #tpu.dot_dimension_numbers<[1], [0], [0], [1], [0, 0, 1, 1], [], []>} : vector<128x128xbf16>, vector<128x128xbf16>, vector<128x128xf32> -> vector<128x128xf32>
    %67 = arith.addf %61, %66 : vector<128x128xf32>
    %c0_66 = arith.constant 0 : index
    %c2_67 = arith.constant 2 : index
    %c0_68 = arith.constant 0 : index
    %c0_69 = arith.constant 0 : index
    %68 = vector.load %arg12[%c0_66, %c2_67, %c0_68, %c0_69] : memref<2x10x10x128xbf16, #tpu.memory_space<vmem>>, vector<2x8x8x128xbf16>
    %69 = vector.shape_cast %68 : vector<2x8x8x128xbf16> to vector<128x128xbf16>
    %c6 = arith.constant 6 : index
    %c0_70 = arith.constant 0 : index
    %c0_71 = arith.constant 0 : index
    %70 = vector.load %arg5[%c6, %c0_70, %c0_71] : memref<9x128x128xbf16, #tpu.memory_space<vmem>>, vector<1x128x128xbf16>
    %71 = vector.shape_cast %70 : vector<1x128x128xbf16> to vector<128x128xbf16>
    %cst_72 = arith.constant dense<0.000000e+00> : vector<128x128xf32>
    %72 = tpu.matmul %69, %71, %cst_72 {dimension_numbers = #tpu.dot_dimension_numbers<[1], [0], [0], [1], [0, 0, 1, 1], [], []>} : vector<128x128xbf16>, vector<128x128xbf16>, vector<128x128xf32> -> vector<128x128xf32>
    %73 = arith.addf %67, %72 : vector<128x128xf32>
    %c0_73 = arith.constant 0 : index
    %c2_74 = arith.constant 2 : index
    %c1_75 = arith.constant 1 : index
    %c0_76 = arith.constant 0 : index
    %74 = vector.load %arg12[%c0_73, %c2_74, %c1_75, %c0_76] : memref<2x10x10x128xbf16, #tpu.memory_space<vmem>>, vector<2x8x8x128xbf16>
    %75 = vector.shape_cast %74 : vector<2x8x8x128xbf16> to vector<128x128xbf16>
    %c7 = arith.constant 7 : index
    %c0_77 = arith.constant 0 : index
    %c0_78 = arith.constant 0 : index
    %76 = vector.load %arg5[%c7, %c0_77, %c0_78] : memref<9x128x128xbf16, #tpu.memory_space<vmem>>, vector<1x128x128xbf16>
    %77 = vector.shape_cast %76 : vector<1x128x128xbf16> to vector<128x128xbf16>
    %cst_79 = arith.constant dense<0.000000e+00> : vector<128x128xf32>
    %78 = tpu.matmul %75, %77, %cst_79 {dimension_numbers = #tpu.dot_dimension_numbers<[1], [0], [0], [1], [0, 0, 1, 1], [], []>} : vector<128x128xbf16>, vector<128x128xbf16>, vector<128x128xf32> -> vector<128x128xf32>
    %79 = arith.addf %73, %78 : vector<128x128xf32>
    %c0_80 = arith.constant 0 : index
    %c2_81 = arith.constant 2 : index
    %c2_82 = arith.constant 2 : index
    %c0_83 = arith.constant 0 : index
    %80 = vector.load %arg12[%c0_80, %c2_81, %c2_82, %c0_83] : memref<2x10x10x128xbf16, #tpu.memory_space<vmem>>, vector<2x8x8x128xbf16>
    %81 = vector.shape_cast %80 : vector<2x8x8x128xbf16> to vector<128x128xbf16>
    %c8 = arith.constant 8 : index
    %c0_84 = arith.constant 0 : index
    %c0_85 = arith.constant 0 : index
    %82 = vector.load %arg5[%c8, %c0_84, %c0_85] : memref<9x128x128xbf16, #tpu.memory_space<vmem>>, vector<1x128x128xbf16>
    %83 = vector.shape_cast %82 : vector<1x128x128xbf16> to vector<128x128xbf16>
    %cst_86 = arith.constant dense<0.000000e+00> : vector<128x128xf32>
    %84 = tpu.matmul %81, %83, %cst_86 {dimension_numbers = #tpu.dot_dimension_numbers<[1], [0], [0], [1], [0, 0, 1, 1], [], []>} : vector<128x128xbf16>, vector<128x128xbf16>, vector<128x128xf32> -> vector<128x128xf32>
    %85 = arith.addf %79, %84 : vector<128x128xf32>
    %c0_87 = arith.constant 0 : index
    %c0_88 = arith.constant 0 : index
    %86 = vector.load %arg6[%c0_87, %c0_88] : memref<1x128xf32, #tpu.memory_space<vmem>>, vector<1x128xf32>
    %c0_89 = arith.constant 0 : index
    %c0_90 = arith.constant 0 : index
    %87 = vector.load %arg7[%c0_89, %c0_90] : memref<1x128xf32, #tpu.memory_space<vmem>>, vector<1x128xf32>
    %cst_91 = arith.constant dense<0.000000e+00> : vector<128xf32>
    %88 = vector.multi_reduction <add>, %85, %cst_91 [0] : vector<128x128xf32> to vector<128xf32>
    %89 = vector.shape_cast %88 : vector<128xf32> to vector<1x128xf32>
    %cst_92 = arith.constant 7.812500e-03 : f32
    %90 = vector.broadcast %cst_92 : f32 to vector<1x128xf32>
    %91 = arith.mulf %89, %90 : vector<1x128xf32>
    %92 = vector.broadcast %91 : vector<1x128xf32> to vector<128x128xf32>
    %93 = arith.subf %85, %92 : vector<128x128xf32>
    %94 = arith.mulf %93, %93 : vector<128x128xf32>
    %cst_93 = arith.constant dense<0.000000e+00> : vector<128xf32>
    %95 = vector.multi_reduction <add>, %94, %cst_93 [0] : vector<128x128xf32> to vector<128xf32>
    %96 = vector.shape_cast %95 : vector<128xf32> to vector<1x128xf32>
    %cst_94 = arith.constant 7.812500e-03 : f32
    %97 = vector.broadcast %cst_94 : f32 to vector<1x128xf32>
    %98 = arith.mulf %96, %97 : vector<1x128xf32>
    %cst_95 = arith.constant 9.99999974E-6 : f32
    %99 = vector.broadcast %cst_95 : f32 to vector<1x128xf32>
    %100 = arith.addf %98, %99 : vector<1x128xf32>
    %101 = math.rsqrt %100 : vector<1x128xf32>
    %102 = arith.mulf %86, %101 : vector<1x128xf32>
    %103 = vector.broadcast %102 : vector<1x128xf32> to vector<128x128xf32>
    %104 = arith.mulf %93, %103 : vector<128x128xf32>
    %105 = vector.broadcast %87 : vector<1x128xf32> to vector<128x128xf32>
    %106 = arith.addf %104, %105 : vector<128x128xf32>
    %c0_96 = arith.constant 0 : index
    %c0_97 = arith.constant 0 : index
    %107 = vector.load %arg8[%c0_96, %c0_97] : memref<128x128xbf16, #tpu.memory_space<vmem>>, vector<128x128xbf16>
    %cst_98 = arith.constant dense<0.000000e+00> : vector<128x128xf32>
    %108 = tpu.matmul %0, %107, %cst_98 {dimension_numbers = #tpu.dot_dimension_numbers<[1], [0], [0], [1], [0, 0, 1, 1], [], []>} : vector<128x128xbf16>, vector<128x128xbf16>, vector<128x128xf32> -> vector<128x128xf32>
    %c0_99 = arith.constant 0 : index
    %c0_100 = arith.constant 0 : index
    %109 = vector.load %arg9[%c0_99, %c0_100] : memref<1x128xf32, #tpu.memory_space<vmem>>, vector<1x128xf32>
    %c0_101 = arith.constant 0 : index
    %c0_102 = arith.constant 0 : index
    %110 = vector.load %arg10[%c0_101, %c0_102] : memref<1x128xf32, #tpu.memory_space<vmem>>, vector<1x128xf32>
    %cst_103 = arith.constant dense<0.000000e+00> : vector<128xf32>
    %111 = vector.multi_reduction <add>, %108, %cst_103 [0] : vector<128x128xf32> to vector<128xf32>
    %112 = vector.shape_cast %111 : vector<128xf32> to vector<1x128xf32>
    %cst_104 = arith.constant 7.812500e-03 : f32
    %113 = vector.broadcast %cst_104 : f32 to vector<1x128xf32>
    %114 = arith.mulf %112, %113 : vector<1x128xf32>
    %115 = vector.broadcast %114 : vector<1x128xf32> to vector<128x128xf32>
    %116 = arith.subf %108, %115 : vector<128x128xf32>
    %117 = arith.mulf %116, %116 : vector<128x128xf32>
    %cst_105 = arith.constant dense<0.000000e+00> : vector<128xf32>
    %118 = vector.multi_reduction <add>, %117, %cst_105 [0] : vector<128x128xf32> to vector<128xf32>
    %119 = vector.shape_cast %118 : vector<128xf32> to vector<1x128xf32>
    %cst_106 = arith.constant 7.812500e-03 : f32
    %120 = vector.broadcast %cst_106 : f32 to vector<1x128xf32>
    %121 = arith.mulf %119, %120 : vector<1x128xf32>
    %cst_107 = arith.constant 9.99999974E-6 : f32
    %122 = vector.broadcast %cst_107 : f32 to vector<1x128xf32>
    %123 = arith.addf %121, %122 : vector<1x128xf32>
    %124 = math.rsqrt %123 : vector<1x128xf32>
    %125 = arith.mulf %109, %124 : vector<1x128xf32>
    %126 = vector.broadcast %125 : vector<1x128xf32> to vector<128x128xf32>
    %127 = arith.mulf %116, %126 : vector<128x128xf32>
    %128 = vector.broadcast %110 : vector<1x128xf32> to vector<128x128xf32>
    %129 = arith.addf %127, %128 : vector<128x128xf32>
    %130 = arith.addf %106, %129 : vector<128x128xf32>
    %cst_108 = arith.constant 0.000000e+00 : f32
    %131 = vector.broadcast %cst_108 : f32 to vector<128x128xf32>
    %132 = arith.maximumf %130, %131 : vector<128x128xf32>
    %133 = vector.extract_strided_slice %132 {offsets = [0, 0], sizes = [128, 8], strides = [1, 1]} : vector<128x128xf32> to vector<128x8xf32>
    %c0_109 = arith.constant 0 : index
    %c0_110 = arith.constant 0 : index
    %134 = vector.load %arg11[%c0_109, %c0_110] : memref<128x8xf32, #tpu.memory_space<vmem>>, vector<128x8xf32>
    tpu.vector_store %arg11[%c0_109, %c0_110], %133 {strides = array<i32>} : memref<128x8xf32, #tpu.memory_space<vmem>>, vector<128x8xf32>,
    return
  }
  func.func @transform_0(%arg0: i32) -> (i32, i32) {
    %c0_i32 = arith.constant 0 : i32
    %c0_i32_0 = arith.constant 0 : i32
    %c0_i32_1 = arith.constant 0 : i32
    return %c0_i32, %c0_i32_0 : i32, i32
  }
  func.func @transform_1(%arg0: i32) -> (i32, i32) {
    %c0_i32 = arith.constant 0 : i32
    %c0_i32_0 = arith.constant 0 : i32
    %c0_i32_1 = arith.constant 0 : i32
    return %c0_i32, %c0_i32_0 : i32, i32
  }
  func.func @transform_2(%arg0: i32) -> (i32, i32) {
    %c0_i32 = arith.constant 0 : i32
    %c0_i32_0 = arith.constant 0 : i32
    %c0_i32_1 = arith.constant 0 : i32
    return %c0_i32, %c0_i32_0 : i32, i32
  }
  func.func @transform_3(%arg0: i32) -> (i32, i32) {
    %c0_i32 = arith.constant 0 : i32
    %c0_i32_0 = arith.constant 0 : i32
    %c0_i32_1 = arith.constant 0 : i32
    return %c0_i32, %c0_i32_0 : i32, i32
  }
  func.func @transform_4(%arg0: i32) -> (i32, i32, i32) {
    %c0_i32 = arith.constant 0 : i32
    %c0_i32_0 = arith.constant 0 : i32
    %c0_i32_1 = arith.constant 0 : i32
    %c0_i32_2 = arith.constant 0 : i32
    return %c0_i32, %c0_i32_0, %c0_i32_1 : i32, i32, i32
  }
  func.func @transform_5(%arg0: i32) -> (i32, i32) {
    %c0_i32 = arith.constant 0 : i32
    %c0_i32_0 = arith.constant 0 : i32
    %c0_i32_1 = arith.constant 0 : i32
    return %c0_i32, %c0_i32_0 : i32, i32
  }
  func.func @transform_6(%arg0: i32) -> (i32, i32) {
    %c0_i32 = arith.constant 0 : i32
    %c0_i32_0 = arith.constant 0 : i32
    %c0_i32_1 = arith.constant 0 : i32
    return %c0_i32, %c0_i32_0 : i32, i32
  }
  func.func @transform_7(%arg0: i32) -> (i32, i32) {
    %c0_i32 = arith.constant 0 : i32
    %c0_i32_0 = arith.constant 0 : i32
    %c0_i32_1 = arith.constant 0 : i32
    return %c0_i32, %c0_i32_0 : i32, i32
  }
  func.func @transform_8(%arg0: i32) -> (i32, i32) {
    %c0_i32 = arith.constant 0 : i32
    %c0_i32_0 = arith.constant 0 : i32
    %c0_i32_1 = arith.constant 0 : i32
    return %c0_i32, %c0_i32_0 : i32, i32
  }
  func.func @transform_9(%arg0: i32) -> (i32, i32) {
    %c0_i32 = arith.constant 0 : i32
    %c0_i32_0 = arith.constant 0 : i32
    %c0_i32_1 = arith.constant 0 : i32
    return %c0_i32, %c0_i32_0 : i32, i32
  }
  func.func @transform_10(%arg0: i32) -> (i32, i32) {
    %c0_i32 = arith.constant 0 : i32
    %c0_i32_0 = arith.constant 0 : i32
    %c0_i32_1 = arith.constant 0 : i32
    return %c0_i32, %c0_i32_0 : i32, i32
  }
}

</mosaic_0001>

<bundles_post_ra>
// kernel: tpu_custom_call.1
= control target key start
LH: loop header
LB: loop body
LE: loop exit
PB: predicated region body
PF: predicated region fallthrough
CT: control target
= control target key end

     0   :  { %15 = vsyncpa [#allocation4], 0  ;;  %s6843_s0 = inlined_call_operand.hbm [shape: bf16[128,128], index: 0, kind: input, shape index: {}]   ;;  %s6844_s1 = inlined_call_operand.hbm [shape: bf16[128,128], index: 1, kind: input, shape index: {}]   ;;  %s6845_s2 = inlined_call_operand.vmem [shape: f32[1,128], index: 2, kind: input, shape index: {}]   ;;  %s6846_s3 = inlined_call_operand.vmem [shape: f32[1,128], index: 3, kind: input, shape index: {}]   ;;  %s6847_s4 = inlined_call_operand.hbm [shape: bf16[9,128,128], index: 4, kind: input, shape index: {}]   ;;  %s6848_s5 = inlined_call_operand.vmem [shape: f32[1,128], index: 5, kind: input, shape index: {}]   ;;  %s6849_s6 = inlined_call_operand.vmem [shape: f32[1,128], index: 6, kind: input, shape index: {}]   ;;  %s6850_s7 = inlined_call_operand.hbm [shape: bf16[128,128], index: 7, kind: input, shape index: {}]   ;;  %s6851_s8 = inlined_call_operand.vmem [shape: f32[1,128], index: 8, kind: input, shape index: {}]   ;;  %s6852_s9 = inlined_call_operand.vmem [shape: f32[1,128], index: 9, kind: input, shape index: {}]   ;;  %s6853_s10 = inlined_call_operand.vmem [shape: f32[128,8], index: 10, kind: output, shape index: {}]  }
   0x1   :  { %16 = vsyncpa [#allocation6], 0 }
   0x2   :  { %17 = vsyncpa [#allocation9], 0  ;;  %s5495_s13 = smov [#allocation5]   ;;  %s5496_s15 = smov [#allocation3]  }
   0x3   :  { %s35_s14 = sshll.u32 %s5495_s13, 4  ;;  %s23_s16 = sshll.u32 %s5496_s15, 4  ;;  %s36_s14 = int_to_ptr.vmem [resolvable:$true] %s35_s14  ;;  %s5557_s16 = int_to_ptr.vmem [resolvable:$true] %s23_s16 }
   0x4   :  { %s5401_s19 = scalar_lea.hbm %s6844_s1, 1024 }
   0x5   :  { %p5402_p0 = scmp.ne.s32.totalorder %s6844_s1, %s5401_s19  ;;  %p5405_p1 = scmp.lt.u32.totalorder %s5401_s19, %s6844_s1 }
   0x7   :  { %p5407_p2 = pnand %p5405_p1, %p5402_p0 }
   0x9   :  { %5410 = shalt.err (!%p5407_p2)
}
   0xa   :  { %s5411_s24 = scalar_lea.vmem %s36_s14, 1024  ;;  %p5416_p4 = scmp.lt.s32.totalorder %s36_s14, %s36_s14 }
   0xb   :  { %p5412_p3 = scmp.ne.s32.totalorder %s36_s14, %s5411_s24  ;;  %p5417_p5 = scmp.lt.s32.totalorder %s5411_s24, %s5411_s24 }
   0xd   :  { %p5418_p6 = por %p5417_p5, %p5416_p4 }
   0xf   :  { %p5419_p7 = pnand %p5418_p6, %p5412_p3 }
  0x11   :  { %5422 = shalt.err (!%p5419_p7)
}
  0x12   :  { %s5497_s25 = smov 64   ;;  %s5498_s26 = smov 4  }
  0x13   :  { %41 = dma.hbm_to_vmem [thread:$0]  %s6844_s1, 1024, %s36_s14, [#allocation6], %s5497_s25, %s5497_s25, %s5498_s26  }
  0x14   :  { %s5423_s11 = scalar_lea.hbm %s6843_s0, 1024 }
  0x15   :  { %p5424_p8 = scmp.ne.s32.totalorder %s6843_s0, %s5423_s11  ;;  %p5427_p9 = scmp.lt.u32.totalorder %s5423_s11, %s6843_s0 }
  0x17   :  { %p5429_p10 = pnand %p5427_p9, %p5424_p8 }
  0x19   :  { %5432 = shalt.err (!%p5429_p10)
}
  0x1a   :  { %s5433_s18 = scalar_lea.vmem %s5557_s16, 1024  ;;  %p5438_p12 = scmp.lt.s32.totalorder %s5557_s16, %s5557_s16 }
  0x1b   :  { %p5434_p11 = scmp.ne.s32.totalorder %s5557_s16, %s5433_s18  ;;  %p5439_p13 = scmp.lt.s32.totalorder %s5433_s18, %s5433_s18 }
  0x1d   :  { %p5440_p0 = por %p5439_p13, %p5438_p12 }
  0x1f   :  { %p5441_p1 = pnand %p5440_p0, %p5434_p11 }
  0x21   :  { %5444 = shalt.err (!%p5441_p1)
}
  0x22   :  { %29 = dma.hbm_to_vmem [thread:$0]  %s6843_s0, 1024, %s5557_s16, [#allocation4], %s5497_s25, %s5497_s25, %s5498_s26  }
  0x23   :  { %s5499_s19 = smov [#allocation7]   ;;  %s5500_s21 = smov [#allocation8]  }
  0x24   :  { %s51_s20 = sshll.u32 %s5499_s19, 4  ;;  %s67_s22 = sshll.u32 %s5500_s21, 4  ;;  %s52_s20 = int_to_ptr.vmem [resolvable:$true] %s51_s20  ;;  %s5594_s22 = int_to_ptr.vmem [resolvable:$true] %s67_s22 }
  0x25   :  { %s5445_s27 = scalar_lea.hbm %s6847_s4, 9216 }
  0x26   :  { %p5446_p2 = scmp.ne.s32.totalorder %s6847_s4, %s5445_s27  ;;  %p5449_p3 = scmp.lt.u32.totalorder %s5445_s27, %s6847_s4 }
  0x28   :  { %p5451_p4 = pnand %p5449_p3, %p5446_p2 }
  0x2a   :  { %5454 = shalt.err (!%p5451_p4)
}
  0x2b   :  { %s5455_s0 = scalar_lea.vmem %s52_s20, 9216  ;;  %p5460_p6 = scmp.lt.s32.totalorder %s52_s20, %s52_s20 }
  0x2c   :  { %p5456_p5 = scmp.ne.s32.totalorder %s52_s20, %s5455_s0  ;;  %p5461_p7 = scmp.lt.s32.totalorder %s5455_s0, %s5455_s0 }
  0x2e   :  { %p5462_p8 = por %p5461_p7, %p5460_p6 }
  0x30   :  { %p5463_p9 = pnand %p5462_p8, %p5456_p5 }
  0x32   :  { %5466 = shalt.err (!%p5463_p9)
}
  0x33   :  { %57 = dma.hbm_to_vmem [thread:$0]  %s6847_s4, 9216, %s52_s20, [#allocation6], %s5497_s25, %s5497_s25, %s5498_s26  }
  0x34   :  { %s5467_s17 = scalar_lea.hbm %s6850_s7, 1024 }
  0x35   :  { %p5468_p10 = scmp.ne.s32.totalorder %s6850_s7, %s5467_s17  ;;  %p5471_p11 = scmp.lt.u32.totalorder %s5467_s17, %s6850_s7 }
  0x37   :  { %p5473_p12 = pnand %p5471_p11, %p5468_p10 }
  0x39   :  { %5476 = shalt.err (!%p5473_p12)
}
  0x3a   :  { %s5477_s21 = scalar_lea.vmem %s5594_s22, 1024  ;;  %p5482_p0 = scmp.lt.s32.totalorder %s5594_s22, %s5594_s22 }
  0x3b   :  { %p5478_p13 = scmp.ne.s32.totalorder %s5594_s22, %s5477_s21  ;;  %p5483_p1 = scmp.lt.s32.totalorder %s5477_s21, %s5477_s21 }
  0x3d   :  { %p5484_p2 = por %p5483_p1, %p5482_p0 }
  0x3f   :  { %p5485_p3 = pnand %p5484_p2, %p5478_p13 }
  0x41   :  { %5488 = shalt.err (!%p5485_p3)
}
  0x42   :  { %73 = dma.hbm_to_vmem [thread:$0]  %s6850_s7, 1024, %s5594_s22, [#allocation9], %s5497_s25, %s5497_s25, %s5498_s26  }
  0x43   :  { %5489 = dma.done.wait [#allocation4], 1024  }
  0x44   :  { %5490 = vsyncadd [#allocation4], 4294966272 }
  0x45   :  { %5491 = dma.done.wait [#allocation6], 10240  }
  0x46   :  { %5492 = vsyncadd [#allocation6], 4294957056 }
  0x47   :  { %5493 = dma.done.wait [#allocation9], 1024  }
  0x48   :  { %5494 = vsyncadd [#allocation9], 4294966272  ;;  %v5253_v0 = vld [vmem:[#allocation5] sm:$0xff]   ;;  %v5254_v1 = vld [vmem:[#allocation5 + $0x8] sm:$0xff]   ;;  %v5501_v18 = vmov 0   ;;  %vm728_vm0 = vcmask 1040384  }
  0x49   :  { %4766 = vmatprep.subr.bf16.mxu0 %v5253_v0  ;;  %v5255_v2 = vld [vmem:[#allocation5 + $0x10] sm:$0xff]   ;;  %v5256_v3 = vld [vmem:[#allocation5 + $0x18] sm:$0xff]   ;;  %v5261_v4 = vld [vmem:[#allocation3] sm:$0xff]   ;;  %462 = vst [vmem:[#allocation2 + $0x14] sm:$0x1] %v5501_v18  ;;  %vm722_vm2 = vcmask 1043456  }
  0x4a   :  { %4767 = vmatpush3.bf16.msra.mxu0 %v5253_v0  ;;  %4782 = vmatprep.mubr.bf16.mxu0 %v5261_v4  ;;  %v5257_v5 = vld [vmem:[#allocation5 + $0x20] sm:$0xff]   ;;  %v5258_v6 = vld [vmem:[#allocation5 + $0x28] sm:$0xff]   ;;  %v5259_v7 = vld [vmem:[#allocation5 + $0x30] sm:$0xff]   ;;  %464 = vst [vmem:[#allocation2 + $0x1c] sm:$0x1] %v5501_v18  ;;  %vm1534_vm9 = vcmask 1042432  }
  0x4b   :  { %4768 = vmatprep.subr.bf16.mxu0 %v5254_v1  ;;  %v5260_v8 = vld [vmem:[#allocation5 + $0x38] sm:$0xff]   ;;  %v5262_v9 = vld [vmem:[#allocation3 + $0x8] sm:$0xff]   ;;  %v5263_v10 = vld [vmem:[#allocation3 + $0x10] sm:$0xff]   ;;  %466 = vst [vmem:[#allocation2 + $0x24] sm:$0x1] %v5501_v18  ;;  %vm1535_vm10 = vcmask 1046532  }
  0x4c   :  { %v5264_v11 = vld [vmem:[#allocation3 + $0x18] sm:$0xff]   ;;  %v5265_v12 = vld [vmem:[#allocation3 + $0x20] sm:$0xff]   ;;  %v5266_v13 = vld [vmem:[#allocation3 + $0x28] sm:$0xff]   ;;  %468 = vst [vmem:[#allocation2 + $0x2c] sm:$0x1] %v5501_v18  ;;  %vm4315_vm12 = vcmask 64512  }
  0x4d   :  { %v5267_v14 = vld [vmem:[#allocation3 + $0x30] sm:$0xff]   ;;  %v5268_v15 = vld [vmem:[#allocation3 + $0x38] sm:$0xff]   ;;  %469 = vst [vmem:[#allocation2 + $0x30] sm:$0xf] %v5501_v18  ;;  %470 = vst [vmem:[#allocation2 + $0x34] sm:$0x1] %v5501_v18 }
  0x4e   :  { %4769 = vmatpush3.bf16.msra.mxu0 %v5254_v1  ;;  %471 = vst [vmem:[#allocation2 + $0x38] sm:$0xf] %v5501_v18  ;;  %472 = vst [vmem:[#allocation2 + $0x3c] sm:$0x1] %v5501_v18  ;;  %v5269_v23 = vld [vmem:[#allocation7 + $0xc0] sm:$0xff]   ;;  %v5270_v30 = vld [vmem:[#allocation7 + $0xc8] sm:$0xff]  }
  0x4f   :  { %4770 = vmatprep.subr.bf16.mxu0 %v5255_v2  ;;  %473 = vst [vmem:[#allocation2 + $0x40] sm:$0xf] %v5501_v18  ;;  %474 = vst [vmem:[#allocation2 + $0x44] sm:$0x1] %v5501_v18  ;;  %4894 = vmatprep.subr.bf16.mxu1 %v5269_v23  ;;  %v5271_v33 = vld [vmem:[#allocation7 + $0xd0] sm:$0xff]   ;;  %v5272_v37 = vld [vmem:[#allocation7 + $0x40] sm:$0xff]  }
  0x50   :  { %479 = vst [vmem:[#allocation2 + $0x58] sm:$0xf] %v5501_v18  ;;  %480 = vst [vmem:[#allocation2 + $0x5c] sm:$0x1] %v5501_v18  ;;  %4895 = vmatpush3.bf16.msra.mxu1 %v5269_v23  ;;  %v5273_v41 = vld [vmem:[#allocation7 + $0xd8] sm:$0xff]   ;;  %v5274_v43 = vld [vmem:[#allocation7 + $0x48] sm:$0xff]  }
  0x51   :  { %481 = vst [vmem:[#allocation2 + $0x60] sm:$0xf] %v5501_v18  ;;  %482 = vst [vmem:[#allocation2 + $0x64] sm:$0x1] %v5501_v18  ;;  %4896 = vmatprep.subr.bf16.mxu1 %v5270_v30  ;;  %v5275_v45 = vld [vmem:[#allocation7 + $0xe0] sm:$0xff]   ;;  %v5276_v49 = vld [vmem:[#allocation7 + $0x50] sm:$0xff]  }
  0x52   :  { %4771 = vmatpush3.bf16.msra.mxu0 %v5255_v2  ;;  %483 = vst [vmem:[#allocation2 + $0x68] sm:$0xf] %v5501_v18  ;;  %484 = vst [vmem:[#allocation2 + $0x6c] sm:$0x1] %v5501_v18  ;;  %v5277_v57 = vld [vmem:[#allocation7 + $0xe8] sm:$0xff]   ;;  %v5278_v59 = vld [vmem:[#allocation7 + $0x58] sm:$0xff]  }
  0x53   :  { %4772 = vmatprep.subr.bf16.mxu0 %v5256_v3  ;;  %485 = vst [vmem:[#allocation2 + $0x70] sm:$0xf] %v5501_v18  ;;  %486 = vst [vmem:[#allocation2 + $0x74] sm:$0x1] %v5501_v18  ;;  %v5279_v60 = vld [vmem:[#allocation7 + $0xf0] sm:$0xff]   ;;  %v5280_v61 = vld [vmem:[#allocation7 + $0x60] sm:$0xff]  }
  0x54   :  { %487 = vst [vmem:[#allocation2 + $0x78] sm:$0xf] %v5501_v18  ;;  %488 = vst [vmem:[#allocation2 + $0x7c] sm:$0x1] %v5501_v18  ;;  %4897 = vmatpush3.bf16.msra.mxu1 %v5270_v30  ;;  %v5281_v63 = vld [vmem:[#allocation7 + $0xf8] sm:$0xff]   ;;  %v5282_v1 = vld [vmem:[#allocation7 + $0x68] sm:$0xff]  }
  0x55   :  { %489 = vst [vmem:[#allocation2 + $0x80] sm:$0xf] %v5501_v18  ;;  %490 = vst [vmem:[#allocation2 + $0x84] sm:$0x1] %v5501_v18  ;;  %4898 = vmatprep.subr.bf16.mxu1 %v5271_v33  ;;  %vm729_vm1 = vsmask.f32 256 }
  0x56   :  { %4773 = vmatpush3.bf16.msra.mxu0 %v5256_v3  ;;  %491 = vst [vmem:[#allocation2 + $0x88] sm:$0xf] %v5501_v18  ;;  %492 = vst [vmem:[#allocation2 + $0x8c] sm:$0x1] %v5501_v18  ;;  %v5667_v3 = vld [vmem:[#allocation7 + $0x100] sm:$0xff]  }
  0x57   :  { %4774 = vmatprep.subr.bf16.mxu0 %v5257_v5  ;;  %493 = vst [vmem:[#allocation2 + $0x90] sm:$0xf] %v5501_v18  ;;  %494 = vst [vmem:[#allocation2 + $0x94] sm:$0x1] %v5501_v18  ;;  %vm723_vm3 = vsmask.f32 7938 }
  0x58   :  { %457 = vst [vmem:[#allocation2] sm:$0xf] %v5501_v18  ;;  %458 = vst [vmem:[#allocation2 + $0x4] sm:$0x1] %v5501_v18  ;;  %4899 = vmatpush3.bf16.msra.mxu1 %v5271_v33  ;;  %vm872_vm6 = vsmask.f32 3328 }
  0x59   :  { %459 = vst [vmem:[#allocation2 + $0x8] sm:$0xf] %v5501_v18  ;;  %460 = vst [vmem:[#allocation2 + $0xc] sm:$0x1] %v5501_v18  ;;  %4900 = vmatprep.subr.bf16.mxu1 %v5273_v41  ;;  %vm873_vm7 = vsmask.f32 7440 }
  0x5a   :  { %4775 = vmatpush3.bf16.msra.mxu0 %v5257_v5  ;;  %461 = vst [vmem:[#allocation2 + $0x10] sm:$0xf] %v5501_v18  ;;  %463 = vst [vmem:[#allocation2 + $0x18] sm:$0xf] %v5501_v18  ;;  %v5286_v5 = vld [vmem:[#allocation7 + $0x70] sm:$0xff]  }
  0x5b   :  { %4776 = vmatprep.subr.bf16.mxu0 %v5258_v6  ;;  %465 = vst [vmem:[#allocation2 + $0x20] sm:$0xf] %v5501_v18  ;;  %467 = vst [vmem:[#allocation2 + $0x28] sm:$0xf] %v5501_v18 }
  0x5c   :  { %475 = vst [vmem:[#allocation2 + $0x48] sm:$0xf] %v5501_v18  ;;  %476 = vst [vmem:[#allocation2 + $0x4c] sm:$0x1] %v5501_v18  ;;  %4901 = vmatpush3.bf16.msra.mxu1 %v5273_v41 }
  0x5d   :  { %477 = vst [vmem:[#allocation2 + $0x50] sm:$0xf] %v5501_v18  ;;  %478 = vst [vmem:[#allocation2 + $0x54] sm:$0x1] %v5501_v18  ;;  %4902 = vmatprep.subr.bf16.mxu1 %v5275_v45 }
  0x5e   :  { %4777 = vmatpush3.bf16.msra.mxu0 %v5258_v6  ;;  %495 = vst [vmem:[#allocation2 + $0x98] sm:$0xf] %v5501_v18  ;;  %496 = vst [vmem:[#allocation2 + $0x9c] sm:$0x1] %v5501_v18 }
  0x5f   :  { %4778 = vmatprep.subr.bf16.mxu0 %v5259_v7  ;;  %vm5888_vm4 = vmand %vm728_vm0, %vm729_vm1 }
  0x60   :  { %4903 = vmatpush3.bf16.msra.mxu1 %v5275_v45  ;;  %vm5898_vm5 = vmand %vm722_vm2, %vm723_vm3 }
  0x61   :  { %4904 = vmatprep.subr.bf16.mxu1 %v5277_v57  ;;  %vm6052_vm8 = vmor %vm872_vm6, %vm873_vm7 }
  0x62   :  { %4779 = vmatpush3.bf16.msra.mxu0 %v5259_v7  ;;  %vm6269_vm11 = vmor %vm1534_vm9, %vm1535_vm10 }
  0x63   :  { %4780 = vmatprep.subr.bf16.mxu0 %v5260_v8 }
  0x64   :  { %4905 = vmatpush3.bf16.msra.mxu1 %v5277_v57 }
  0x65   :  { %4906 = vmatprep.subr.bf16.mxu1 %v5279_v60 }
  0x66   :  { %4781 = vmatpush3.bf16.msra.mxu0 %v5260_v8 }
  0x67   :  { %4798 = vmatprep.subr.bf16.mxu0 %v5272_v37 }
  0x68   :  { %4907 = vmatpush3.bf16.msra.mxu1 %v5279_v60 }
  0x69   :  { %4783 = vmatmul.mubr.bf16.vlgmr.msra.gmra.mrb[0].mxu0 %v5262_v9  ;;  %4908 = vmatprep.subr.bf16.mxu1 %v5281_v63 }
  0x6a   :  { %4786 = vmatprep.mubr.bf16.mxu0 %v5263_v10  ;;  %4799 = vmatpush3.bf16.msra.mxu0 %v5272_v37 }
  0x6b   :  { %4800 = vmatprep.subr.bf16.mxu0 %v5274_v43 }
  0x6c   :  { %4909 = vmatpush3.bf16.msra.mxu1 %v5281_v63 }
  0x6d   :  { %4926 = vmatprep.subr.bf16.mxu1 %v5667_v3 }
  0x6e   :  { %4801 = vmatpush3.bf16.msra.mxu0 %v5274_v43 }
  0x6f   :  { %4802 = vmatprep.subr.bf16.mxu0 %v5276_v49 }
  0x71   :  { %4787 = vmatmul.mubr.bf16.gmra.mrb[4].mxu0 %v5264_v11  ;;  %v5289_v11 = vld [vmem:[#allocation7 + $0x78] sm:$0xff]  }
  0x72   :  { %4790 = vmatprep.mubr.bf16.mxu0 %v5265_v12  ;;  %4803 = vmatpush3.bf16.msra.mxu0 %v5276_v49 }
  0x73   :  { %4804 = vmatprep.subr.bf16.mxu0 %v5278_v59 }
  0x76   :  { %4805 = vmatpush3.bf16.msra.mxu0 %v5278_v59 }
  0x77   :  { %4806 = vmatprep.subr.bf16.mxu0 %v5280_v61 }
  0x79   :  { %4791 = vmatmul.mubr.bf16.gmra.mrb[8].mxu0 %v5266_v13 }
  0x7a   :  { %4794 = vmatprep.mubr.bf16.mxu0 %v5267_v14  ;;  %4807 = vmatpush3.bf16.msra.mxu0 %v5280_v61 }
  0x7b   :  { %4808 = vmatprep.subr.bf16.mxu0 %v5282_v1 }
  0x7e   :  { %4809 = vmatpush3.bf16.msra.mxu0 %v5282_v1  ;;  %v824_v1 = vld [vmem:[#allocation2] sm:$0xf] }
  0x7f   :  { %4810 = vmatprep.subr.bf16.mxu0 %v5286_v5 }
  0x81   :  { %4795 = vmatmul.mubr.bf16.gmra.mrb[12].mxu0 %v5268_v15 }
  0x82   :  { %4811 = vmatpush3.bf16.msra.mxu0 %v5286_v5  ;;  %v879_v5 = vshll.u32 %v824_v1, 16 }
  0x83   :  { %4812 = vmatprep.subr.bf16.mxu0 %v5289_v11 }
  0x86   :  { %4813 = vmatpush3.bf16.msra.mxu0 %v5289_v11  ;;  %v316_v11 = vld [vmem:[%s6845_s2] sm:$0x1] }
 0x13c   :  { %v5631_v16 = vpop.f32.mrb[0].mxu0 }
 0x13d   :  { %v5633_v17 = vpop.f32.mrb[1].mxu0 }
 0x13e   :  { %v5635_v19 = vpop.f32.mrb[2].mxu0 }
 0x13f   :  { %v5637_v20 = vpop.f32.mrb[3].mxu0 }
 0x140   :  { %v318_v21 = vadd.f32 %v5637_v20, %v5633_v17 }
 0x142   :  { %v319_v22 = vadd.f32 %v5631_v16, %v318_v21 }
 0x144   :  { %v5642_v24 = vpop.f32.mrb[4].mxu0  ;;  %v320_v25 = vadd.f32 %v5635_v19, %v319_v22 }
 0x145   :  { %v5645_v26 = vpop.f32.mrb[5].mxu0 }
 0x146   :  { %v321_v27 = vadd.f32 %v320_v25, %v5645_v26  ;;  %v5648_v28 = vpop.f32.mrb[6].mxu0 }
 0x147   :  { %v5650_v29 = vpop.f32.mrb[7].mxu0 }
 0x148   :  { %v322_v31 = vadd.f32 %v321_v27, %v5650_v29 }
 0x14a   :  { %v323_v32 = vadd.f32 %v5642_v24, %v322_v31 }
 0x14c   :  { %v5654_v34 = vpop.f32.mrb[8].mxu0  ;;  %v324_v35 = vadd.f32 %v5648_v28, %v323_v32 }
 0x14d   :  { %v5657_v36 = vpop.f32.mrb[9].mxu0 }
 0x14e   :  { %v325_v38 = vadd.f32 %v324_v35, %v5657_v36  ;;  %v5660_v39 = vpop.f32.mrb[10].mxu0 }
 0x14f   :  { %v5662_v40 = vpop.f32.mrb[11].mxu0 }
 0x150   :  { %v326_v42 = vadd.f32 %v325_v38, %v5662_v40 }
 0x152   :  { %v327_v44 = vadd.f32 %v5654_v34, %v326_v42 }
 0x154   :  { %v4796_v46 = vpop.f32.mrb[12].mxu0  ;;  %v328_v47 = vadd.f32 %v5660_v39, %v327_v44 }
 0x155   :  { %v301_v48 = vpop.f32.mrb[13].mxu0 }
 0x156   :  { %v329_v50 = vadd.f32 %v328_v47, %v301_v48  ;;  %v4797_v51 = vpop.f32.mrb[14].mxu0 }
 0x157   :  { %v304_v52 = vpop.f32.mrb[15].mxu0 }
 0x158   :  { %v330_v53 = vadd.f32 %v329_v50, %v304_v52 }
 0x15a   :  { %v331_v54 = vadd.f32 %v4796_v46, %v330_v53 }
 0x15c   :  { %v332_v55 = vadd.f32 %v4797_v51, %v331_v54 }
 0x15e   :  { %v333_v56 = vrot.slane %v332_v55, 4 }
 0x160   :  { %v334_v58 = vadd.f32 %v333_v56, %v332_v55 }
 0x162   :  { %v335_v62 = vrot.slane %v334_v58, 2 }
 0x164   :  { %v336_v0 = vadd.f32 %v335_v62, %v334_v58 }
 0x166   :  { %v337_v2 = vrot.slane %v336_v0, 1 }
 0x168   :  { %v338_v4 = vadd.f32 %v337_v2, %v336_v0  ;;  %v398_v0 = vlaneseq }
 0x16a   :  { %v339_v6 = vmul.f32 0.0078125, %v338_v4  ;;  %v399_v2 = vshrl.u32 %v398_v0, 7  ;;  %v876_v4 = vshrl.u32 %v824_v1, 16 }
 0x16c   :  { %v5671_v7 = vsub.f32 %v5633_v17, %v339_v6  ;;  %v5674_v8 = vsub.f32 %v5637_v20, %v339_v6  ;;  %v5677_v9 = vsub.f32 %v5631_v16, %v339_v6  ;;  %v5680_v10 = vsub.f32 %v5635_v19, %v339_v6 }
 0x16d   :  { %v5683_v12 = vsub.f32 %v5645_v26, %v339_v6  ;;  %v5686_v13 = vsub.f32 %v5650_v29, %v339_v6  ;;  %v5689_v14 = vsub.f32 %v5642_v24, %v339_v6  ;;  %v5692_v15 = vsub.f32 %v5648_v28, %v339_v6  ;;  %v5718_v26 = vld [vmem:[#allocation7] sm:$0xff]  }
 0x16e   :  { %v5695_v16 = vsub.f32 %v5657_v36, %v339_v6  ;;  %v5698_v17 = vsub.f32 %v5662_v40, %v339_v6  ;;  %v5701_v18 = vsub.f32 %v5654_v34, %v339_v6  ;;  %v5704_v19 = vsub.f32 %v5660_v39, %v339_v6  ;;  %4830 = vmatprep.subr.bf16.mxu0 %v5718_v26 }
 0x16f   :  { %v5706_v20 = vsub.f32 %v301_v48, %v339_v6  ;;  %v5708_v21 = vsub.f32 %v304_v52, %v339_v6  ;;  %v5710_v22 = vsub.f32 %v4796_v46, %v339_v6  ;;  %v5712_v23 = vsub.f32 %v4797_v51, %v339_v6  ;;  %v832_v6 = vld [vmem:[#allocation2 + $0x50] sm:$0xf] }
 0x170   :  { %v356_v24 = vmul.f32 %v5671_v7, %v5671_v7  ;;  %v357_v25 = vmul.f32 %v5674_v8, %v5674_v8  ;;  %v358_v27 = vmul.f32 %v5677_v9, %v5677_v9  ;;  %v359_v29 = vmul.f32 %v5680_v10, %v5680_v10 }
 0x171   :  { %v360_v31 = vmul.f32 %v5683_v12, %v5683_v12  ;;  %v361_v33 = vmul.f32 %v5686_v13, %v5686_v13  ;;  %v362_v35 = vmul.f32 %v5689_v14, %v5689_v14  ;;  %v363_v37 = vmul.f32 %v5692_v15, %v5692_v15 }
 0x172   :  { %v372_v28 = vadd.f32 %v357_v25, %v356_v24  ;;  %v364_v39 = vmul.f32 %v5695_v16, %v5695_v16  ;;  %v365_v41 = vmul.f32 %v5698_v17, %v5698_v17  ;;  %v366_v43 = vmul.f32 %v5701_v18, %v5701_v18 }
 0x173   :  { %v367_v45 = vmul.f32 %v5704_v19, %v5704_v19  ;;  %v368_v47 = vmul.f32 %v5706_v20, %v5706_v20  ;;  %v369_v49 = vmul.f32 %v5708_v21, %v5708_v21  ;;  %v370_v51 = vmul.f32 %v5710_v22, %v5710_v22 }
 0x174   :  { %v373_v30 = vadd.f32 %v372_v28, %v358_v27  ;;  %v371_v53 = vmul.f32 %v5712_v23, %v5712_v23  ;;  %v5752_v24 = vsub.s32 0, %v399_v2  ;;  %v5754_v27 = vrot.slane %v876_v4, 4 }
 0x175   :  { %v5756_v28 = vrot.slane %v879_v5, 5 }
 0x176   :  { %v374_v32 = vadd.f32 %v373_v30, %v359_v29  ;;  %v988_v29 = vshrl.u32 %v832_v6, 16  ;;  %v991_v30 = vshll.u32 %v832_v6, 16 }
 0x178   :  { %v375_v34 = vadd.f32 %v374_v32, %v360_v31 }
 0x17a   :  { %v376_v36 = vadd.f32 %v375_v34, %v361_v33  ;;  %v5761_v34 = vrot.slane %v988_v29, 4 }
 0x17c   :  { %v377_v38 = vadd.f32 %v376_v36, %v362_v35  ;;  %v5763_v35 = vrot.slane %v991_v30, 5 }
 0x17e   :  { %v378_v40 = vadd.f32 %v377_v38, %v363_v37 }
 0x180   :  { %v379_v42 = vadd.f32 %v378_v40, %v364_v39  ;;  %v4355_v40 = vld [vmem:[%s6846_s3] ss:$0 sm:$0xff] }
 0x182   :  { %v380_v44 = vadd.f32 %v379_v42, %v365_v41 }
 0x184   :  { %v381_v46 = vadd.f32 %v380_v44, %v366_v43 }
 0x186   :  { %v382_v48 = vadd.f32 %v381_v46, %v367_v45 }
 0x188   :  { %v383_v50 = vadd.f32 %v382_v48, %v368_v47 }
 0x18a   :  { %v384_v52 = vadd.f32 %v383_v50, %v369_v49 }
 0x18c   :  { %v385_v54 = vadd.f32 %v384_v52, %v370_v51 }
 0x18e   :  { %v386_v55 = vadd.f32 %v385_v54, %v371_v53 }
 0x190   :  { %v387_v56 = vrot.slane %v386_v55, 4 }
 0x192   :  { %v388_v57 = vadd.f32 %v387_v56, %v386_v55 }
 0x194   :  { %v389_v58 = vrot.slane %v388_v57, 2 }
 0x196   :  { %v390_v59 = vadd.f32 %v389_v58, %v388_v57 }
 0x198   :  { %v391_v60 = vrot.slane %v390_v59, 1 }
 0x19a   :  { %v392_v61 = vadd.f32 %v391_v60, %v390_v59 }
 0x19c   :  { %v393_v62 = vmul.f32 0.0078125, %v392_v61 }
 0x19e   :  { %v394_v63 = vadd.f32 1e-05, %v393_v62 }
 0x1a0   :  { %5373 = vrsqrt.f32 %v394_v63 }
 0x1aa   :  { %v5374_v25 = vpop.eup %5373 }
 0x1ab   :  { %v396_v31 = vmul.f32 %v5374_v25, %v316_v11 }
 0x1ad   :  { %v401_v32 = vrot.slane %v396_v31, %v5752_v24 }
 0x1af   :  { %v403_v36 = vmul.f32 %v401_v32, %v5671_v7  ;;  %v404_v37 = vmul.f32 %v401_v32, %v5674_v8  ;;  %v405_v38 = vmul.f32 %v401_v32, %v5677_v9  ;;  %v406_v39 = vmul.f32 %v401_v32, %v5680_v10 }
 0x1b0   :  { %v407_v41 = vmul.f32 %v401_v32, %v5683_v12  ;;  %v408_v42 = vmul.f32 %v401_v32, %v5686_v13  ;;  %v409_v43 = vmul.f32 %v401_v32, %v5689_v14  ;;  %v410_v44 = vmul.f32 %v401_v32, %v5692_v15 }
 0x1b1   :  { %v411_v7 = vmul.f32 %v401_v32, %v5695_v16  ;;  %v412_v8 = vmul.f32 %v401_v32, %v5698_v17  ;;  %v413_v9 = vmul.f32 %v401_v32, %v5701_v18  ;;  %v414_v10 = vmul.f32 %v401_v32, %v5704_v19 }
 0x1b2   :  { %v415_v45 = vmul.f32 %v401_v32, %v5706_v20  ;;  %v416_v46 = vmul.f32 %v401_v32, %v5708_v21  ;;  %v417_v12 = vmul.f32 %v401_v32, %v5710_v22  ;;  %v418_v13 = vmul.f32 %v401_v32, %v5712_v23 }
 0x1b3   :  { %v425_v47 = vadd.f32 %v4355_v40, %v403_v36  ;;  %v426_v14 = vadd.f32 %v4355_v40, %v404_v37  ;;  %v427_v48 = vadd.f32 %v4355_v40, %v405_v38  ;;  %v428_v15 = vadd.f32 %v4355_v40, %v406_v39 }
 0x1b4   :  { %v429_v49 = vadd.f32 %v4355_v40, %v407_v41  ;;  %v430_v16 = vadd.f32 %v4355_v40, %v408_v42  ;;  %v431_v50 = vadd.f32 %v4355_v40, %v409_v43  ;;  %v432_v17 = vadd.f32 %v4355_v40, %v410_v44 }
 0x1b5   :  { %v433_v51 = vadd.f32 %v4355_v40, %v411_v7  ;;  %v434_v18 = vadd.f32 %v4355_v40, %v412_v8  ;;  %v435_v52 = vadd.f32 %v4355_v40, %v413_v9  ;;  %v436_v19 = vadd.f32 %v4355_v40, %v414_v10  ;;  %v770_v10 = vld [vmem:[#allocation2 + $0x40] sm:$0xf]  ;;  %v773_v8 = vld [vmem:[#allocation2 + $0x44] sm:$0x1] }
 0x1b6   :  { %v437_v53 = vadd.f32 %v4355_v40, %v415_v45  ;;  %v438_v20 = vadd.f32 %v4355_v40, %v416_v46  ;;  %v439_v54 = vadd.f32 %v4355_v40, %v417_v12  ;;  %v440_v21 = vadd.f32 %v4355_v40, %v418_v13 }
 0x1b7   :  { %v441_v55 = vmax.f32 %v425_v47, 0.0  ;;  %v442_v22 = vmax.f32 %v426_v14, 0.0  ;;  %v443_v56 = vmax.f32 %v427_v48, 0.0  ;;  %v444_v23 = vmax.f32 %v428_v15, 0.0 }
 0x1b8   :  { %v445_v57 = vmax.f32 %v429_v49, 0.0  ;;  %v446_v58 = vmax.f32 %v430_v16, 0.0  ;;  %v447_v59 = vmax.f32 %v431_v50, 0.0  ;;  %v448_v60 = vmax.f32 %v432_v17, 0.0 }
 0x1b9   :  { %v449_v61 = vmax.f32 %v433_v51, 0.0  ;;  %v450_v62 = vmax.f32 %v434_v18, 0.0  ;;  %v451_v63 = vmax.f32 %v435_v52, 0.0  ;;  %v452_v0 = vmax.f32 %v436_v19, 0.0  ;;  %v767_v51 = vld [vmem:[#allocation2 + $0x3c] sm:$0x1] }
 0x1ba   :  { %v453_v1 = vmax.f32 %v437_v53, 0.0  ;;  %v454_v2 = vmax.f32 %v438_v20, 0.0  ;;  %v455_v4 = vmax.f32 %v439_v54, 0.0  ;;  %v456_v5 = vmax.f32 %v440_v21, 0.0 }
 0x1bb   :  { %v5784_v6 = vpack.c.bf16 %v441_v55, %v441_v55  ;;  %v5786_v11 = vpack.c.bf16 %v442_v22, %v442_v22  ;;  %v4576_v25 = vpack.c.bf16 %v443_v56, %v443_v56  ;;  %v4577_v29 = vpack.c.bf16 %v444_v23, %v444_v23  ;;  %v788_v22 = vld [vmem:[#allocation2 + $0x68] sm:$0xf] }
 0x1bc   :  { %v4578_v30 = vpack.c.bf16 %v445_v57, %v445_v57  ;;  %v4579_v31 = vpack.c.bf16 %v446_v58, %v446_v58  ;;  %v4580_v32 = vpack.c.bf16 %v447_v59, %v447_v59  ;;  %v4581_v36 = vpack.c.bf16 %v448_v60, %v448_v60 }
 0x1bd   :  { %v4582_v37 = vpack.c.bf16 %v449_v61, %v449_v61  ;;  %v5788_v38 = vpack.c.bf16 %v450_v62, %v450_v62  ;;  %v5790_v39 = vpack.c.bf16 %v451_v63, %v451_v63  ;;  %v5792_v40 = vpack.c.bf16 %v452_v0, %v452_v0 }
 0x1be   :  { %v5794_v41 = vpack.c.bf16 %v453_v1, %v453_v1  ;;  %v5796_v42 = vpack.c.bf16 %v454_v2, %v454_v2  ;;  %v5798_v43 = vpack.c.bf16 %v455_v4, %v455_v4  ;;  %v5800_v44 = vpack.c.bf16 %v456_v5, %v456_v5 }
 0x1bf   :  { %v562_v7 = vshrl.u32 %v5784_v6, 16  ;;  %v570_v9 = vshrl.u32 %v5786_v11, 16  ;;  %v578_v45 = vshrl.u32 %v4576_v25, 16  ;;  %v581_v46 = vshll.u32 %v4576_v25, 16 }
 0x1c0   :  { %v586_v12 = vshrl.u32 %v4577_v29, 16  ;;  %v589_v13 = vshll.u32 %v4577_v29, 16  ;;  %v594_v48 = vshrl.u32 %v4578_v30, 16  ;;  %v597_v15 = vshll.u32 %v4578_v30, 16 }
 0x1c1   :  { %v5806_v47 = vrot.slane %v562_v7, 7  ;;  %v5808_v14 = vrot.slane %v570_v9, 7  ;;  %v5810_v49 = vrot.slane %v578_v45, 7  ;;  %v602_v50 = vshrl.u32 %v4579_v31, 16  ;;  %v779_v7 = vld [vmem:[#allocation2 + $0x5c] sm:$0x1] }
 0x1c2   :  { %v5812_v16 = vrot.slane %v586_v12, 7  ;;  %v605_v17 = vshll.u32 %v4579_v31, 16  ;;  %v5816_v52 = vrot.slane %v594_v48, 7  ;;  %v610_v19 = vshrl.u32 %v4580_v32, 16 }
 0x1c3   :  { %v576_v18 = vrot.slane %v5808_v14, 4  ;;  %v5819_v53 = vor.u32 %v581_v46, %v5810_v49  ;;  %v584_v20 = vrot.slane %v5810_v49, 4  ;;  %v5830_v56 = vrot.slane %v602_v50, 7  ;;  %v743_v50 = vld [vmem:[#allocation2 + $0x1c] sm:$0x1] }
 0x1c4   :  { %v5823_v54 = vor.u32 %v589_v13, %v5812_v16  ;;  %v592_v21 = vrot.slane %v5812_v16, 4  ;;  %v5827_v55 = vor.u32 %v597_v15, %v5816_v52  ;;  %v5832_v23 = vrot.slane %v610_v19, 7  ;;  %v737_v15 = vld [vmem:[#allocation2 + $0x14] sm:$0x1]  ;;  %v776_v19 = vld [vmem:[#allocation2 + $0x58] sm:$0xf] }
 0x1c5   :  { %v613_v57 = vshll.u32 %v4580_v32, 16  ;;  %v618_v58 = vshrl.u32 %v4581_v36, 16  ;;  %v621_v59 = vshll.u32 %v4581_v36, 16  ;;  %v626_v60 = vshrl.u32 %v4582_v37, 16  ;;  %v782_v36 = vld [vmem:[#allocation2 + $0x60] sm:$0xf] }
 0x1c6   :  { %v5835_v61 = vor.u32 %v605_v17, %v5830_v56  ;;  %v629_v0 = vshll.u32 %v4582_v37, 16  ;;  %v634_v5 = vshrl.u32 %v5788_v38, 16  ;;  %v637_v25 = vshll.u32 %v5788_v38, 16  ;;  %v797_v16 = vld [vmem:[#allocation2 + $0x74] sm:$0x1] }
 0x1c7   :  { %v5840_v1 = vor.u32 %v613_v57, %v5832_v23  ;;  %v5842_v2 = vrot.slane %v618_v58, 7  ;;  %v5844_v4 = vrot.slane %v626_v60, 7  ;;  %v642_v29 = vshrl.u32 %v5790_v39, 16  ;;  %v749_v58 = vld [vmem:[#allocation2 + $0x24] sm:$0x1] }
 0x1c8   :  { %v645_v30 = vshll.u32 %v5790_v39, 16  ;;  %v650_v31 = vshrl.u32 %v5792_v40, 16  ;;  %v5859_v9 = vrot.slane %v634_v5, 7  ;;  %v653_v39 = vshll.u32 %v5792_v40, 16  ;;  %v758_v60 = vld [vmem:[#allocation2 + $0x30] sm:$0xf] }
 0x1c9   :  { %v5852_v32 = vor.u32 %v621_v59, %v5842_v2  ;;  %v5856_v37 = vor.u32 %v629_v0, %v5844_v4  ;;  %v5861_v45 = vrot.slane %v642_v29, 7  ;;  %v658_v46 = vshrl.u32 %v5794_v41, 16  ;;  %v755_v59 = vld [vmem:[#allocation2 + $0x2c] sm:$0x1]  ;;  %v761_v29 = vld [vmem:[#allocation2 + $0x34] sm:$0x1] }
 0x1ca   :  { %v5863_v38 = vrot.slane %v650_v31, 7  ;;  %v661_v12 = vshll.u32 %v5794_v41, 16  ;;  %v666_v13 = vshrl.u32 %v5796_v42, 16  ;;  %v669_v48 = vshll.u32 %v5796_v42, 16  ;;  %v785_v40 = vld [vmem:[#allocation2 + $0x64] sm:$0x1] }
 0x1cb   :  { %v5871_v17 = vor.u32 %v637_v25, %v5859_v9  ;;  %v5875_v57 = vor.u32 %v645_v30, %v5861_v45  ;;  %v5882_v0 = vrot.slane %v658_v46, 7  ;;  %v674_v30 = vshrl.u32 %v5798_v43, 16 }
 0x1cc   :  { %v5879_v41 = vor.u32 %v653_v39, %v5863_v38  ;;  %v5884_v5 = vrot.slane %v666_v13, 7  ;;  %v677_v31 = vshll.u32 %v5798_v43, 16  ;;  %v682_v39 = vshrl.u32 %v5800_v44, 16  ;;  %v764_v13 = vld [vmem:[#allocation2 + $0x38] sm:$0xf] }
 0x1cd   :  { %v685_v33 = vshll.u32 %v5800_v44, 16  ;;  %v5903_v42 = vor.u32 %v661_v12, %v5882_v0  ;;  %v5910_v63 = vrot.slane %v674_v30, 7  ;;  %v738_v12 = vsel %vm5888_vm4, %v576_v18, %v737_v15  ;;  %v791_v15 = vld [vmem:[#allocation2 + $0x6c] sm:$0x1] }
 0x1ce   :  { %v5907_v43 = vor.u32 %v669_v48, %v5884_v5  ;;  %v5912_v62 = vrot.slane %v682_v39, 7  ;;  %v744_v48 = vsel %vm5888_vm4, %v584_v20, %v743_v50  ;;  %v750_v30 = vsel %vm5888_vm4, %v592_v21, %v749_v58  ;;  %v794_v50 = vld [vmem:[#allocation2 + $0x70] sm:$0xf]  ;;  %739 = vst [vmem:[#allocation2 + $0x14] sm:$0x1] %v738_v12 }
 0x1cf   :  { %745 = vst [vmem:[#allocation2 + $0x1c] sm:$0x1] %v744_v48  ;;  %v6858_v39 = vrot.slane %v5816_v52, 4  ;;  %v759_v49 = vsel %vm5898_vm5, %v5835_v61, %v758_v60  ;;  %v6859_v18 = vrot.slane %v5830_v56, 4  ;;  %v679_v21 = vor.u32 %v677_v31, %v5910_v63  ;;  %v800_v48 = vld [vmem:[#allocation2 + $0x78] sm:$0xf] }
 0x1d0   :  { %v680_v52 = vrot.slane %v5910_v63, 4  ;;  %v687_v58 = vor.u32 %v685_v33, %v5912_v62  ;;  %751 = vst [vmem:[#allocation2 + $0x24] sm:$0x1] %v750_v30  ;;  %760 = vst [vmem:[#allocation2 + $0x30] sm:$0xf] %v759_v49  ;;  %v765_v56 = vsel %vm5898_vm5, %v5840_v1, %v764_v13  ;;  %v6860_v61 = vrot.slane %v5832_v23, 4 }
 0x1d1   :  { %v756_v44 = vsel %vm5888_vm4, %v6858_v39, %v755_v59  ;;  %v762_v20 = vsel %vm5888_vm4, %v6859_v18, %v761_v29  ;;  %v688_v59 = vrot.slane %v5912_v62, 4  ;;  %v803_v39 = vld [vmem:[#allocation2 + $0x7c] sm:$0x1]  ;;  %v771_v33 = vsel %vm5898_vm5, %v5852_v32, %v770_v10  ;;  %v806_v29 = vld [vmem:[#allocation2 + $0x80] sm:$0xf] }
 0x1d2   :  { %757 = vst [vmem:[#allocation2 + $0x2c] sm:$0x1] %v756_v44  ;;  %763 = vst [vmem:[#allocation2 + $0x34] sm:$0x1] %v762_v20  ;;  %v768_v60 = vsel %vm5888_vm4, %v6860_v61, %v767_v51  ;;  %v6861_v62 = vrot.slane %v5842_v2, 4  ;;  %v777_v23 = vsel %vm5898_vm5, %v5856_v37, %v776_v19  ;;  %v6862_v51 = vrot.slane %v5844_v4, 4 }
 0x1d3   :  { %v809_v31 = vld [vmem:[#allocation2 + $0x84] sm:$0x1]  ;;  %v812_v44 = vld [vmem:[#allocation2 + $0x88] sm:$0xf]  ;;  %769 = vst [vmem:[#allocation2 + $0x3c] sm:$0x1] %v768_v60  ;;  %v783_v10 = vsel %vm5898_vm5, %v5871_v17, %v782_v36  ;;  %v789_v4 = vsel %vm5898_vm5, %v5875_v57, %v788_v22  ;;  %v801_v22 = vsel %vm5898_vm5, %v5903_v42, %v800_v48  ;;  %v807_v57 = vsel %vm5898_vm5, %v5907_v43, %v806_v29 }
 0x1d4   :  { %v774_v63 = vsel %vm5888_vm4, %v6861_v62, %v773_v8  ;;  %v780_v1 = vsel %vm5888_vm4, %v6862_v51, %v779_v7  ;;  %v6863_v8 = vrot.slane %v5859_v9, 4  ;;  %v815_v32 = vld [vmem:[#allocation2 + $0x8c] sm:$0x1]  ;;  %v818_v13 = vld [vmem:[#allocation2 + $0x90] sm:$0xf]  ;;  %v6864_v37 = vrot.slane %v5861_v45, 4 }
 0x1d5   :  { %775 = vst [vmem:[#allocation2 + $0x44] sm:$0x1] %v774_v63  ;;  %v821_v12 = vld [vmem:[#allocation2 + $0x94] sm:$0x1]  ;;  %766 = vst [vmem:[#allocation2 + $0x38] sm:$0xf] %v765_v56  ;;  %v795_v7 = vsel %vm5898_vm5, %v5879_v41, %v794_v50  ;;  %v813_v42 = vsel %vm5898_vm5, %v679_v21, %v812_v44  ;;  %v819_v43 = vsel %vm5898_vm5, %v687_v58, %v818_v13 }
 0x1d6   :  { %v786_v2 = vsel %vm5888_vm4, %v6863_v8, %v785_v40  ;;  %772 = vst [vmem:[#allocation2 + $0x40] sm:$0xf] %v771_v33  ;;  %781 = vst [vmem:[#allocation2 + $0x5c] sm:$0x1] %v780_v1  ;;  %v792_v36 = vsel %vm5888_vm4, %v6864_v37, %v791_v15  ;;  %v6865_v9 = vrot.slane %v5863_v38, 4  ;;  %v6866_v45 = vrot.slane %v5882_v0, 4 }
 0x1d7   :  { %784 = vst [vmem:[#allocation2 + $0x60] sm:$0xf] %v783_v10  ;;  %787 = vst [vmem:[#allocation2 + $0x64] sm:$0x1] %v786_v2  ;;  %v740_v19 = vld [vmem:[#allocation2 + $0x18] sm:$0xf]  ;;  %v816_v0 = vsel %vm5888_vm4, %v680_v52, %v815_v32  ;;  %v6871_v46 = vor.u32 %v5756_v28, %v5754_v27 }
 0x1d8   :  { %v798_v17 = vsel %vm5888_vm4, %v6865_v9, %v797_v16  ;;  %778 = vst [vmem:[#allocation2 + $0x58] sm:$0xf] %v777_v23  ;;  %v746_v40 = vld [vmem:[#allocation2 + $0x20] sm:$0xf]  ;;  %790 = vst [vmem:[#allocation2 + $0x68] sm:$0xf] %v789_v4  ;;  %v804_v38 = vsel %vm5888_vm4, %v6866_v45, %v803_v39  ;;  %v741_v58 = vsel %vm5898_vm5, %v5819_v53, %v740_v19 }
 0x1d9   :  { %793 = vst [vmem:[#allocation2 + $0x6c] sm:$0x1] %v792_v36  ;;  %796 = vst [vmem:[#allocation2 + $0x70] sm:$0xf] %v795_v7  ;;  %v6867_v41 = vrot.slane %v5884_v5, 4  ;;  %v822_v5 = vsel %vm5888_vm4, %v688_v59, %v821_v12  ;;  %v6868_v16 = vshll.u32 %v5784_v6, 16  ;;  %v747_v59 = vsel %vm5898_vm5, %v5823_v54, %v746_v40 }
 0x1da   :  { %799 = vst [vmem:[#allocation2 + $0x74] sm:$0x1] %v798_v17  ;;  %v752_v49 = vld [vmem:[#allocation2 + $0x28] sm:$0xf]  ;;  %v731_v18 = vld [vmem:[#allocation2 + $0xc] sm:$0x1] }
 0x1db   :  { %v810_v30 = vsel %vm5888_vm4, %v6867_v41, %v809_v31  ;;  %802 = vst [vmem:[#allocation2 + $0x78] sm:$0xf] %v801_v22  ;;  %805 = vst [vmem:[#allocation2 + $0x7c] sm:$0x1] %v804_v38  ;;  %v725_v20 = vld [vmem:[#allocation2 + $0x8] sm:$0xf]  ;;  %v567_v21 = vor.u32 %v6868_v16, %v5806_v47  ;;  %v753_v6 = vsel %vm5898_vm5, %v5827_v55, %v752_v49 }
 0x1dc   :  { %808 = vst [vmem:[#allocation2 + $0x80] sm:$0xf] %v807_v57  ;;  %811 = vst [vmem:[#allocation2 + $0x84] sm:$0x1] %v810_v30  ;;  %v734_v15 = vld [vmem:[#allocation2 + $0x10] sm:$0xf]  ;;  %v994_v55 = vor.u32 %v5763_v35, %v5761_v34 }
 0x1dd   :  { %v856_v50 = vld [vmem:[#allocation2 + $0x4] sm:$0x1]  ;;  %814 = vst [vmem:[#allocation2 + $0x88] sm:$0xf] %v813_v42  ;;  %817 = vst [vmem:[#allocation2 + $0x8c] sm:$0x1] %v816_v0  ;;  %v726_v54 = vsel %vm5898_vm5, %v567_v21, %v725_v20 }
 0x1de   :  { %820 = vst [vmem:[#allocation2 + $0x90] sm:$0xf] %v819_v43  ;;  %823 = vst [vmem:[#allocation2 + $0x94] sm:$0x1] %v822_v5  ;;  %v6869_v52 = vshll.u32 %v5786_v11, 16  ;;  %v6870_v11 = vrot.slane %v5806_v47, 4 }
 0x1df   :  { %v858_v39 = vld [vmem:[#allocation2 + $0x14] sm:$0x1]  ;;  %v859_v56 = vld [vmem:[#allocation2 + $0x1c] sm:$0x1]  ;;  %742 = vst [vmem:[#allocation2 + $0x18] sm:$0xf] %v741_v58 }
 0x1e0   :  { %v575_v48 = vor.u32 %v6869_v52, %v5808_v14  ;;  %v864_v61 = vld [vmem:[#allocation2 + $0x54] sm:$0x1]  ;;  %748 = vst [vmem:[#allocation2 + $0x20] sm:$0xf] %v747_v59  ;;  %v732_v14 = vsel %vm5888_vm4, %v6870_v11, %v731_v18  ;;  %v885_v60 = vshll.u32 %v856_v50, 16  ;;  %v913_v63 = vshll.u32 %v858_v39, 16 }
 0x1e1   :  { %v860_v53 = vld [vmem:[#allocation2 + $0x24] sm:$0x1]  ;;  %v997_v33 = vshll.u32 %v864_v61, 16  ;;  %754 = vst [vmem:[#allocation2 + $0x28] sm:$0xf] %v753_v6  ;;  %v927_v25 = vshll.u32 %v859_v56, 16 }
 0x1e2   :  { %v735_v62 = vsel %vm5898_vm5, %v575_v48, %v734_v15  ;;  %733 = vst [vmem:[#allocation2 + $0xc] sm:$0x1] %v732_v14  ;;  %v861_v29 = vld [vmem:[#allocation2 + $0x2c] sm:$0x1]  ;;  %v6030_v47 = vld [vmem:[#allocation2 + $0x14] sm:$0x1] }
 0x1e3   :  { %727 = vst [vmem:[#allocation2 + $0x8] sm:$0xf] %v726_v54  ;;  %736 = vst [vmem:[#allocation2 + $0x10] sm:$0xf] %v735_v62  ;;  %v941_v31 = vshll.u32 %v860_v53, 16  ;;  %v955_v23 = vshll.u32 %v861_v29, 16 }
 0x1e4   :  { %v6032_v44 = vld [vmem:[#allocation2 + $0x30] sm:$0xf]  ;;  %v6037_v51 = vrot.slane %v6871_v46, 4  ;;  %v6039_v1 = vrot.slane %v885_v60, 5  ;;  %v6041_v10 = vrot.slane %v994_v55, 4  ;;  %v6043_v34 = vrot.slane %v997_v33, 5 }
 0x1e5   :  { %v6045_v35 = vrot.slane %v913_v63, 5  ;;  %v6047_v8 = vrot.slane %v927_v25, 5  ;;  %v960_v2 = vshrl.u32 %v6032_v44, 16  ;;  %v2109_v32 = vshll.u32 %v6030_v47, 16  ;;  %v5288_v4 = vld [vmem:[#allocation7 + $0x108] sm:$0xff]   ;;  %v5290_v49 = vld [vmem:[#allocation7 + $0x110] sm:$0xff]  }
 0x1e6   :  { %v6056_v27 = vrot.slane %v941_v31, 5  ;;  %v6058_v28 = vrot.slane %v955_v23, 5  ;;  %v888_v17 = vsel %vm6052_vm8, %v6037_v51, %v6039_v1  ;;  %v6070_v57 = vld [vmem:[#allocation2 + $0x18] sm:$0xf]  ;;  %v963_v5 = vshll.u32 %v6032_v44, 16 }
 0x1e7   :  { %v5285_v12 = vld [vmem:[#allocation2 + $0x18] ss:$8 sps:$4 sm:$0xff]   ;;  %v962_v22 = vrot.slane %v960_v2, 4  ;;  %v918_v42 = vshrl.u32 %v6070_v57, 16  ;;  %v921_v0 = vshll.u32 %v6070_v57, 16 }
 0x1e8   :  { %v5287_v7 = vld [vmem:[#allocation2 + $0x28] ss:$8 sps:$4 sm:$0xff]   ;;  %v6076_v43 = vld [vmem:[#allocation2 + $0x20] sm:$0xf]  ;;  %v862_v6 = vld [vmem:[#allocation2 + $0x34] sm:$0x1] }
 0x1e9   :  { %v857_v37 = vld [vmem:[#allocation2 + $0xc] sm:$0x1]  ;;  %v6080_v21 = vld [vmem:[#allocation2 + $0x28] sm:$0xf]  ;;  %v920_v52 = vrot.slane %v918_v42, 4  ;;  %v923_v48 = vrot.slane %v921_v0, 5 }
 0x1ea   :  { %v5283_v36 = vld [vmem:[#allocation2 + $0x8] ss:$8 sps:$4 sm:$0xff]   ;;  %v899_v19 = vshll.u32 %v857_v37, 16  ;;  %v932_v58 = vshrl.u32 %v6076_v43, 16  ;;  %v935_v59 = vshll.u32 %v6076_v43, 16  ;;  %v946_v61 = vshrl.u32 %v6080_v21, 16 }
 0x1eb   :  { %v6060_v9 = vld [vmem:[#allocation2 + $0x8] sm:$0xf]  ;;  %v6066_v40 = vld [vmem:[#allocation2 + $0x10] sm:$0xf]  ;;  %4910 = vmatprep.mubr.bf16.mxu1 %v5283_v36  ;;  %v5291_v11 = vld [vmem:[#allocation2 + $0x38] ss:$8 sps:$4 sm:$0xff]   ;;  %v924_v14 = vor.u32 %v923_v48, %v920_v52 }
 0x1ec   :  { %v890_v45 = vshrl.u32 %v6060_v9, 16  ;;  %v893_v38 = vshll.u32 %v6060_v9, 16  ;;  %v904_v41 = vshrl.u32 %v6066_v40, 16  ;;  %v907_v30 = vshll.u32 %v6066_v40, 16  ;;  %4911 = vmatmul.mubr.bf16.vlgmr.msra.gmra.mrb[0].mxu1 %v5285_v12  ;;  %v5294_v33 = vld [vmem:[#allocation7 + $0x118] sm:$0xff]  }
 0x1ed   :  { %v901_v18 = vrot.slane %v899_v19, 5  ;;  %4927 = vmatpush3.bf16.msra.mxu1 %v5667_v3  ;;  %4914 = vmatprep.mubr.bf16.mxu1 %v5287_v7  ;;  %v949_v3 = vshll.u32 %v6080_v21, 16  ;;  %v934_v60 = vrot.slane %v932_v58, 4  ;;  %v937_v53 = vrot.slane %v935_v59, 5  ;;  %v6086_v54 = vld [vmem:[#allocation2 + $0x38] sm:$0xf] }
 0x1ee   :  { %v892_v20 = vrot.slane %v890_v45, 4  ;;  %v895_v15 = vrot.slane %v893_v38, 5  ;;  %v906_v50 = vrot.slane %v904_v41, 4  ;;  %v909_v16 = vrot.slane %v907_v30, 5  ;;  %4928 = vmatprep.subr.bf16.mxu1 %v5288_v4  ;;  %v5293_v55 = vld [vmem:[#allocation2 + $0x58] ss:$8 sps:$4 sm:$0xff]  }
 0x1ef   :  { %v965_v62 = vrot.slane %v963_v5, 5  ;;  %v948_v25 = vrot.slane %v946_v61, 4  ;;  %v951_v31 = vrot.slane %v949_v3, 5  ;;  %v925_v23 = vrot.slane %v924_v14, 4  ;;  %v863_v36 = vld [vmem:[#allocation2 + $0x3c] sm:$0x1] }
 0x1f0   :  { %v896_v39 = vor.u32 %v895_v15, %v892_v20  ;;  %v910_v56 = vor.u32 %v909_v16, %v906_v50  ;;  %v938_v46 = vor.u32 %v937_v53, %v934_v60  ;;  %v969_v1 = vshll.u32 %v862_v6, 16  ;;  %v6094_v7 = vld [vmem:[#allocation2 + $0x58] sm:$0xf]  ;;  %v865_v41 = vld [vmem:[#allocation2 + $0x5c] sm:$0x1]  ;;  %v5296_v5 = vld [vmem:[#allocation7 + $0x120] sm:$0xff]  }
 0x1f1   :  { %4929 = vmatpush3.bf16.msra.mxu1 %v5288_v4  ;;  %v966_v51 = vor.u32 %v965_v62, %v962_v22  ;;  %v952_v37 = vor.u32 %v951_v31, %v948_v25  ;;  %v974_v4 = vshrl.u32 %v6086_v54, 16  ;;  %v930_v22 = vsel %vm6052_vm8, %v925_v23, %v6047_v8  ;;  %v6118_v48 = vld [vmem:[#allocation2 + $0x68] sm:$0xf]  ;;  %v866_v58 = vld [vmem:[#allocation2 + $0x64] sm:$0x1]  ;;  %v5298_v61 = vld [vmem:[#allocation7 + $0x10] sm:$0xff]  }
 0x1f2   :  { %v897_v63 = vrot.slane %v896_v39, 4  ;;  %v911_v29 = vrot.slane %v910_v56, 4  ;;  %4930 = vmatprep.subr.bf16.mxu1 %v5290_v49  ;;  %v939_v45 = vrot.slane %v938_v46, 4  ;;  %v6101_v42 = vrot.slane %v969_v1, 5  ;;  %v5297_v39 = vld [vmem:[#allocation2 + $0x68] ss:$8 sps:$4 sm:$0xff]  }
 0x1f3   :  { %v6099_v38 = vrot.slane %v966_v51, 4  ;;  %v976_v0 = vrot.slane %v974_v4, 4  ;;  %v977_v8 = vshll.u32 %v6086_v54, 16  ;;  %v983_v20 = vshll.u32 %v863_v36, 16  ;;  %v867_v6 = vld [vmem:[#allocation2 + $0x6c] sm:$0x1] }
 0x1f4   :  { %v902_v2 = vsel %vm6052_vm8, %v897_v63, %v901_v18  ;;  %v916_v12 = vsel %vm6052_vm8, %v911_v29, %v6045_v35  ;;  %4915 = vmatmul.mubr.bf16.gmra.mrb[4].mxu1 %v5291_v11  ;;  %v953_v35 = vrot.slane %v952_v37, 4  ;;  %v5295_v18 = vld [vmem:[#allocation7 + $0x8] sm:$0xff]   ;;  %v1002_v15 = vshrl.u32 %v6094_v7, 16  ;;  %v5299_v51 = vld [vmem:[#allocation2 + $0x78] ss:$8 sps:$4 sm:$0xff]  }
 0x1f5   :  { %v4372_v19 = vcombine.low %v888_v17, %v902_v2  ;;  %4931 = vmatpush3.bf16.msra.mxu1 %v5290_v49  ;;  %v4373_v30 = vcombine.low %v916_v12, %v930_v22  ;;  %4918 = vmatprep.mubr.bf16.mxu1 %v5293_v55  ;;  %v944_v17 = vsel %vm6052_vm8, %v939_v45, %v6056_v27  ;;  %v6108_v49 = vld [vmem:[#allocation2 + $0x60] sm:$0xf]  ;;  %v1005_v27 = vshll.u32 %v6094_v7, 16  ;;  %v5300_v60 = vld [vmem:[#allocation7 + $0x128] sm:$0xff]   ;;  %v5301_v45 = vld [vmem:[#allocation7 + $0x18] sm:$0xff]  }
 0x1f6   :  { %4932 = vmatprep.subr.bf16.mxu1 %v5294_v33  ;;  %v958_v50 = vsel %vm6052_vm8, %v953_v35, %v6058_v28  ;;  %v1000_v16 = vsel %vm6052_vm8, %v6041_v10, %v6043_v34  ;;  %v1011_v52 = vshll.u32 %v865_v41, 16  ;;  %v972_v28 = vsel %vm6052_vm8, %v6099_v38, %v6101_v42  ;;  %v2053_v29 = vld [vmem:[#allocation2 + $0x8] sm:$0xf]  ;;  %v6129_v23 = vld [vmem:[#allocation2 + $0xc] sm:$0x1] }
 0x1f7   :  { %4814 = vmatprep.mubr.bf16.mxu0 %v4372_v19  ;;  %v4374_v59 = vcombine.low %v944_v17, %v958_v50  ;;  %v979_v56 = vrot.slane %v977_v8, 5  ;;  %v1004_v3 = vrot.slane %v1002_v15, 4  ;;  %v985_v10 = vrot.slane %v983_v20, 5  ;;  %v2055_v41 = vld [vmem:[#allocation2 + $0x10] sm:$0xf] }
 0x1f8   :  { %4815 = vmatmul.mubr.bf16.vlgmr.msra.gmra.mrb[16].mxu0 %v4373_v30  ;;  %v1007_v34 = vrot.slane %v1005_v27, 5  ;;  %v1016_v11 = vshrl.u32 %v6108_v49, 16  ;;  %v1019_v14 = vshll.u32 %v6108_v49, 16  ;;  %v1025_v53 = vshll.u32 %v866_v58, 16  ;;  %v6136_v8 = vld [vmem:[#allocation2 + $0x70] sm:$0xf] }
 0x1f9   :  { %4831 = vmatpush3.bf16.msra.mxu0 %v5718_v26  ;;  %4933 = vmatpush3.bf16.msra.mxu1 %v5294_v33  ;;  %v980_v26 = vor.u32 %v979_v56, %v976_v0  ;;  %v1030_v62 = vshrl.u32 %v6118_v48, 16  ;;  %v1033_v63 = vshll.u32 %v6118_v48, 16  ;;  %v1013_v33 = vrot.slane %v1011_v52, 5  ;;  %v5302_v0 = vld [vmem:[#allocation7 + $0x130] sm:$0xff]   ;;  %v5304_v27 = vld [vmem:[#allocation7 + $0x20] sm:$0xff]  }
 0x1fa   :  { %4832 = vmatprep.subr.bf16.mxu0 %v5295_v18  ;;  %4818 = vmatprep.mubr.bf16.mxu0 %v4374_v59  ;;  %v1008_v55 = vor.u32 %v1007_v34, %v1004_v3  ;;  %v1018_v25 = vrot.slane %v1016_v11, 4  ;;  %v1021_v31 = vrot.slane %v1019_v14, 5  ;;  %v1039_v12 = vshll.u32 %v867_v6, 16  ;;  %v6138_v58 = vld [vmem:[#allocation2 + $0x74] sm:$0x1] }
 0x1fb   :  { %4934 = vmatprep.subr.bf16.mxu1 %v5296_v5  ;;  %v981_v46 = vrot.slane %v980_v26, 4  ;;  %v1032_v1 = vrot.slane %v1030_v62, 4  ;;  %v1035_v2 = vrot.slane %v1033_v63, 5  ;;  %v1027_v4 = vrot.slane %v1025_v53, 5  ;;  %v6142_v3 = vld [vmem:[#allocation2 + $0x78] sm:$0xf] }
 0x1fc   :  { %4919 = vmatmul.mubr.bf16.gmra.mrb[8].mxu1 %v5297_v39  ;;  %v1009_v37 = vrot.slane %v1008_v55, 4  ;;  %v1022_v36 = vor.u32 %v1021_v31, %v1018_v25  ;;  %v2086_v19 = vshrl.u32 %v2053_v29, 16  ;;  %v2089_v30 = vshll.u32 %v2053_v29, 16  ;;  %v6146_v6 = vld [vmem:[#allocation2 + $0x7c] sm:$0x1] }
 0x1fd   :  { %4833 = vmatpush3.bf16.msra.mxu0 %v5295_v18  ;;  %4935 = vmatpush3.bf16.msra.mxu1 %v5296_v5  ;;  %v986_v22 = vsel %vm6052_vm8, %v981_v46, %v985_v10  ;;  %v1036_v38 = vor.u32 %v1035_v2, %v1032_v1  ;;  %v2095_v35 = vshll.u32 %v6129_v23, 16  ;;  %v1041_v50 = vrot.slane %v1039_v12, 5  ;;  %v5305_v10 = vld [vmem:[#allocation7 + $0x138] sm:$0xff]  }
 0x1fe   :  { %4834 = vmatprep.subr.bf16.mxu0 %v5298_v61  ;;  %4922 = vmatprep.mubr.bf16.mxu1 %v5299_v51  ;;  %v4375_v18 = vcombine.low %v972_v28, %v986_v22  ;;  %v1014_v42 = vsel %vm6052_vm8, %v1009_v37, %v1013_v33  ;;  %v1023_v17 = vrot.slane %v1022_v36, 4  ;;  %v2088_v5 = vrot.slane %v2086_v19, 4  ;;  %v2057_v63 = vld [vmem:[#allocation2 + $0x18] sm:$0xf]  ;;  %v6155_v2 = vld [vmem:[#allocation2 + $0x1c] sm:$0x1] }
 0x1ff   :  { %4936 = vmatprep.subr.bf16.mxu1 %v5300_v60  ;;  %v4376_v20 = vcombine.low %v1000_v16, %v1014_v42  ;;  %v1037_v15 = vrot.slane %v1036_v38, 4  ;;  %v2091_v52 = vrot.slane %v2089_v30, 5  ;;  %v2097_v39 = vrot.slane %v2095_v35, 5  ;;  %v5303_v16 = vld [vmem:[#allocation2 + $0x88] ss:$8 sps:$4 sm:$0xff]   ;;  %v6158_v19 = vld [vmem:[#allocation7 + $0x140] sm:$0xff]  }
 0x200   :  { %4819 = vmatmul.mubr.bf16.gmra.mrb[20].mxu0 %v4375_v18  ;;  %v1028_v59 = vsel %vm6052_vm8, %v1023_v17, %v1027_v4  ;;  %v2100_v28 = vshrl.u32 %v2055_v41, 16  ;;  %v2103_v56 = vshll.u32 %v2055_v41, 16  ;;  %v1044_v11 = vshrl.u32 %v6136_v8, 16  ;;  %v5306_v4 = vld [vmem:[#allocation7 + $0x28] sm:$0xff]   ;;  %v5308_v35 = vld [vmem:[#allocation7 + $0x30] sm:$0xff]  }
 0x201   :  { %4835 = vmatpush3.bf16.msra.mxu0 %v5298_v61  ;;  %4937 = vmatpush3.bf16.msra.mxu1 %v5300_v60  ;;  %v1042_v61 = vsel %vm6052_vm8, %v1037_v15, %v1041_v50  ;;  %v2092_v34 = vor.u32 %v2091_v52, %v2088_v5  ;;  %v1047_v14 = vshll.u32 %v6136_v8, 16  ;;  %v2111_v53 = vrot.slane %v2109_v32, 5  ;;  %v2059_v32 = vld [vmem:[#allocation2 + $0x20] sm:$0xf]  ;;  %v6162_v42 = vld [vmem:[#allocation2 + $0x24] sm:$0x1] }
 0x202   :  { %4822 = vmatprep.mubr.bf16.mxu0 %v4376_v20  ;;  %4836 = vmatprep.subr.bf16.mxu0 %v5301_v45  ;;  %v2102_v26 = vrot.slane %v2100_v28, 4  ;;  %v2105_v60 = vrot.slane %v2103_v56, 5  ;;  %v1053_v62 = vshll.u32 %v6138_v58, 16  ;;  %v1046_v55 = vrot.slane %v1044_v11, 4 }
 0x203   :  { %4938 = vmatprep.subr.bf16.mxu1 %v5302_v0  ;;  %v2093_v29 = vrot.slane %v2092_v34, 4  ;;  %v1049_v33 = vrot.slane %v1047_v14, 5  ;;  %v1058_v25 = vshrl.u32 %v6142_v3, 16  ;;  %v4377_v31 = vcombine.low %v1028_v59, %v1042_v61  ;;  %v6167_v59 = vld [vmem:[#allocation2 + $0x80] sm:$0xf] }
 0x204   :  { %4923 = vmatmul.mubr.bf16.gmra.mrb[12].mxu1 %v5303_v16  ;;  %v2106_v46 = vor.u32 %v2105_v60, %v2102_v26  ;;  %v1055_v51 = vrot.slane %v1053_v62, 5  ;;  %v1061_v1 = vshll.u32 %v6142_v3, 16  ;;  %v1067_v36 = vshll.u32 %v6146_v6, 16  ;;  %v6174_v61 = vld [vmem:[#allocation2 + $0x84] sm:$0x1] }
 0x205   :  { %4837 = vmatpush3.bf16.msra.mxu0 %v5301_v45  ;;  %4939 = vmatpush3.bf16.msra.mxu1 %v5302_v0  ;;  %v1050_v12 = vor.u32 %v1049_v33, %v1046_v55  ;;  %v1060_v37 = vrot.slane %v1058_v25, 4  ;;  %v2114_v22 = vshrl.u32 %v2057_v63, 16  ;;  %v2098_v45 = vsel %vm6052_vm8, %v2093_v29, %v2097_v39  ;;  %v6169_v39 = vld [vmem:[#allocation2 + $0x88] sm:$0xf]  ;;  %v6182_v25 = vld [vmem:[#allocation2 + $0x8c] sm:$0x1] }
 0x206   :  { %4838 = vmatprep.subr.bf16.mxu0 %v5304_v27  ;;  %4940 = vmatprep.subr.bf16.mxu1 %v5305_v10  ;;  %v2107_v38 = vrot.slane %v2106_v46, 4  ;;  %v1063_v41 = vrot.slane %v1061_v1, 5  ;;  %v2117_v30 = vshll.u32 %v2057_v63, 16  ;;  %v2123_v17 = vshll.u32 %v6155_v2, 16  ;;  %v5311_v63 = vld [vmem:[#allocation7 + $0x38] sm:$0xff]  }
 0x207   :  { %v1051_v18 = vrot.slane %v1050_v12, 4  ;;  %v2116_v0 = vrot.slane %v2114_v22, 4  ;;  %v2128_v5 = vshrl.u32 %v2059_v32, 16  ;;  %v2131_v52 = vshll.u32 %v2059_v32, 16  ;;  %v2061_v46 = vld [vmem:[#allocation2 + $0x28] sm:$0xf] }
 0x208   :  { %4823 = vmatmul.mubr.bf16.gmra.mrb[24].mxu0 %v4377_v31  ;;  %v2112_v20 = vsel %vm6052_vm8, %v2107_v38, %v2111_v53  ;;  %v1064_v15 = vor.u32 %v1063_v41, %v1060_v37  ;;  %v2119_v50 = vrot.slane %v2117_v30, 5  ;;  %v1069_v56 = vrot.slane %v1067_v36, 5  ;;  %v2063_v37 = vld [vmem:[#allocation2 + $0x30] sm:$0xf]  ;;  %v6188_v38 = vld [vmem:[#allocation2 + $0x2c] sm:$0x1] }
 0x209   :  { %4839 = vmatpush3.bf16.msra.mxu0 %v5304_v27  ;;  %4941 = vmatpush3.bf16.msra.mxu1 %v5305_v10  ;;  %v4452_v28 = vcombine.low %v2098_v45, %v2112_v20  ;;  %v1056_v27 = vsel %vm6052_vm8, %v1051_v18, %v1055_v51  ;;  %v2130_v16 = vrot.slane %v2128_v5, 4  ;;  %v2133_v10 = vrot.slane %v2131_v52, 5  ;;  %v6195_v52 = vld [vmem:[#allocation7 + $0x80] sm:$0xff]  }
 0x20a   :  { %4840 = vmatprep.subr.bf16.mxu0 %v5306_v4  ;;  %4958 = vmatprep.subr.bf16.mxu1 %v6158_v19  ;;  %v1065_v34 = vrot.slane %v1064_v15, 4  ;;  %v2120_v11 = vor.u32 %v2119_v50, %v2116_v0  ;;  %v2137_v14 = vshll.u32 %v6162_v42, 16  ;;  %v2125_v26 = vrot.slane %v2123_v17, 5  ;;  %v6193_v15 = vld [vmem:[#allocation2 + $0x34] sm:$0x1] }
 0x20b   :  { %4942 = vmatprep.mubr.bf16.mxu1 %v4452_v28  ;;  %v1072_v60 = vshrl.u32 %v6167_v59, 16  ;;  %v1075_v53 = vshll.u32 %v6167_v59, 16  ;;  %v1086_v62 = vshrl.u32 %v6169_v39, 16  ;;  %v2134_v33 = vor.u32 %v2133_v10, %v2130_v16 }
 0x20c   :  { %v1070_v29 = vsel %vm6052_vm8, %v1065_v34, %v1069_v56  ;;  %v2121_v55 = vrot.slane %v2120_v11, 4  ;;  %v1081_v31 = vshll.u32 %v6174_v61, 16  ;;  %v2139_v1 = vrot.slane %v2137_v14, 5  ;;  %v5310_v34 = vld [vmem:[#allocation7 + $0x148] sm:$0xff]   ;;  %v2065_v11 = vld [vmem:[#allocation2 + $0x38] sm:$0xf] }
 0x20d   :  { %4841 = vmatpush3.bf16.msra.mxu0 %v5306_v4  ;;  %v4378_v51 = vcombine.low %v1056_v27, %v1070_v29  ;;  %v1074_v32 = vrot.slane %v1072_v60, 4  ;;  %v1077_v12 = vrot.slane %v1075_v53, 5  ;;  %v2135_v4 = vrot.slane %v2134_v33, 4  ;;  %v2067_v60 = vld [vmem:[#allocation2 + $0x40] sm:$0xf] }
 0x20e   :  { %4842 = vmatprep.subr.bf16.mxu0 %v5308_v35  ;;  %v2126_v36 = vsel %vm6052_vm8, %v2121_v55, %v2125_v26  ;;  %v1088_v22 = vrot.slane %v1086_v62, 4  ;;  %v1089_v45 = vshll.u32 %v6169_v39, 16  ;;  %v1095_v30 = vshll.u32 %v6182_v25, 16  ;;  %v6198_v26 = vld [vmem:[#allocation2 + $0x3c] sm:$0x1] }
 0x20f   :  { %4826 = vmatprep.mubr.bf16.mxu0 %v4378_v51  ;;  %v1078_v41 = vor.u32 %v1077_v12, %v1074_v32  ;;  %v2142_v18 = vshrl.u32 %v2061_v46, 16  ;;  %v2145_v0 = vshll.u32 %v2061_v46, 16  ;;  %v2140_v17 = vsel %vm6052_vm8, %v2135_v4, %v2139_v1  ;;  %v5312_v51 = vld [vmem:[#allocation7 + $0x150] sm:$0xff]   ;;  %v6207_v4 = vld [vmem:[#allocation2 + $0x44] sm:$0x1] }
 0x210   :  { %v1083_v5 = vrot.slane %v1081_v31, 5  ;;  %v1091_v20 = vrot.slane %v1089_v45, 5  ;;  %v2156_v50 = vshrl.u32 %v2063_v37, 16  ;;  %v4453_v28 = vcombine.low %v2126_v36, %v2140_v17 }
 0x211   :  { %4843 = vmatpush3.bf16.msra.mxu0 %v5308_v35  ;;  %v1079_v27 = vrot.slane %v1078_v41, 4  ;;  %v2144_v56 = vrot.slane %v2142_v18, 4  ;;  %v2151_v16 = vshll.u32 %v6188_v38, 16  ;;  %v1097_v35 = vrot.slane %v1095_v30, 5  ;;  %v2069_v30 = vld [vmem:[#allocation2 + $0x58] sm:$0xf] }
 0x212   :  { %4844 = vmatprep.subr.bf16.mxu0 %v5311_v63  ;;  %v1092_v10 = vor.u32 %v1091_v20, %v1088_v22  ;;  %v2147_v14 = vrot.slane %v2145_v0, 5  ;;  %v4391_v53 = vcombine.low %v6032_v44, %v6086_v54  ;;  %4943 = vmatmul.mubr.bf16.vlgmr.msra.gmra.mrb[0].mxu1 %v4453_v28  ;;  %v2158_v29 = vrot.slane %v2156_v50, 4 }
 0x213   :  { %v1084_v62 = vsel %vm6052_vm8, %v1079_v27, %v1083_v5  ;;  %v2159_v55 = vshll.u32 %v2063_v37, 16  ;;  %v2165_v33 = vshll.u32 %v6193_v15, 16  ;;  %4959 = vmatpush3.bf16.msra.mxu1 %v6158_v19  ;;  %v2170_v1 = vshrl.u32 %v2065_v11, 16  ;;  %v5379_v5 = vld [vmem:[#allocation2] sm:$0xf] }
 0x214   :  { %v1093_v31 = vrot.slane %v1092_v10, 4  ;;  %v2148_v46 = vor.u32 %v2147_v14, %v2144_v56  ;;  %v2173_v32 = vshll.u32 %v2065_v11, 16  ;;  %v2153_v12 = vrot.slane %v2151_v16, 5  ;;  %4960 = vmatprep.subr.bf16.mxu1 %v5310_v34  ;;  %v2071_v16 = vld [vmem:[#allocation2 + $0x60] sm:$0xf] }
 0x215   :  { %4845 = vmatpush3.bf16.msra.mxu0 %v5311_v63  ;;  %v2161_v36 = vrot.slane %v2159_v55, 5  ;;  %v2179_v22 = vshll.u32 %v6198_v26, 16  ;;  %v2184_v37 = vshrl.u32 %v2067_v60, 16  ;;  %v2172_v19 = vrot.slane %v2170_v1, 4 }
 0x216   :  { %4862 = vmatprep.subr.bf16.mxu0 %v6195_v52  ;;  %v1098_v63 = vsel %vm6052_vm8, %v1093_v31, %v1097_v35  ;;  %v2149_v45 = vrot.slane %v2148_v46, 4  ;;  %v2175_v41 = vrot.slane %v2173_v32, 5  ;;  %v2167_v17 = vrot.slane %v2165_v33, 5  ;;  %v6216_v35 = vld [vmem:[#allocation2 + $0x5c] sm:$0x1] }
 0x217   :  { %v4379_v18 = vcombine.low %v1084_v62, %v1098_v63  ;;  %v2162_v0 = vor.u32 %v2161_v36, %v2158_v29  ;;  %v4388_v20 = vcombine.low %v5379_v5, %v6060_v9  ;;  %4961 = vmatpush3.bf16.msra.mxu1 %v5310_v34  ;;  %v2186_v28 = vrot.slane %v2184_v37, 4  ;;  %v5316_v29 = vld [vmem:[#allocation7 + $0x158] sm:$0xff]   ;;  %v6220_v33 = vld [vmem:[#allocation2 + $0x64] sm:$0x1] }
 0x218   :  { %v2176_v50 = vor.u32 %v2175_v41, %v2172_v19  ;;  %v2187_v27 = vshll.u32 %v2067_v60, 16  ;;  %v2193_v56 = vshll.u32 %v6207_v4, 16  ;;  %v2154_v11 = vsel %vm6052_vm8, %v2149_v45, %v2153_v12  ;;  %4962 = vmatprep.subr.bf16.mxu1 %v5312_v51  ;;  %v2073_v12 = vld [vmem:[#allocation2 + $0x68] sm:$0xf] }
 0x219   :  { %4827 = vmatmul.mubr.bf16.gmra.mrb[28].mxu0 %v4379_v18  ;;  %v2163_v10 = vrot.slane %v2162_v0, 4  ;;  %v2198_v14 = vshrl.u32 %v2069_v30, 16  ;;  %v2201_v62 = vshll.u32 %v2069_v30, 16  ;;  %v2181_v34 = vrot.slane %v2179_v22, 5  ;;  %v6225_v22 = vld [vmem:[#allocation2 + $0x6c] sm:$0x1] }
 0x21a   :  { %4846 = vmatprep.mubr.bf16.mxu0 %v4388_v20  ;;  %v2177_v9 = vrot.slane %v2176_v50, 4  ;;  %v2189_v55 = vrot.slane %v2187_v27, 5  ;;  %v4389_v60 = vcombine.low %v6066_v40, %v6070_v57  ;;  %v2212_v32 = vshrl.u32 %v2071_v16, 16  ;;  %v5318_v30 = vld [vmem:[#allocation7 + $0x160] sm:$0xff]   ;;  %v2075_v18 = vld [vmem:[#allocation2 + $0x70] sm:$0xf] }
 0x21b   :  { %v2168_v31 = vsel %vm6052_vm8, %v2163_v10, %v2167_v17  ;;  %v2200_v46 = vrot.slane %v2198_v14, 4  ;;  %v2203_v1 = vrot.slane %v2201_v62, 5  ;;  %v2195_v63 = vrot.slane %v2193_v56, 5  ;;  %4963 = vmatpush3.bf16.msra.mxu1 %v5312_v51  ;;  %v5317_v27 = vld [vmem:[#allocation7 + $0x88] sm:$0xff]   ;;  %v6232_v56 = vld [vmem:[#allocation2 + $0x74] sm:$0x1] }
 0x21c   :  { %v4454_v36 = vcombine.low %v2154_v11, %v2168_v31  ;;  %v2190_v37 = vor.u32 %v2189_v55, %v2186_v28  ;;  %v2207_v45 = vshll.u32 %v6216_v35, 16  ;;  %v2214_v41 = vrot.slane %v2212_v32, 4  ;;  %4964 = vmatprep.subr.bf16.mxu1 %v5316_v29 }
 0x21d   :  { %v2204_v19 = vor.u32 %v2203_v1, %v2200_v46  ;;  %v2215_v40 = vshll.u32 %v2071_v16, 16  ;;  %v2221_v57 = vshll.u32 %v6220_v33, 16  ;;  %v2182_v0 = vsel %vm6052_vm8, %v2177_v9, %v2181_v34  ;;  %v2077_v9 = vld [vmem:[#allocation2 + $0x78] sm:$0xf] }
 0x21e   :  { %4946 = vmatprep.mubr.bf16.mxu1 %v4454_v36  ;;  %v2191_v17 = vrot.slane %v2190_v37, 4  ;;  %v2226_v5 = vshrl.u32 %v2073_v12, 16  ;;  %v2229_v20 = vshll.u32 %v2073_v12, 16  ;;  %v4390_v28 = vcombine.low %v6076_v43, %v6080_v21  ;;  %v2079_v43 = vld [vmem:[#allocation2 + $0x80] sm:$0xf]  ;;  %v5322_v21 = vld [vmem:[#allocation7 + $0x168] sm:$0xff]  }
 0x21f   :  { %v2205_v51 = vrot.slane %v2204_v19, 4  ;;  %v2217_v50 = vrot.slane %v2215_v40, 5  ;;  %v2235_v16 = vshll.u32 %v6225_v22, 16  ;;  %4965 = vmatpush3.bf16.msra.mxu1 %v5316_v29  ;;  %v2240_v62 = vshrl.u32 %v2075_v18, 16  ;;  %v6239_v36 = vld [vmem:[#allocation2 + $0x7c] sm:$0x1] }
 0x220   :  { %v2196_v11 = vsel %vm6052_vm8, %v2191_v17, %v2195_v63  ;;  %v2228_v10 = vrot.slane %v2226_v5, 4  ;;  %v2231_v14 = vrot.slane %v2229_v20, 5  ;;  %v2209_v55 = vrot.slane %v2207_v45, 5  ;;  %4966 = vmatprep.subr.bf16.mxu1 %v5318_v30  ;;  %v5320_v63 = vld [vmem:[#allocation7 + $0x90] sm:$0xff]  }
 0x221   :  { %v4455_v34 = vcombine.low %v2182_v0, %v2196_v11  ;;  %4847 = vmatmul.mubr.bf16.vlgmr.msra.gmra.mrb[16].mxu0 %v4389_v60  ;;  %v2218_v31 = vor.u32 %v2217_v50, %v2214_v41  ;;  %v2223_v46 = vrot.slane %v2221_v57, 5  ;;  %v2242_v32 = vrot.slane %v2240_v62, 4  ;;  %v2081_v50 = vld [vmem:[#allocation2 + $0x88] sm:$0xf] }
 0x222   :  { %4850 = vmatprep.mubr.bf16.mxu0 %v4390_v28  ;;  %4863 = vmatpush3.bf16.msra.mxu0 %v6195_v52  ;;  %v2232_v1 = vor.u32 %v2231_v14, %v2228_v10  ;;  %v2243_v29 = vshll.u32 %v2075_v18, 16  ;;  %v2249_v12 = vshll.u32 %v6232_v56, 16  ;;  %v2210_v60 = vsel %vm6052_vm8, %v2205_v51, %v2209_v55  ;;  %v6243_v52 = vld [vmem:[#allocation2 + $0x84] sm:$0x1]  ;;  %v5324_v51 = vld [vmem:[#allocation7 + $0x170] sm:$0xff]  }
 0x223   :  { %4947 = vmatmul.mubr.bf16.gmra.mrb[4].mxu1 %v4455_v34  ;;  %v2219_v37 = vrot.slane %v2218_v31, 4  ;;  %4864 = vmatprep.subr.bf16.mxu0 %v5317_v27  ;;  %v2254_v45 = vshrl.u32 %v2077_v9, 16  ;;  %v2257_v19 = vshll.u32 %v2077_v9, 16  ;;  %v2237_v40 = vrot.slane %v2235_v16, 5  ;;  %v6250_v10 = vld [vmem:[#allocation2 + $0x8c] sm:$0x1] }
 0x224   :  { %v2233_v41 = vrot.slane %v2232_v1, 4  ;;  %v2245_v57 = vrot.slane %v2243_v29, 5  ;;  %4967 = vmatpush3.bf16.msra.mxu1 %v5318_v30  ;;  %v2268_v18 = vshrl.u32 %v2079_v43, 16  ;;  %v2263_v20 = vshll.u32 %v6239_v36, 16  ;;  %v2083_v14 = vld [vmem:[#allocation2 + $0x90] sm:$0xf] }
 0x225   :  { %v2224_v0 = vsel %vm6052_vm8, %v2219_v37, %v2223_v46  ;;  %v2256_v17 = vrot.slane %v2254_v45, 4  ;;  %v2259_v5 = vrot.slane %v2257_v19, 5  ;;  %4968 = vmatprep.subr.bf16.mxu1 %v5322_v21  ;;  %v2251_v30 = vrot.slane %v2249_v12, 5  ;;  %v5323_v31 = vld [vmem:[#allocation7 + $0x98] sm:$0xff]   ;;  %v6253_v46 = vld [vmem:[#allocation2 + $0x94] sm:$0x1] }
 0x226   :  { %v4456_v28 = vcombine.low %v2210_v60, %v2224_v0  ;;  %4865 = vmatpush3.bf16.msra.mxu0 %v5317_v27  ;;  %v2238_v16 = vsel %vm6052_vm8, %v2233_v41, %v2237_v40  ;;  %v2246_v11 = vor.u32 %v2245_v57, %v2242_v32  ;;  %v2270_v9 = vrot.slane %v2268_v18, 4  ;;  %v5380_v27 = vld [vmem:[#allocation2 + $0x50] sm:$0xf]  ;;  %v5328_v60 = vld [vmem:[#allocation7 + $0x178] sm:$0xff]   ;;  %v2519_v41 = vld [vmem:[#allocation2 + $0x8] sm:$0xe] }
 0x227   :  { %4866 = vmatprep.subr.bf16.mxu0 %v5320_v63  ;;  %v2260_v62 = vor.u32 %v2259_v5, %v2256_v17  ;;  %v2271_v34 = vshll.u32 %v2079_v43, 16  ;;  %v2277_v55 = vshll.u32 %v6243_v52, 16  ;;  %v4392_v29 = vcombine.low %v5380_v27, %v6094_v7  ;;  %v2520_v18 = vld [vmem:[#allocation2 + $0x10] sm:$0xe]  ;;  %v5326_v17 = vld [vmem:[#allocation7 + $0xa0] sm:$0xff]  }
 0x228   :  { %4950 = vmatprep.mubr.bf16.mxu1 %v4456_v28  ;;  %v2247_v1 = vrot.slane %v2246_v11, 4  ;;  %4969 = vmatpush3.bf16.msra.mxu1 %v5322_v21  ;;  %v2282_v32 = vshrl.u32 %v2081_v50, 16  ;;  %v2285_v12 = vshll.u32 %v2081_v50, 16  ;;  %v2265_v43 = vrot.slane %v2263_v20, 5  ;;  %v6264_v5 = vld [vmem:[#allocation2 + $0x18] sm:$0xe] }
 0x229   :  { %4851 = vmatmul.mubr.bf16.gmra.mrb[20].mxu0 %v4391_v53  ;;  %v2261_v37 = vrot.slane %v2260_v62, 4  ;;  %v2273_v45 = vrot.slane %v2271_v34, 5  ;;  %4970 = vmatprep.subr.bf16.mxu1 %v5324_v51  ;;  %v2296_v19 = vshrl.u32 %v2083_v14, 16  ;;  %v2291_v57 = vshll.u32 %v6250_v10, 16 }
 0x22a   :  { %v2252_v40 = vsel %vm6052_vm8, %v2247_v1, %v2251_v30  ;;  %4854 = vmatprep.mubr.bf16.mxu0 %v4392_v29  ;;  %4867 = vmatpush3.bf16.msra.mxu0 %v5320_v63  ;;  %v2284_v7 = vrot.slane %v2282_v32, 4  ;;  %v2287_v21 = vrot.slane %v2285_v12, 5  ;;  %v2279_v53 = vrot.slane %v2277_v55, 5  ;;  %v2522_v55 = vld [vmem:[#allocation2 + $0x20] sm:$0xe] }
 0x22b   :  { %v4457_v0 = vcombine.low %v2238_v16, %v2252_v40  ;;  %v2266_v44 = vsel %vm6052_vm8, %v2261_v37, %v2265_v43  ;;  %v2274_v54 = vor.u32 %v2273_v45, %v2270_v9  ;;  %4868 = vmatprep.subr.bf16.mxu0 %v5323_v31  ;;  %v2298_v50 = vrot.slane %v2296_v19, 4  ;;  %v6273_v16 = vld [vmem:[#allocation7 + $0x180] sm:$0xff]   ;;  %v2523_v29 = vld [vmem:[#allocation2 + $0x28] sm:$0xe]  ;;  %v2524_v40 = vld [vmem:[#allocation2 + $0x30] sm:$0xe] }
 0x22c   :  { %v2288_v20 = vor.u32 %v2287_v21, %v2284_v7  ;;  %v2299_v28 = vshll.u32 %v2083_v14, 16  ;;  %v2305_v63 = vshll.u32 %v6253_v46, 16  ;;  %4971 = vmatpush3.bf16.msra.mxu1 %v5324_v51  ;;  %v4468_v62 = vrot.slane %v2519_v41, 9  ;;  %v1486_v43 = vld [vmem:[#allocation2] sm:$0xe] }
 0x22d   :  { %4951 = vmatmul.mubr.bf16.gmra.mrb[8].mxu1 %v4457_v0  ;;  %v2275_v30 = vrot.slane %v2274_v54, 4  ;;  %v2569_v9 = vrot.slane %v6129_v23, 5  ;;  %v4469_v34 = vrot.slane %v2520_v18, 9  ;;  %4972 = vmatprep.subr.bf16.mxu1 %v5328_v60  ;;  %v2293_v1 = vrot.slane %v2291_v57, 5  ;;  %v1487_v57 = vld [vmem:[#allocation2 + $0x8] sm:$0xe] }
 0x22e   :  { %4869 = vmatpush3.bf16.msra.mxu0 %v5323_v31  ;;  %v2289_v14 = vrot.slane %v2288_v20, 4  ;;  %v2301_v51 = vrot.slane %v2299_v28, 5  ;;  %v2573_v27 = vrot.slane %v6030_v47, 5  ;;  %v2307_v12 = vrot.slane %v2305_v63, 5  ;;  %v5329_v47 = vld [vmem:[#allocation7 + $0xa8] sm:$0xff]   ;;  %v5332_v20 = vld [vmem:[#allocation7 + $0xb0] sm:$0xff]  }
 0x22f   :  { %v2280_v32 = vsel %vm6052_vm8, %v2275_v30, %v2279_v53  ;;  %v4393_v37 = vcombine.low %v6108_v49, %v6118_v48  ;;  %4870 = vmatprep.subr.bf16.mxu0 %v5326_v17  ;;  %v2570_v23 = vsel %vm6269_vm11, %v4468_v62, %v2569_v9  ;;  %v4394_v19 = vcombine.low %v6136_v8, %v6142_v3  ;;  %v6294_v0 = vld [vmem:[#allocation2 + $0x38] sm:$0xe]  ;;  %v1488_v53 = vld [vmem:[#allocation2 + $0x10] sm:$0xe] }
 0x230   :  { %v4458_v45 = vcombine.low %v2266_v44, %v2280_v32  ;;  %v2302_v31 = vor.u32 %v2301_v51, %v2298_v50  ;;  %4973 = vmatpush3.bf16.msra.mxu1 %v5328_v60  ;;  %v4470_v41 = vrot.slane %v6264_v5, 9  ;;  %v2294_v7 = vsel %vm6052_vm8, %v2289_v14, %v2293_v1  ;;  %v1489_v28 = vld [vmem:[#allocation2 + $0x18] sm:$0xe]  ;;  %v2526_v14 = vld [vmem:[#allocation2 + $0x40] sm:$0xe] }
 0x231   :  { %4855 = vmatmul.mubr.bf16.gmra.mrb[24].mxu0 %v4393_v37  ;;  %v2574_v49 = vsel %vm6269_vm11, %v4469_v34, %v2573_v27  ;;  %4990 = vmatprep.subr.bf16.mxu1 %v6273_v16  ;;  %v2577_v48 = vrot.slane %v6155_v2, 5  ;;  %v4471_v21 = vrot.slane %v2522_v55, 9  ;;  %v2581_v3 = vrot.slane %v6162_v42, 5  ;;  %v5382_v34 = vld [vmem:[#allocation2 + $0xc] sm:$0x1] }
 0x232   :  { %4954 = vmatprep.mubr.bf16.mxu1 %v4458_v45  ;;  %v2303_v8 = vrot.slane %v2302_v31, 4  ;;  %4858 = vmatprep.mubr.bf16.mxu0 %v4394_v19  ;;  %v4472_v60 = vrot.slane %v2523_v29, 9  ;;  %v2585_v18 = vrot.slane %v6188_v38, 5  ;;  %v4473_v44 = vrot.slane %v2524_v40, 9  ;;  %v5381_v38 = vld [vmem:[#allocation2 + $0x4] sm:$0x1] }
 0x233   :  { %4871 = vmatpush3.bf16.msra.mxu0 %v5326_v17  ;;  %v2589_v54 = vrot.slane %v6193_v15, 5  ;;  %v4484_v5 = vcombine.low %v2570_v23, %v2574_v49  ;;  %v4404_v50 = vrot.slane %v1486_v43, 9  ;;  %v4395_v42 = vcombine.low %v6167_v59, %v6169_v39  ;;  %v2527_v1 = vld [vmem:[#allocation2 + $0x58] sm:$0xe]  ;;  %v2528_v29 = vld [vmem:[#allocation2 + $0x60] sm:$0xe] }
 0x234   :  { %v2308_v2 = vsel %vm6052_vm8, %v2303_v8, %v2307_v12  ;;  %4872 = vmatprep.subr.bf16.mxu0 %v5329_v47  ;;  %v1539_v30 = vrot.slane %v5381_v38, 5  ;;  %v4405_v62 = vrot.slane %v1487_v57, 9  ;;  %v2578_v17 = vsel %vm6269_vm11, %v4470_v41, %v2577_v48  ;;  %v5334_v12 = vld [vmem:[#allocation7 + $0xb8] sm:$0xff]   ;;  %v5383_v23 = vld [vmem:[#allocation2 + $0x14] sm:$0x1] }
 0x235   :  { %v4459_v63 = vcombine.low %v2294_v7, %v2308_v2  ;;  %v2582_v15 = vsel %vm6269_vm11, %v4471_v21, %v2581_v3  ;;  %v6307_v9 = vsel %vm6269_vm11, %v4472_v60, %v2585_v18  ;;  %v1543_v55 = vrot.slane %v5382_v34, 5  ;;  %v1490_v31 = vld [vmem:[#allocation2 + $0x20] sm:$0xe]  ;;  %v5384_v40 = vld [vmem:[#allocation2 + $0x1c] sm:$0x1] }
 0x236   :  { %v2590_v59 = vsel %vm6269_vm11, %v4473_v44, %v2589_v54  ;;  %v1540_v39 = vsel %vm6269_vm11, %v4404_v50, %v1539_v30  ;;  %v4474_v51 = vrot.slane %v6294_v0, 9  ;;  %v4406_v27 = vrot.slane %v1488_v53, 9  ;;  %v1491_v49 = vld [vmem:[#allocation2 + $0x28] sm:$0xe]  ;;  %v5386_v54 = vld [vmem:[#allocation2 + $0x2c] sm:$0x1] }
 0x237   :  { %4955 = vmatmul.mubr.bf16.gmra.mrb[12].mxu1 %v4459_v63  ;;  %4873 = vmatpush3.bf16.msra.mxu0 %v5329_v47  ;;  %v1544_v32 = vsel %vm6269_vm11, %v4405_v62, %v1543_v55  ;;  %v2593_v37 = vrot.slane %v6198_v26, 5  ;;  %v1547_v43 = vrot.slane %v5383_v23, 5  ;;  %v4407_v45 = vrot.slane %v1489_v28, 9  ;;  %v5333_v26 = vld [vmem:[#allocation7 + $0x188] sm:$0xff]   ;;  %v5336_v28 = vld [vmem:[#allocation8] sm:$0xff]  }
 0x238   :  { %4974 = vmatprep.mubr.bf16.mxu1 %v4484_v5  ;;  %4874 = vmatprep.subr.bf16.mxu0 %v5332_v20  ;;  %v4420_v19 = vcombine.low %v1540_v39, %v1544_v32  ;;  %v4475_v47 = vrot.slane %v2526_v14, 9  ;;  %v2597_v41 = vrot.slane %v6207_v4, 5  ;;  %v1551_v7 = vrot.slane %v5384_v40, 5  ;;  %v5385_v4 = vld [vmem:[#allocation2 + $0x24] sm:$0x1]  ;;  %v5338_v55 = vld [vmem:[#allocation8 + $0x8] sm:$0xff]  }
 0x239   :  { %4859 = vmatmul.mubr.bf16.gmra.mrb[28].mxu0 %v4395_v42  ;;  %v1548_v48 = vsel %vm6269_vm11, %v4406_v27, %v1547_v43  ;;  %v4476_v21 = vrot.slane %v2527_v1, 9  ;;  %v2601_v57 = vrot.slane %v6216_v35, 5  ;;  %v4477_v8 = vrot.slane %v2528_v29, 9  ;;  %v6324_v2 = vld [vmem:[#allocation2 + $0x68] sm:$0xe]  ;;  %v5335_v43 = vld [vmem:[#allocation7 + $0x190] sm:$0xff]  }
 0x23a   :  { %4878 = vmatprep.mubr.bf16.mxu0 %v4420_v19  ;;  %v1552_v3 = vsel %vm6269_vm11, %v4407_v45, %v1551_v7  ;;  %v2605_v60 = vrot.slane %v6220_v33, 5  ;;  %v4408_v18 = vrot.slane %v1490_v31, 9  ;;  %v1555_v0 = vrot.slane %v5385_v4, 5  ;;  %v1492_v5 = vld [vmem:[#allocation2 + $0x30] sm:$0xe] }
 0x23b   :  { %4875 = vmatpush3.bf16.msra.mxu0 %v5332_v20  ;;  %v4409_v44 = vrot.slane %v1491_v49, 9  ;;  %v1559_v53 = vrot.slane %v5386_v54, 5  ;;  %v4485_v35 = vcombine.low %v2578_v17, %v2582_v15  ;;  %v4486_v20 = vcombine.low %v6307_v9, %v2590_v59  ;;  %v2530_v63 = vld [vmem:[#allocation2 + $0x70] sm:$0xe]  ;;  %v1493_v42 = vld [vmem:[#allocation2 + $0x38] sm:$0xe] }
 0x23c   :  { %4876 = vmatprep.subr.bf16.mxu0 %v5334_v12  ;;  %v6329_v50 = vsel %vm6269_vm11, %v4474_v51, %v2593_v37  ;;  %v6333_v33 = vsel %vm6269_vm11, %v4475_v47, %v2597_v41  ;;  %v4421_v38 = vcombine.low %v1548_v48, %v1552_v3  ;;  %v6337_v30 = vsel %vm6269_vm11, %v4476_v21, %v2601_v57  ;;  %v2531_v15 = vld [vmem:[#allocation2 + $0x78] sm:$0xe]  ;;  %v1494_v9 = vld [vmem:[#allocation2 + $0x50] sm:$0xe]  ;;  %v5387_v59 = vld [vmem:[#allocation2 + $0x34] sm:$0x1] }
 0x23d   :  { %v1556_v62 = vsel %vm6269_vm11, %v4408_v18, %v1555_v0  ;;  %v1560_v17 = vsel %vm6269_vm11, %v4409_v44, %v1559_v53  ;;  %v2606_v34 = vsel %vm6269_vm11, %v4477_v8, %v2605_v60  ;;  %v4478_v14 = vrot.slane %v6324_v2, 9  ;;  %v2532_v51 = vld [vmem:[#allocation2 + $0x80] sm:$0xe]  ;;  %v5388_v37 = vld [vmem:[#allocation2 + $0x3c] sm:$0x1]  ;;  %v5340_v60 = vld [vmem:[#allocation8 + $0x10] sm:$0xff]  }
 0x23e   :  { %v4410_v1 = vrot.slane %v1492_v5, 9  ;;  %v1563_v39 = vrot.slane %v5387_v59, 5  ;;  %v2609_v27 = vrot.slane %v6225_v22, 5  ;;  %v4479_v29 = vrot.slane %v2530_v63, 9  ;;  %v5389_v40 = vld [vmem:[#allocation2 + $0x54] sm:$0x1] }
 0x23f   :  { %4975 = vmatmul.mubr.bf16.vlgmr.msra.gmra.mrb[0].mxu1 %v4485_v35  ;;  %4877 = vmatpush3.bf16.msra.mxu0 %v5334_v12  ;;  %v4411_v32 = vrot.slane %v1493_v42, 9  ;;  %v1567_v23 = vrot.slane %v5388_v37, 5  ;;  %v1495_v12 = vld [vmem:[#allocation2 + $0x58] sm:$0xe]  ;;  %v4422_v45 = vcombine.low %v1556_v62, %v1560_v17  ;;  %v2613_v31 = vrot.slane %v6232_v56, 5 }
 0x240   :  { %4991 = vmatpush3.bf16.msra.mxu1 %v6273_v16  ;;  %4978 = vmatprep.mubr.bf16.mxu1 %v4486_v20  ;;  %v1564_v19 = vsel %vm6269_vm11, %v4410_v1, %v1563_v39  ;;  %v4480_v47 = vrot.slane %v2531_v15, 9  ;;  %v2617_v16 = vrot.slane %v6239_v36, 5  ;;  %v4481_v41 = vrot.slane %v2532_v51, 9  ;;  %v5390_v56 = vld [vmem:[#allocation2 + $0x5c] sm:$0x1] }
 0x241   :  { %4992 = vmatprep.subr.bf16.mxu1 %v5333_v26  ;;  %5086 = vmatprep.subr.bf16.mxu0 %v5336_v28  ;;  %v4412_v22 = vrot.slane %v1494_v9, 9  ;;  %v1571_v7 = vrot.slane %v5389_v40, 5  ;;  %v1568_v49 = vsel %vm6269_vm11, %v4411_v32, %v1567_v23  ;;  %v2621_v48 = vrot.slane %v6243_v52, 5  ;;  %v5337_v8 = vld [vmem:[#allocation7 + $0x198] sm:$0xff]   ;;  %v1496_v4 = vld [vmem:[#allocation2 + $0x60] sm:$0xe] }
 0x242   :  { %4879 = vmatmul.mubr.bf16.vlgmr.msra.gmra.mrb[16].mxu0 %v4421_v38  ;;  %v4413_v21 = vrot.slane %v1495_v12, 9  ;;  %v1575_v57 = vrot.slane %v5390_v56, 5  ;;  %v4487_v3 = vcombine.low %v6329_v50, %v6333_v33  ;;  %v1497_v0 = vld [vmem:[#allocation2 + $0x68] sm:$0xe]  ;;  %v4488_v52 = vcombine.low %v6337_v30, %v2606_v34  ;;  %v1498_v53 = vld [vmem:[#allocation2 + $0x70] sm:$0xe] }
 0x243   :  { %4882 = vmatprep.mubr.bf16.mxu0 %v4422_v45  ;;  %5087 = vmatpush3.bf16.msra.mxu0 %v5336_v28  ;;  %v1572_v36 = vsel %vm6269_vm11, %v4412_v22, %v1571_v7  ;;  %v2614_v44 = vsel %vm6269_vm11, %v4479_v29, %v2613_v31  ;;  %v4423_v54 = vcombine.low %v1564_v19, %v1568_v49  ;;  %v1500_v2 = vld [vmem:[#allocation2 + $0x80] sm:$0xe]  ;;  %v1499_v50 = vld [vmem:[#allocation2 + $0x78] sm:$0xe]  ;;  %v1501_v33 = vld [vmem:[#allocation2 + $0x88] sm:$0xe] }
 0x244   :  { %4993 = vmatpush3.bf16.msra.mxu1 %v5333_v26  ;;  %5088 = vmatprep.subr.bf16.mxu0 %v5338_v55  ;;  %v1576_v18 = vsel %vm6269_vm11, %v4413_v21, %v1575_v57  ;;  %v2610_v26 = vsel %vm6269_vm11, %v4478_v14, %v2609_v27  ;;  %v2618_v5 = vsel %vm6269_vm11, %v4480_v47, %v2617_v16  ;;  %v5339_v28 = vld [vmem:[#allocation7 + $0x1a0] sm:$0xff]   ;;  %v5342_v63 = vld [vmem:[#allocation8 + $0x18] sm:$0xff]   ;;  %v4414_v42 = vrot.slane %v1496_v4, 9  ;;  %v5392_v17 = vld [vmem:[#allocation2 + $0x6c] sm:$0x1] }
 0x245   :  { %4994 = vmatprep.subr.bf16.mxu1 %v5335_v43  ;;  %v2622_v35 = vsel %vm6269_vm11, %v4481_v41, %v2621_v48  ;;  %v4424_v20 = vcombine.low %v1572_v36, %v1576_v18  ;;  %v5391_v38 = vld [vmem:[#allocation2 + $0x64] sm:$0x1]  ;;  %v4415_v62 = vrot.slane %v1497_v0, 9  ;;  %v1583_v15 = vrot.slane %v5392_v17, 5  ;;  %v2533_v9 = vld [vmem:[#allocation2 + $0x88] sm:$0xe] }
 0x246   :  { %v1579_v30 = vrot.slane %v5391_v38, 5  ;;  %v4416_v34 = vrot.slane %v1498_v53, 9  ;;  %v4418_v14 = vrot.slane %v1500_v2, 9  ;;  %v1595_v1 = vrot.slane %v6174_v61, 5  ;;  %v2534_v29 = vld [vmem:[#allocation2 + $0x90] sm:$0xe] }
 0x247   :  { %4979 = vmatmul.mubr.bf16.gmra.mrb[4].mxu1 %v4487_v3  ;;  %5089 = vmatpush3.bf16.msra.mxu0 %v5338_v55  ;;  %v1587_v55 = vrot.slane %v6138_v58, 5  ;;  %v4417_v59 = vrot.slane %v1499_v50, 9  ;;  %v1591_v39 = vrot.slane %v6146_v6, 5  ;;  %v4419_v51 = vrot.slane %v1501_v33, 9  ;;  %v5341_v12 = vld [vmem:[#allocation7 + $0x1a8] sm:$0xff]   ;;  %v5345_v45 = vld [vmem:[#allocation8 + $0x20] sm:$0xff]  }
 0x248   :  { %4995 = vmatpush3.bf16.msra.mxu1 %v5335_v43  ;;  %4982 = vmatprep.mubr.bf16.mxu1 %v4488_v52  ;;  %v1599_v27 = vrot.slane %v6182_v25, 5  ;;  %v1596_v32 = vsel %vm6269_vm11, %v4418_v14, %v1595_v1  ;;  %v4489_v37 = vcombine.low %v2610_v26, %v2614_v44  ;;  %v4482_v58 = vrot.slane %v2533_v9, 9  ;;  %v5347_v22 = vld [vmem:[#allocation8 + $0x28] sm:$0xff]   ;;  %v5343_v40 = vld [vmem:[#allocation7 + $0x1b0] sm:$0xff]   ;;  %v5346_v21 = vld [vmem:[#allocation7 + $0x1b8] sm:$0xff]  }
 0x249   :  { %4996 = vmatprep.subr.bf16.mxu1 %v5337_v8  ;;  %5090 = vmatprep.subr.bf16.mxu0 %v5340_v60  ;;  %v2625_v23 = vrot.slane %v6250_v10, 5  ;;  %v4490_v6 = vcombine.low %v2618_v5, %v2622_v35  ;;  %v1580_v25 = vsel %vm6269_vm11, %v4414_v42, %v1579_v30  ;;  %v1584_v43 = vsel %vm6269_vm11, %v4415_v62, %v1583_v15  ;;  %v5351_v56 = vld [vmem:[#allocation8 + $0x30] sm:$0xff]   ;;  %v5348_v36 = vld [vmem:[#allocation7 + $0x1c0] sm:$0xff]   ;;  %v5352_v4 = vld [vmem:[#allocation7 + $0x1c8] sm:$0xff]  }
 0x24a   :  { %4883 = vmatmul.mubr.bf16.gmra.mrb[20].mxu0 %v4423_v54  ;;  %v1600_v61 = vsel %vm6269_vm11, %v4419_v51, %v1599_v27  ;;  %v4483_v19 = vrot.slane %v2534_v29, 9  ;;  %v2629_v47 = vrot.slane %v6253_v46, 5  ;;  %v1588_v10 = vsel %vm6269_vm11, %v4416_v34, %v1587_v55  ;;  %v5344_v57 = vld [vmem:[#allocation2 + $0x10] ss:$8 sps:$4 sm:$0xff]   ;;  %v5349_v18 = vld [vmem:[#allocation2 + $0x20] ss:$8 sps:$4 sm:$0xff]  }
 0x24b   :  { %4886 = vmatprep.mubr.bf16.mxu0 %v4424_v20  ;;  %5091 = vmatpush3.bf16.msra.mxu0 %v5340_v60  ;;  %v4427_v31 = vcombine.low %v1596_v32, %v1600_v61  ;;  %v1592_v16 = vsel %vm6269_vm11, %v4417_v59, %v1591_v39  ;;  %v4425_v41 = vcombine.low %v1580_v25, %v1584_v43  ;;  %v3084_v3 = vld [vmem:[#allocation2 + $0x10] sm:$0xf]  ;;  %v5393_v60 = vld [vmem:[#allocation3] sm:$0xff]   ;;  %v3086_v44 = vld [vmem:[#allocation2 + $0x18] sm:$0xf] }
 0x24c   :  { %4997 = vmatpush3.bf16.msra.mxu1 %v5337_v8  ;;  %5092 = vmatprep.subr.bf16.mxu0 %v5342_v63  ;;  %v4426_v7 = vcombine.low %v1588_v10, %v1592_v16  ;;  %v2626_v49 = vsel %vm6269_vm11, %v4482_v58, %v2625_v23  ;;  %v2630_v46 = vsel %vm6269_vm11, %v4483_v19, %v2629_v47  ;;  %v5353_v8 = vld [vmem:[#allocation8 + $0x38] sm:$0xff]   ;;  %v3117_v0 = vshrl.u32 %v3084_v3, 16  ;;  %v3088_v54 = vld [vmem:[#allocation2 + $0x20] sm:$0xf]  ;;  %v3090_v53 = vld [vmem:[#allocation2 + $0x28] sm:$0xf] }
 0x24d   :  { %4998 = vmatprep.subr.bf16.mxu1 %v5339_v28  ;;  %v4491_v48 = vcombine.low %v2626_v49, %v2630_v46  ;;  %v3120_v52 = vshll.u32 %v3084_v3, 16  ;;  %v5350_v26 = vld [vmem:[#allocation2 + $0x30] ss:$8 sps:$4 sm:$0xff]   ;;  %v5394_v20 = vld [vmem:[#allocation3 + $0x8] sm:$0xff]   ;;  %v6392_v50 = vld [vmem:[#allocation2 + $0x14] sm:$0x1] }
 0x24e   :  { %v5354_v2 = vld [vmem:[#allocation7 + $0x1d0] sm:$0xff]   ;;  %v3119_v5 = vrot.slane %v3117_v0, 4  ;;  %v3131_v33 = vshrl.u32 %v3086_v44, 16  ;;  %v3148_v42 = vshll.u32 %v3088_v54, 16  ;;  %v3159_v30 = vshrl.u32 %v3090_v53, 16  ;;  %v5357_v34 = vld [vmem:[#allocation7 + $0x1d8] sm:$0xff]  }
 0x24f   :  { %4983 = vmatmul.mubr.bf16.gmra.mrb[8].mxu1 %v4489_v37  ;;  %5093 = vmatpush3.bf16.msra.mxu0 %v5342_v63  ;;  %v3122_v35 = vrot.slane %v3120_v52, 5  ;;  %v3145_v63 = vshrl.u32 %v3088_v54, 16  ;;  %v5395_v38 = vld [vmem:[#allocation3 + $0x10] sm:$0xff]   ;;  %v3162_v62 = vshll.u32 %v3090_v53, 16  ;;  %v5355_v17 = vld [vmem:[#allocation2 + $0x40] ss:$8 sps:$4 sm:$0xff]  }
 0x250   :  { %4999 = vmatpush3.bf16.msra.mxu1 %v5339_v28  ;;  %4986 = vmatprep.mubr.bf16.mxu1 %v4490_v6  ;;  %v3134_v28 = vshll.u32 %v3086_v44, 16  ;;  %v3092_v15 = vld [vmem:[#allocation2 + $0x30] sm:$0xf]  ;;  %v5356_v9 = vld [vmem:[#allocation2 + $0x60] ss:$8 sps:$4 sm:$0xff]   ;;  %v3126_v1 = vshll.u32 %v6392_v50, 16 }
 0x251   :  { %5000 = vmatprep.subr.bf16.mxu1 %v5341_v12  ;;  %5094 = vmatprep.subr.bf16.mxu0 %v5345_v45  ;;  %v6394_v55 = vld [vmem:[#allocation2 + $0x1c] sm:$0x1]  ;;  %v3123_v14 = vor.u32 %v3122_v35, %v3119_v5  ;;  %v3133_v59 = vrot.slane %v3131_v33, 4  ;;  %v6397_v51 = vld [vmem:[#allocation2 + $0x24] sm:$0x1]  ;;  %v3147_v27 = vrot.slane %v3145_v63, 4 }
 0x252   :  { %4887 = vmatmul.mubr.bf16.gmra.mrb[24].mxu0 %v4425_v41  ;;  %v3136_v39 = vrot.slane %v3134_v28, 5  ;;  %v3150_v29 = vrot.slane %v3148_v42, 5  ;;  %v3161_v32 = vrot.slane %v3159_v30, 4  ;;  %v3164_v37 = vrot.slane %v3162_v62, 5  ;;  %v3094_v58 = vld [vmem:[#allocation2 + $0x38] sm:$0xf] }
 0x253   :  { %4890 = vmatprep.mubr.bf16.mxu0 %v4426_v7  ;;  %5095 = vmatpush3.bf16.msra.mxu0 %v5345_v45  ;;  %v3173_v23 = vshrl.u32 %v3092_v15, 16  ;;  %v3176_v61 = vshll.u32 %v3092_v15, 16  ;;  %v5358_v6 = vld [vmem:[#allocation7 + $0x1e0] sm:$0xff]   ;;  %v3140_v25 = vshll.u32 %v6394_v55, 16  ;;  %v3154_v43 = vshll.u32 %v6397_v51, 16  ;;  %v5396_v45 = vld [vmem:[#allocation3 + $0x18] sm:$0xff]  }
 0x254   :  { %5001 = vmatpush3.bf16.msra.mxu1 %v5341_v12  ;;  %5096 = vmatprep.subr.bf16.mxu0 %v5347_v22  ;;  %v6399_v12 = vrot.slane %v3123_v14, 4  ;;  %v6403_v19 = vld [vmem:[#allocation2 + $0x2c] sm:$0x1]  ;;  %v3151_v47 = vor.u32 %v3150_v29, %v3147_v27  ;;  %v3187_v10 = vshrl.u32 %v3094_v58, 16  ;;  %v3190_v16 = vshll.u32 %v3094_v58, 16  ;;  %v5399_v29 = vld [vmem:[#allocation3 + $0x30] sm:$0xff]  }
 0x255   :  { %5002 = vmatprep.subr.bf16.mxu1 %v5343_v40  ;;  %v5359_v41 = vld [vmem:[#allocation2 + $0x70] ss:$8 sps:$4 sm:$0xff]   ;;  %v3165_v7 = vor.u32 %v3164_v37, %v3161_v32  ;;  %v3175_v49 = vrot.slane %v3173_v23, 4  ;;  %v3178_v46 = vrot.slane %v3176_v61, 5  ;;  %v3142_v3 = vrot.slane %v3140_v25, 5 }
 0x256   :  { %v3152_v52 = vrot.slane %v3151_v47, 4  ;;  %v3192_v44 = vrot.slane %v3190_v16, 5  ;;  %v3102_v54 = vld [vmem:[#allocation2 + $0x68] sm:$0xf]  ;;  %v6426_v37 = vld [vmem:[#allocation2 + $0x4c] sm:$0x1] }
 0x257   :  { %4987 = vmatmul.mubr.bf16.gmra.mrb[12].mxu1 %v4491_v48  ;;  %5097 = vmatpush3.bf16.msra.mxu0 %v5347_v22  ;;  %v5397_v22 = vld [vmem:[#allocation3 + $0x20] sm:$0xff]   ;;  %v3098_v48 = vld [vmem:[#allocation2 + $0x48] sm:$0xf]  ;;  %v3166_v53 = vrot.slane %v3165_v7, 4  ;;  %v3179_v5 = vor.u32 %v3178_v46, %v3175_v49  ;;  %v3246_v15 = vshll.u32 %v3102_v54, 16 }
 0x258   :  { %5003 = vmatpush3.bf16.msra.mxu1 %v5343_v40  ;;  %5006 = vmatprep.mubr.bf16.mxu1 %v5344_v57  ;;  %v6405_v40 = vrot.slane %v3126_v1, 5  ;;  %v3096_v57 = vld [vmem:[#allocation2 + $0x40] sm:$0xf]  ;;  %v3215_v33 = vshrl.u32 %v3098_v48, 16  ;;  %v3218_v28 = vshll.u32 %v3098_v48, 16 }
 0x259   :  { %5004 = vmatprep.subr.bf16.mxu1 %v5346_v21  ;;  %5098 = vmatprep.subr.bf16.mxu0 %v5351_v56  ;;  %v3201_v35 = vshrl.u32 %v3096_v57, 16  ;;  %v6424_v32 = vrot.slane %v3179_v5, 4  ;;  %v6428_v61 = vld [vmem:[#allocation2 + $0x44] sm:$0x1]  ;;  %v3104_v16 = vld [vmem:[#allocation2 + $0x70] sm:$0xf] }
 0x25a   :  { %4891 = vmatmul.mubr.bf16.gmra.mrb[28].mxu0 %v4427_v31  ;;  %v3137_v31 = vor.u32 %v3136_v39, %v3133_v59  ;;  %v5363_v39 = vld [vmem:[#allocation2 + $0x90] ss:$8 sps:$4 sm:$0xff]  }
 0x25b   :  { %5099 = vmatpush3.bf16.msra.mxu0 %v5351_v56  ;;  %5102 = vmatprep.mubr.bf16.mxu0 %v5393_v60  ;;  %v6407_v56 = vld [vmem:[#allocation2 + $0x34] sm:$0x1]  ;;  %v3156_v60 = vrot.slane %v3154_v43, 5  ;;  %v3203_v58 = vrot.slane %v3201_v35, 4  ;;  %v3106_v7 = vld [vmem:[#allocation2 + $0x78] sm:$0xf] }
 0x25c   :  { %5005 = vmatpush3.bf16.msra.mxu1 %v5346_v21  ;;  %5100 = vmatprep.subr.bf16.mxu0 %v5353_v8  ;;  %v5360_v21 = vld [vmem:[#allocation2 + $0x80] ss:$8 sps:$4 sm:$0xff]   ;;  %v3138_v0 = vrot.slane %v3137_v31, 4  ;;  %v3182_v62 = vshll.u32 %v6407_v56, 16  ;;  %v5400_v35 = vld [vmem:[#allocation3 + $0x38] sm:$0xff]  }
 0x25d   :  { %5022 = vmatprep.subr.bf16.mxu1 %v5348_v36  ;;  %v3157_v14 = vsel %vm6052_vm8, %v3152_v52, %v3156_v60  ;;  %v5365_v52 = vld [vmem:[#allocation7 + $0x200] sm:$0xff]  }
 0x25e   :  { %v3184_v31 = vrot.slane %v3182_v62, 5 }
 0x25f   :  { %5007 = vmatmul.mubr.bf16.vlgmr.msra.gmra.mrb[0].mxu1 %v5349_v18  ;;  %5101 = vmatpush3.bf16.msra.mxu0 %v5353_v8  ;;  %v5361_v8 = vld [vmem:[#allocation7 + $0x1e8] sm:$0xff]   ;;  %v3168_v18 = vshll.u32 %v6403_v19, 16 }
 0x260   :  { %5023 = vmatpush3.bf16.msra.mxu1 %v5348_v36  ;;  %5010 = vmatprep.mubr.bf16.mxu1 %v5350_v26  ;;  %v3129_v36 = vsel %vm6052_vm8, %v6399_v12, %v6405_v40  ;;  %v3189_v26 = vrot.slane %v3187_v10, 4  ;;  %v3220_v12 = vrot.slane %v3218_v28, 5  ;;  %v3248_v10 = vrot.slane %v3246_v15, 5 }
 0x261   :  { %5024 = vmatprep.subr.bf16.mxu1 %v5352_v4  ;;  %v3170_v30 = vrot.slane %v3168_v18, 5  ;;  %v3224_v40 = vshll.u32 %v6426_v37, 16  ;;  %v3185_v46 = vsel %vm6052_vm8, %v6424_v32, %v3184_v31  ;;  %v3257_v18 = vshrl.u32 %v3104_v16, 16 }
 0x262   :  { %5103 = vmatmul.mubr.bf16.vlgmr.msra.gmra.mrb[32].mxu0 %v5394_v20  ;;  %v3204_v20 = vshll.u32 %v3096_v57, 16  ;;  %v3193_v1 = vor.u32 %v3192_v44, %v3189_v26  ;;  %v6435_v57 = vld [vmem:[#allocation2 + $0x64] sm:$0x1]  ;;  %v3260_v44 = vshll.u32 %v3104_v16, 16  ;;  %v5367_v16 = vld [vmem:[#allocation7 + $0x210] sm:$0xff]  }
 0x263   :  { %5106 = vmatprep.mubr.bf16.mxu0 %v5395_v38  ;;  %v5362_v38 = vld [vmem:[#allocation7 + $0x1f0] sm:$0xff]   ;;  %v3171_v27 = vsel %vm6052_vm8, %v3166_v53, %v3170_v30  ;;  %v3274_v53 = vshll.u32 %v3106_v7, 16 }
 0x264   :  { %5025 = vmatpush3.bf16.msra.mxu1 %v5352_v4  ;;  %v3100_v4 = vld [vmem:[#allocation2 + $0x60] sm:$0xf]  ;;  %v3206_v23 = vrot.slane %v3204_v20, 5  ;;  %v4517_v49 = vcombine.low %v3157_v14, %v3171_v27  ;;  %v3226_v20 = vrot.slane %v3224_v40, 5  ;;  %v6453_v40 = vld [vmem:[#allocation2 + $0x7c] sm:$0x1] }
 0x265   :  { %5026 = vmatprep.subr.bf16.mxu1 %v5354_v2  ;;  %v3229_v63 = vshrl.u32 %v3100_v4, 16  ;;  %v3232_v42 = vshll.u32 %v3100_v4, 16  ;;  %v3108_v4 = vld [vmem:[#allocation2 + $0x80] sm:$0xf] }
 0x267   :  { %5011 = vmatmul.mubr.bf16.gmra.mrb[4].mxu1 %v5355_v17  ;;  %v3243_v17 = vshrl.u32 %v3102_v54, 16  ;;  %v3231_v25 = vrot.slane %v3229_v63, 4  ;;  %v3234_v43 = vrot.slane %v3232_v42, 5  ;;  %v3271_v54 = vshrl.u32 %v3106_v7, 16 }
 0x268   :  { %5027 = vmatpush3.bf16.msra.mxu1 %v5354_v2  ;;  %5014 = vmatprep.mubr.bf16.mxu1 %v5356_v9  ;;  %v6414_v2 = vld [vmem:[#allocation2 + $0x3c] sm:$0x1]  ;;  %v3143_v9 = vsel %vm6052_vm8, %v3138_v0, %v3142_v3  ;;  %v3110_v0 = vld [vmem:[#allocation2 + $0x88] sm:$0xf]  ;;  %v3285_v63 = vshrl.u32 %v3108_v4, 16  ;;  %v3288_v42 = vshll.u32 %v3108_v4, 16 }
 0x269   :  { %5028 = vmatprep.subr.bf16.mxu1 %v5357_v34  ;;  %v3196_v59 = vshll.u32 %v6414_v2, 16  ;;  %v3245_v47 = vrot.slane %v3243_v17, 4  ;;  %v3235_v60 = vor.u32 %v3234_v43, %v3231_v25  ;;  %v3302_v30 = vshll.u32 %v3110_v0, 16 }
 0x26a   :  { %5107 = vmatmul.mubr.bf16.gmra.mrb[36].mxu0 %v5396_v45  ;;  %v5364_v45 = vld [vmem:[#allocation7 + $0x1f8] sm:$0xff]  }
 0x26b   :  { %5110 = vmatprep.mubr.bf16.mxu0 %v5397_v22  ;;  %v3194_v22 = vrot.slane %v3193_v1, 4  ;;  %v3198_v48 = vrot.slane %v3196_v59, 5  ;;  %v3249_v26 = vor.u32 %v3248_v10, %v3245_v47  ;;  %v3236_v15 = vrot.slane %v3235_v60, 4  ;;  %v6447_v10 = vld [vmem:[#allocation2 + $0x74] sm:$0x1] }
 0x26c   :  { %5029 = vmatpush3.bf16.msra.mxu1 %v5357_v34  ;;  %v5398_v34 = vld [vmem:[#allocation3 + $0x28] sm:$0xff]   ;;  %v3262_v1 = vrot.slane %v3260_v44, 5  ;;  %v3273_v59 = vrot.slane %v3271_v54, 4  ;;  %v3304_v43 = vrot.slane %v3302_v30, 5 }
 0x26d   :  { %5030 = vmatprep.subr.bf16.mxu1 %v5358_v6  ;;  %v3199_v5 = vsel %vm6052_vm8, %v3194_v22, %v3198_v48  ;;  %v3250_v14 = vrot.slane %v3249_v26, 4  ;;  %v6457_v48 = vld [vmem:[#allocation2 + $0x8c] sm:$0x1]  ;;  %v3280_v26 = vshll.u32 %v6453_v40, 16 }
 0x26e   :  { %v4518_v27 = vcombine.low %v3185_v46, %v3199_v5  ;;  %v6455_v46 = vld [vmem:[#allocation2 + $0x84] sm:$0x1] }
 0x26f   :  { %5015 = vmatmul.mubr.bf16.gmra.mrb[8].mxu1 %v5359_v41  ;;  %v4516_v41 = vcombine.low %v3129_v36, %v3143_v9  ;;  %v3207_v36 = vor.u32 %v3206_v23, %v3203_v58  ;;  %v3259_v9 = vrot.slane %v3257_v18, 4  ;;  %v3112_v23 = vld [vmem:[#allocation2 + $0x90] sm:$0xf]  ;;  %v3266_v18 = vshll.u32 %v6447_v10, 16 }
 0x270   :  { %5031 = vmatpush3.bf16.msra.mxu1 %v5358_v6  ;;  %5018 = vmatprep.mubr.bf16.mxu1 %v5360_v21  ;;  %v3217_v6 = vrot.slane %v3215_v33, 4  ;;  %v3210_v21 = vshll.u32 %v6428_v61, 16  ;;  %v3238_v33 = vshll.u32 %v6435_v57, 16  ;;  %v3294_v44 = vshll.u32 %v6455_v46, 16 }
 0x271   :  { %5032 = vmatprep.subr.bf16.mxu1 %v5361_v8  ;;  %v3208_v62 = vrot.slane %v3207_v36, 4  ;;  %v3263_v7 = vor.u32 %v3262_v1, %v3259_v9  ;;  %v3316_v36 = vshll.u32 %v3112_v23, 16  ;;  %v6465_v1 = vld [vmem:[#allocation2 + $0x94] sm:$0x1] }
 0x272   :  { %5111 = vmatmul.mubr.bf16.gmra.mrb[40].mxu0 %v5398_v34  ;;  %v3221_v3 = vor.u32 %v3220_v12, %v3217_v6  ;;  %v5366_v34 = vld [vmem:[#allocation7 + $0x208] sm:$0xff]   ;;  %v3240_v32 = vrot.slane %v3238_v33, 5  ;;  %v3287_v6 = vrot.slane %v3285_v63, 4  ;;  %v3290_v12 = vrot.slane %v3288_v42, 5 }
 0x273   :  { %5114 = vmatprep.mubr.bf16.mxu0 %v5399_v29  ;;  %v3212_v29 = vrot.slane %v3210_v21, 5  ;;  %v3313_v21 = vshrl.u32 %v3112_v23, 16  ;;  %v3264_v5 = vrot.slane %v3263_v7, 4  ;;  %v3600_v7 = vrot.slane %v6392_v50, 5 }
 0x274   :  { %5033 = vmatpush3.bf16.msra.mxu1 %v5361_v8  ;;  %v6437_v8 = vld [vmem:[#allocation2 + $0x6c] sm:$0x1]  ;;  %v3222_v17 = vrot.slane %v3221_v3, 4  ;;  %v3291_v4 = vor.u32 %v3290_v12, %v3287_v6  ;;  %v3322_v6 = vshll.u32 %v6465_v1, 16  ;;  %v3550_v12 = vld [vmem:[#allocation2 + $0x10] sm:$0xe] }
 0x275   :  { %5034 = vmatprep.subr.bf16.mxu1 %v5362_v38  ;;  %v3252_v28 = vshll.u32 %v6437_v8, 16  ;;  %v3213_v31 = vsel %vm6052_vm8, %v3208_v62, %v3212_v29  ;;  %v3315_v33 = vrot.slane %v3313_v21, 4  ;;  %v3604_v21 = vrot.slane %v6394_v55, 5  ;;  %v3554_v55 = vld [vmem:[#allocation2 + $0x30] sm:$0xe] }
 0x276   :  { %v3227_v47 = vsel %vm6052_vm8, %v3222_v17, %v3226_v20  ;;  %v3308_v20 = vshll.u32 %v6457_v48, 16  ;;  %v3292_v30 = vrot.slane %v3291_v4, 4  ;;  %v5369_v17 = vld [vmem:[#allocation7 + $0x220] sm:$0xff]  }
 0x277   :  { %5019 = vmatmul.mubr.bf16.gmra.mrb[12].mxu1 %v5363_v39  ;;  %v3276_v39 = vrot.slane %v3274_v53, 5  ;;  %v3254_v58 = vrot.slane %v3252_v28, 5  ;;  %v5368_v53 = vld [vmem:[#allocation7 + $0x218] sm:$0xff]   ;;  %v3318_v28 = vrot.slane %v3316_v36, 5  ;;  %v3324_v36 = vrot.slane %v3322_v6, 5 }
 0x278   :  { %5035 = vmatpush3.bf16.msra.mxu1 %v5362_v38  ;;  %5038 = vmatprep.mubr.bf16.mxu1 %v4516_v41  ;;  %v3299_v38 = vshrl.u32 %v3110_v0, 16  ;;  %v3241_v41 = vsel %vm6052_vm8, %v3236_v15, %v3240_v32  ;;  %v3282_v15 = vrot.slane %v3280_v26, 5  ;;  %v3552_v4 = vld [vmem:[#allocation2 + $0x20] sm:$0xe]  ;;  %v3555_v26 = vld [vmem:[#allocation2 + $0x38] sm:$0xe] }
 0x279   :  { %5036 = vmatprep.subr.bf16.mxu1 %v5364_v45  ;;  %v3255_v22 = vsel %vm6052_vm8, %v3250_v14, %v3254_v58  ;;  %v3310_v14 = vrot.slane %v3308_v20, 5  ;;  %v3612_v20 = vrot.slane %v6403_v19, 5 }
 0x27a   :  { %5115 = vmatmul.mubr.bf16.gmra.mrb[44].mxu0 %v5400_v35  ;;  %v3301_v25 = vrot.slane %v3299_v38, 4  ;;  %v4520_v54 = vcombine.low %v3241_v41, %v3255_v22  ;;  %v3268_v38 = vrot.slane %v3266_v18, 5  ;;  %v4532_v22 = vrot.slane %v3550_v12, 9 }
 0x27c   :  { %5037 = vmatpush3.bf16.msra.mxu1 %v5364_v45  ;;  %v3114_v45 = vld [vmem:[#allocation2 + $0x98] sm:$0xf]  ;;  %v3305_v0 = vor.u32 %v3304_v43, %v3301_v25  ;;  %v3269_v9 = vsel %vm6052_vm8, %v3264_v5, %v3268_v38 }
 0x27d   :  { %5054 = vmatprep.subr.bf16.mxu1 %v5365_v52  ;;  %v3327_v3 = vshrl.u32 %v3114_v45, 16  ;;  %v3330_v60 = vshll.u32 %v3114_v45, 16  ;;  %v3551_v25 = vld [vmem:[#allocation2 + $0x18] sm:$0xe]  ;;  %v5370_v45 = vld [vmem:[#allocation7 + $0x228] sm:$0xff]  }
 0x27e   :  { %v3306_v62 = vrot.slane %v3305_v0, 4  ;;  %v3601_v0 = vsel %vm6269_vm11, %v4532_v22, %v3600_v7  ;;  %v3644_v22 = vrot.slane %v6453_v40, 5 }
 0x27f   :  { %5039 = vmatmul.mubr.bf16.vlgmr.msra.gmra.mrb[0].mxu1 %v4517_v49  ;;  %v3277_v49 = vor.u32 %v3276_v39, %v3273_v59  ;;  %v3329_v63 = vrot.slane %v3327_v3, 4  ;;  %v3332_v42 = vrot.slane %v3330_v60, 5  ;;  %v6467_v59 = vld [vmem:[#allocation2 + $0x9c] sm:$0x1]  ;;  %v5371_v3 = vld [vmem:[#allocation7 + $0x230] sm:$0xff]  }
 0x280   :  { %5055 = vmatpush3.bf16.msra.mxu1 %v5365_v52  ;;  %5042 = vmatprep.mubr.bf16.mxu1 %v4518_v27  ;;  %v4519_v52 = vcombine.low %v3213_v31, %v3227_v47  ;;  %v3319_v27 = vor.u32 %v3318_v28, %v3315_v33  ;;  %v3336_v32 = vshll.u32 %v6467_v59, 16  ;;  %v3311_v23 = vsel %vm6052_vm8, %v3306_v62, %v3310_v14 }
 0x281   :  { %5056 = vmatprep.subr.bf16.mxu1 %v5366_v34  ;;  %v3278_v35 = vrot.slane %v3277_v49, 4  ;;  %v3333_v29 = vor.u32 %v3332_v42, %v3329_v63  ;;  %v4533_v49 = vrot.slane %v3551_v25, 9  ;;  %v4536_v33 = vrot.slane %v3554_v55, 9  ;;  %v3560_v25 = vld [vmem:[#allocation2 + $0x70] sm:$0xe] }
 0x282   :  { %v3320_v47 = vrot.slane %v3319_v27, 4  ;;  %v3338_v41 = vrot.slane %v3336_v32, 5  ;;  %v3616_v28 = vrot.slane %v6407_v56, 5  ;;  %v4537_v63 = vrot.slane %v3555_v26, 9  ;;  %v3557_v56 = vld [vmem:[#allocation2 + $0x48] sm:$0xe] }
 0x283   :  { %v3283_v39 = vsel %vm6052_vm8, %v3278_v35, %v3282_v15  ;;  %v3605_v50 = vsel %vm6269_vm11, %v4533_v49, %v3604_v21  ;;  %v3608_v35 = vrot.slane %v6397_v51, 5  ;;  %v3620_v42 = vrot.slane %v6414_v2, 5  ;;  %v3556_v51 = vld [vmem:[#allocation2 + $0x40] sm:$0xe]  ;;  %v3559_v2 = vld [vmem:[#allocation2 + $0x68] sm:$0xe] }
 0x284   :  { %5057 = vmatpush3.bf16.msra.mxu1 %v5366_v34  ;;  %v3296_v34 = vrot.slane %v3294_v44, 5  ;;  %v4521_v43 = vcombine.low %v3269_v9, %v3283_v39  ;;  %v3325_v60 = vsel %vm6052_vm8, %v3320_v47, %v3324_v36  ;;  %v4548_v5 = vcombine.low %v3601_v0, %v3605_v50 }
 0x285   :  { %5058 = vmatprep.subr.bf16.mxu1 %v5367_v16  ;;  %v3617_v19 = vsel %vm6269_vm11, %v4536_v33, %v3616_v28  ;;  %v3621_v62 = vsel %vm6269_vm11, %v4537_v63, %v3620_v42  ;;  %v4538_v9 = vrot.slane %v3556_v51, 9  ;;  %v3624_v14 = vrot.slane %v6428_v61, 5 }
 0x286   :  { %v3297_v58 = vsel %vm6052_vm8, %v3292_v30, %v3296_v34  ;;  %v4550_v34 = vcombine.low %v3617_v19, %v3621_v62  ;;  %v4539_v39 = vrot.slane %v3557_v56, 9  ;;  %v3628_v27 = vrot.slane %v6426_v37, 5 }
 0x287   :  { %5043 = vmatmul.mubr.bf16.gmra.mrb[4].mxu1 %v4519_v52  ;;  %v4522_v31 = vcombine.low %v3297_v58, %v3311_v23  ;;  %v3553_v52 = vld [vmem:[#allocation2 + $0x28] sm:$0xe]  ;;  %v3632_v32 = vrot.slane %v6435_v57, 5  ;;  %v4541_v58 = vrot.slane %v3559_v2, 9  ;;  %v3636_v23 = vrot.slane %v6437_v8, 5 }
 0x288   :  { %5059 = vmatpush3.bf16.msra.mxu1 %v5367_v16  ;;  %5046 = vmatprep.mubr.bf16.mxu1 %v4520_v54  ;;  %v3334_v16 = vrot.slane %v3333_v29, 4  ;;  %v5372_v54 = vld [vmem:[#allocation7 + $0x238] sm:$0xff]   ;;  %v4535_v13 = vrot.slane %v3553_v52, 9  ;;  %v3625_v6 = vsel %vm6269_vm11, %v4538_v9, %v3624_v14  ;;  %v3629_v12 = vsel %vm6269_vm11, %v4539_v39, %v3628_v27  ;;  %v3563_v57 = vld [vmem:[#allocation2 + $0x88] sm:$0xe] }
 0x289   :  { %5060 = vmatprep.subr.bf16.mxu1 %v5368_v53  ;;  %v3637_v37 = vsel %vm6269_vm11, %v4541_v58, %v3636_v23  ;;  %v4542_v47 = vrot.slane %v3560_v25, 9  ;;  %v3648_v49 = vrot.slane %v6455_v46, 5  ;;  %v4545_v21 = vrot.slane %v3563_v57, 9 }
 0x28a   :  { %v3339_v18 = vsel %vm6052_vm8, %v3334_v16, %v3338_v41  ;;  %v3613_v30 = vsel %vm6269_vm11, %v4535_v13, %v3612_v20  ;;  %v3640_v16 = vrot.slane %v6447_v10, 5  ;;  %v3652_v36 = vrot.slane %v6457_v48, 5 }
 0x28b   :  { %v4523_v44 = vcombine.low %v3325_v60, %v3339_v18  ;;  %v3564_v18 = vld [vmem:[#allocation2 + $0x90] sm:$0xe]  ;;  %v3656_v48 = vrot.slane %v6465_v1, 5  ;;  %v3660_v55 = vrot.slane %v6467_v59, 5 }
 0x28c   :  { %5061 = vmatpush3.bf16.msra.mxu1 %v5368_v53  ;;  %v4534_v53 = vrot.slane %v3552_v4, 9  ;;  %v3653_v40 = vsel %vm6269_vm11, %v4545_v21, %v3652_v36  ;;  %v3565_v4 = vld [vmem:[#allocation2 + $0x98] sm:$0xe]  ;;  %v4546_v46 = vrot.slane %v3564_v18, 9 }
 0x28d   :  { %5062 = vmatprep.subr.bf16.mxu1 %v5369_v17  ;;  %v4547_v52 = vrot.slane %v3565_v4, 9 }
 0x28e   :  { %v3609_v38 = vsel %vm6269_vm11, %v4534_v53, %v3608_v35  ;;  %v3657_v26 = vsel %vm6269_vm11, %v4546_v46, %v3656_v48 }
 0x28f   :  { %5047 = vmatmul.mubr.bf16.gmra.mrb[8].mxu1 %v4521_v43  ;;  %v4549_v15 = vcombine.low %v3609_v38, %v3613_v30  ;;  %v3561_v43 = vld [vmem:[#allocation2 + $0x78] sm:$0xe] }
 0x290   :  { %5063 = vmatpush3.bf16.msra.mxu1 %v5369_v17  ;;  %5050 = vmatprep.mubr.bf16.mxu1 %v4522_v31  ;;  %v3558_v17 = vld [vmem:[#allocation2 + $0x60] sm:$0xe]  ;;  %v4551_v31 = vcombine.low %v3625_v6, %v3629_v12  ;;  %v4543_v41 = vrot.slane %v3561_v43, 9 }
 0x291   :  { %5064 = vmatprep.subr.bf16.mxu1 %v5370_v45  ;;  %v4540_v29 = vrot.slane %v3558_v17, 9 }
 0x292   :  { %v3645_v60 = vsel %vm6269_vm11, %v4543_v41, %v3644_v22 }
 0x293   :  { %v3633_v61 = vsel %vm6269_vm11, %v4540_v29, %v3632_v32 }
 0x294   :  { %5065 = vmatpush3.bf16.msra.mxu1 %v5370_v45  ;;  %v3562_v45 = vld [vmem:[#allocation2 + $0x80] sm:$0xe]  ;;  %v4552_v8 = vcombine.low %v3633_v61, %v3637_v37 }
 0x295   :  { %5066 = vmatprep.subr.bf16.mxu1 %v5371_v3  ;;  %v4544_v7 = vrot.slane %v3562_v45, 9 }
 0x297   :  { %5051 = vmatmul.mubr.bf16.gmra.mrb[12].mxu1 %v4523_v44  ;;  %v3649_v10 = vsel %vm6269_vm11, %v4544_v7, %v3648_v49  ;;  %v3661_v44 = vsel %vm6269_vm11, %v4547_v52, %v3660_v55 }
 0x298   :  { %5067 = vmatpush3.bf16.msra.mxu1 %v5371_v3  ;;  %5070 = vmatprep.mubr.bf16.mxu1 %v4548_v5  ;;  %v3641_v3 = vsel %vm6269_vm11, %v4542_v47, %v3640_v16  ;;  %v4554_v50 = vcombine.low %v3649_v10, %v3653_v40 }
 0x299   :  { %5068 = vmatprep.subr.bf16.mxu1 %v5372_v54  ;;  %v4553_v0 = vcombine.low %v3641_v3, %v3645_v60 }
 0x29c   :  { %5069 = vmatpush3.bf16.msra.mxu1 %v5372_v54  ;;  %v4555_v54 = vcombine.low %v3657_v26, %v3661_v44 }
 0x29f   :  { %5071 = vmatmul.mubr.bf16.vlgmr.msra.gmra.mrb[0].mxu1 %v4549_v15 }
 0x2a0   :  { %5074 = vmatprep.mubr.bf16.mxu1 %v4550_v34 }
 0x2a7   :  { %5075 = vmatmul.mubr.bf16.gmra.mrb[4].mxu1 %v4551_v31 }
 0x2a8   :  { %5078 = vmatprep.mubr.bf16.mxu1 %v4552_v8 }
 0x2af   :  { %5079 = vmatmul.mubr.bf16.gmra.mrb[8].mxu1 %v4553_v0 }
 0x2b0   :  { %5082 = vmatprep.mubr.bf16.mxu1 %v4554_v50 }
 0x2b7   :  { %5083 = vmatmul.mubr.bf16.gmra.mrb[12].mxu1 %v4555_v54 }
 0x315   :  { %v6529_v53 = vpop.f32.mrb[16].mxu0 }
 0x316   :  { %v6531_v5 = vpop.f32.mrb[17].mxu0 }
 0x317   :  { %v6533_v35 = vpop.f32.mrb[18].mxu0 }
 0x318   :  { %v6535_v1 = vpop.f32.mrb[19].mxu0 }
 0x31d   :  { %v6537_v13 = vpop.f32.mrb[20].mxu0 }
 0x31e   :  { %v6539_v59 = vpop.f32.mrb[21].mxu0 }
 0x31f   :  { %v6541_v20 = vpop.f32.mrb[22].mxu0 }
 0x320   :  { %v6543_v33 = vpop.f32.mrb[23].mxu0 }
 0x325   :  { %v6545_v11 = vpop.f32.mrb[24].mxu0 }
 0x326   :  { %v6547_v28 = vpop.f32.mrb[25].mxu0 }
 0x327   :  { %v6549_v63 = vpop.f32.mrb[26].mxu0 }
 0x328   :  { %v6551_v42 = vpop.f32.mrb[27].mxu0 }
 0x32d   :  { %v6553_v38 = vpop.f32.mrb[28].mxu0 }
 0x32e   :  { %v6555_v30 = vpop.f32.mrb[29].mxu0 }
 0x32f   :  { %v6557_v51 = vpop.f32.mrb[30].mxu0 }
 0x330   :  { %v6559_v19 = vpop.f32.mrb[31].mxu0 }
 0x335   :  { %v5104_v62 = vpop.f32.mrb[32].mxu0 }
 0x336   :  { %v4095_v56 = vpop.f32.mrb[33].mxu0 }
 0x337   :  { %v5105_v17 = vpop.f32.mrb[34].mxu0 }
 0x338   :  { %v4098_v2 = vpop.f32.mrb[35].mxu0 }
 0x339   :  { %v4160_v15 = vadd.f32 %v4098_v2, %v4095_v56 }
 0x33b   :  { %v4161_v9 = vadd.f32 %v5104_v62, %v4160_v15 }
 0x33d   :  { %v5108_v34 = vpop.f32.mrb[36].mxu0  ;;  %v4162_v14 = vadd.f32 %v5105_v17, %v4161_v9 }
 0x33e   :  { %v4111_v39 = vpop.f32.mrb[37].mxu0 }
 0x33f   :  { %v4163_v27 = vadd.f32 %v4162_v14, %v4111_v39  ;;  %v5109_v29 = vpop.f32.mrb[38].mxu0 }
 0x340   :  { %v4114_v32 = vpop.f32.mrb[39].mxu0 }
 0x341   :  { %v4164_v58 = vadd.f32 %v4163_v27, %v4114_v32 }
 0x343   :  { %v4165_v23 = vadd.f32 %v5108_v34, %v4164_v58 }
 0x345   :  { %v5112_v6 = vpop.f32.mrb[40].mxu0  ;;  %v4166_v12 = vadd.f32 %v5109_v29, %v4165_v23 }
 0x346   :  { %v4127_v25 = vpop.f32.mrb[41].mxu0 }
 0x347   :  { %v4167_v61 = vadd.f32 %v4166_v12, %v4127_v25  ;;  %v5113_v37 = vpop.f32.mrb[42].mxu0 }
 0x348   :  { %v4130_v43 = vpop.f32.mrb[43].mxu0 }
 0x349   :  { %v4168_v45 = vadd.f32 %v4167_v61, %v4130_v43 }
 0x34b   :  { %v4169_v57 = vadd.f32 %v5112_v6, %v4168_v45 }
 0x34d   :  { %v5116_v31 = vpop.f32.mrb[44].mxu0  ;;  %v4170_v47 = vadd.f32 %v5113_v37, %v4169_v57 }
 0x34e   :  { %v4143_v8 = vpop.f32.mrb[45].mxu0 }
 0x34f   :  { %v4171_v16 = vadd.f32 %v4170_v47, %v4143_v8  ;;  %v5117_v41 = vpop.f32.mrb[46].mxu0 }
 0x350   :  { %v4146_v22 = vpop.f32.mrb[47].mxu0 }
 0x351   :  { %v4172_v7 = vadd.f32 %v4171_v16, %v4146_v22 }
 0x353   :  { %v4173_v49 = vadd.f32 %v5116_v31, %v4172_v7 }
 0x355   :  { %v4174_v21 = vadd.f32 %v5117_v41, %v4173_v49 }
 0x357   :  { %v4175_v36 = vrot.slane %v4174_v21, 4 }
 0x359   :  { %v4176_v3 = vadd.f32 %v4175_v36, %v4174_v21 }
 0x35b   :  { %v4177_v60 = vrot.slane %v4176_v3, 2 }
 0x35d   :  { %v4178_v18 = vadd.f32 %v4177_v60, %v4176_v3 }
 0x35f   :  { %v4179_v10 = vrot.slane %v4178_v18, 1 }
 0x361   :  { %v4180_v40 = vadd.f32 %v4179_v10, %v4178_v18 }
 0x363   :  { %v4181_v4 = vmul.f32 0.0078125, %v4180_v40 }
 0x365   :  { %v6561_v0 = vsub.f32 %v4095_v56, %v4181_v4  ;;  %v6563_v46 = vsub.f32 %v4098_v2, %v4181_v4  ;;  %v6565_v50 = vsub.f32 %v5104_v62, %v4181_v4  ;;  %v6567_v48 = vsub.f32 %v5105_v17, %v4181_v4 }
 0x366   :  { %v6569_v52 = vsub.f32 %v4111_v39, %v4181_v4  ;;  %v6571_v55 = vsub.f32 %v4114_v32, %v4181_v4  ;;  %v6573_v26 = vsub.f32 %v5108_v34, %v4181_v4  ;;  %v6575_v44 = vsub.f32 %v5109_v29, %v4181_v4 }
 0x367   :  { %v6577_v54 = vsub.f32 %v4127_v25, %v4181_v4  ;;  %v6579_v15 = vsub.f32 %v4130_v43, %v4181_v4  ;;  %v6581_v56 = vsub.f32 %v5112_v6, %v4181_v4  ;;  %v6583_v2 = vsub.f32 %v5113_v37, %v4181_v4 }
 0x368   :  { %v6585_v62 = vsub.f32 %v4143_v8, %v4181_v4  ;;  %v6587_v17 = vsub.f32 %v4146_v22, %v4181_v4  ;;  %v6589_v9 = vsub.f32 %v5116_v31, %v4181_v4  ;;  %v6591_v14 = vsub.f32 %v5117_v41, %v4181_v4 }
 0x369   :  { %v4198_v34 = vmul.f32 %v6561_v0, %v6561_v0  ;;  %v4199_v39 = vmul.f32 %v6563_v46, %v6563_v46  ;;  %v4200_v27 = vmul.f32 %v6565_v50, %v6565_v50  ;;  %v4201_v29 = vmul.f32 %v6567_v48, %v6567_v48 }
 0x36a   :  { %v4202_v58 = vmul.f32 %v6569_v52, %v6569_v52  ;;  %v4203_v6 = vmul.f32 %v6571_v55, %v6571_v55  ;;  %v4204_v61 = vmul.f32 %v6573_v26, %v6573_v26  ;;  %v4205_v47 = vmul.f32 %v6575_v44, %v6575_v44 }
 0x36b   :  { %v4214_v32 = vadd.f32 %v4199_v39, %v4198_v34  ;;  %v4207_v49 = vmul.f32 %v6579_v15, %v6579_v15  ;;  %v4209_v34 = vmul.f32 %v6583_v2, %v6583_v2 }
 0x36d   :  { %v4215_v23 = vadd.f32 %v4214_v32, %v4200_v27 }
 0x36f   :  { %v4216_v12 = vadd.f32 %v4215_v23, %v4201_v29 }
 0x371   :  { %v4217_v37 = vadd.f32 %v4216_v12, %v4202_v58  ;;  %v4210_v58 = vmul.f32 %v6585_v62, %v6585_v62 }
 0x372   :  { %v5072_v25 = vpop.f32.mrb[0].mxu1 }
 0x373   :  { %v6608_v43 = vadd.f32 %v5072_v25, %v6529_v53  ;;  %v3793_v45 = vpop.f32.mrb[1].mxu1  ;;  %v4218_v8 = vadd.f32 %v4217_v37, %v4203_v6  ;;  %v4206_v53 = vmul.f32 %v6577_v54, %v6577_v54  ;;  %v4211_v6 = vmul.f32 %v6587_v17, %v6587_v17 }
 0x374   :  { %v6611_v57 = vadd.f32 %v3793_v45, %v6531_v5  ;;  %v5073_v31 = vpop.f32.mrb[2].mxu1 }
 0x375   :  { %v6616_v16 = vadd.f32 %v5073_v31, %v6533_v35  ;;  %v3796_v41 = vpop.f32.mrb[3].mxu1  ;;  %v4219_v7 = vadd.f32 %v4218_v8, %v4204_v61  ;;  %v4208_v35 = vmul.f32 %v6581_v56, %v6581_v56 }
 0x376   :  { %v6619_v22 = vadd.f32 %v3796_v41, %v6535_v1  ;;  %v4213_v41 = vmul.f32 %v6591_v14, %v6591_v14 }
 0x377   :  { %v4220_v21 = vadd.f32 %v4219_v7, %v4205_v47 }
 0x378   :  { %v3874_v5 = vadd.f32 %v6619_v22, %v6611_v57 }
 0x379   :  { %v4221_v60 = vadd.f32 %v4220_v21, %v4206_v53 }
 0x37a   :  { %v3875_v36 = vadd.f32 %v6608_v43, %v3874_v5  ;;  %v5076_v3 = vpop.f32.mrb[4].mxu1 }
 0x37b   :  { %v6631_v1 = vadd.f32 %v5076_v3, %v6537_v13  ;;  %v3809_v18 = vpop.f32.mrb[5].mxu1  ;;  %v4222_v39 = vadd.f32 %v4221_v60, %v4207_v49 }
 0x37c   :  { %v6634_v10 = vadd.f32 %v3809_v18, %v6539_v59  ;;  %v3876_v40 = vadd.f32 %v6616_v16, %v3875_v36  ;;  %v5077_v4 = vpop.f32.mrb[6].mxu1 }
 0x37d   :  { %v6640_v27 = vadd.f32 %v5077_v4, %v6541_v20  ;;  %v3812_v29 = vpop.f32.mrb[7].mxu1  ;;  %v4223_v59 = vadd.f32 %v4222_v39, %v4208_v35  ;;  %v4212_v20 = vmul.f32 %v6589_v9, %v6589_v9 }
 0x37e   :  { %v3877_v32 = vadd.f32 %v6634_v10, %v3876_v40  ;;  %v5125_v13 = vadd.f32 %v3812_v29, %v6543_v33 }
 0x37f   :  { %v4224_v12 = vadd.f32 %v4223_v59, %v4209_v34 }
 0x380   :  { %v3878_v23 = vadd.f32 %v5125_v13, %v3877_v32 }
 0x381   :  { %v4225_v37 = vadd.f32 %v4224_v12, %v4210_v58 }
 0x382   :  { %v3879_v25 = vadd.f32 %v6631_v1, %v3878_v23  ;;  %v5080_v61 = vpop.f32.mrb[8].mxu1 }
 0x383   :  { %v5126_v45 = vadd.f32 %v5080_v61, %v6545_v11  ;;  %v3825_v31 = vpop.f32.mrb[9].mxu1  ;;  %v4226_v53 = vadd.f32 %v4225_v37, %v4211_v6 }
 0x384   :  { %v5127_v33 = vadd.f32 %v3825_v31, %v6547_v28  ;;  %v3880_v47 = vadd.f32 %v6640_v27, %v3879_v25  ;;  %v5081_v8 = vpop.f32.mrb[10].mxu1 }
 0x385   :  { %v5128_v7 = vadd.f32 %v5081_v8, %v6549_v63  ;;  %v3828_v5 = vpop.f32.mrb[11].mxu1  ;;  %v4227_v36 = vadd.f32 %v4226_v53, %v4212_v20 }
 0x386   :  { %v3881_v49 = vadd.f32 %v5127_v33, %v3880_v47  ;;  %v5129_v21 = vadd.f32 %v3828_v5, %v6551_v42 }
 0x387   :  { %v4228_v35 = vadd.f32 %v4227_v36, %v4213_v41 }
 0x388   :  { %v3882_v3 = vadd.f32 %v5129_v21, %v3881_v49 }
 0x389   :  { %v4229_v18 = vrot.slane %v4228_v35, 4 }
 0x38a   :  { %v3883_v11 = vadd.f32 %v5126_v45, %v3882_v3  ;;  %v5084_v60 = vpop.f32.mrb[12].mxu1 }
 0x38b   :  { %v5130_v28 = vadd.f32 %v5084_v60, %v6553_v38  ;;  %v3841_v40 = vpop.f32.mrb[13].mxu1  ;;  %v4230_v29 = vadd.f32 %v4229_v18, %v4228_v35 }
 0x38c   :  { %v5131_v4 = vadd.f32 %v3841_v40, %v6555_v30  ;;  %v3884_v34 = vadd.f32 %v5128_v7, %v3883_v11  ;;  %v5085_v39 = vpop.f32.mrb[14].mxu1 }
 0x38d   :  { %v5132_v63 = vadd.f32 %v5085_v39, %v6557_v51  ;;  %v3844_v32 = vpop.f32.mrb[15].mxu1  ;;  %v4231_v59 = vrot.slane %v4230_v29, 2 }
 0x38e   :  { %v3885_v58 = vadd.f32 %v5131_v4, %v3884_v34  ;;  %v5133_v42 = vadd.f32 %v3844_v32, %v6559_v19  ;;  %v4158_v19 = vld [vmem:[%s6851_s8] sm:$0x1] }
 0x38f   :  { %v4232_v6 = vadd.f32 %v4231_v59, %v4230_v29 }
 0x390   :  { %v3886_v23 = vadd.f32 %v5133_v42, %v3885_v58 }
 0x391   :  { %v4233_v25 = vrot.slane %v4232_v6, 1 }
 0x392   :  { %v3887_v12 = vadd.f32 %v5130_v28, %v3886_v23 }
 0x393   :  { %v4234_v20 = vadd.f32 %v4233_v25, %v4232_v6 }
 0x394   :  { %v3888_v61 = vadd.f32 %v5132_v63, %v3887_v12 }
 0x395   :  { %v4235_v37 = vmul.f32 0.0078125, %v4234_v20 }
 0x396   :  { %v3889_v38 = vrot.slane %v3888_v61, 4 }
 0x397   :  { %v4236_v30 = vadd.f32 1e-05, %v4235_v37 }
 0x398   :  { %v3890_v31 = vadd.f32 %v3889_v38, %v3888_v61 }
 0x399   :  { %5375 = vrsqrt.f32 %v4236_v30 }
 0x39a   :  { %v3891_v47 = vrot.slane %v3890_v31, 2 }
 0x39c   :  { %v3892_v8 = vadd.f32 %v3891_v47, %v3890_v31 }
 0x39e   :  { %v3893_v41 = vrot.slane %v3892_v8, 1 }
 0x3a0   :  { %v3894_v51 = vadd.f32 %v3893_v41, %v3892_v8 }
 0x3a2   :  { %v3895_v53 = vmul.f32 0.0078125, %v3894_v51 }
 0x3a3   :  { %v5376_v35 = vpop.eup %5375 }
 0x3a4   :  { %v6666_v5 = vsub.f32 %v6611_v57, %v3895_v53  ;;  %v6669_v49 = vsub.f32 %v6619_v22, %v3895_v53  ;;  %v6672_v36 = vsub.f32 %v6608_v43, %v3895_v53  ;;  %v6675_v3 = vsub.f32 %v6616_v16, %v3895_v53 }
 0x3a5   :  { %v6678_v11 = vsub.f32 %v6634_v10, %v3895_v53  ;;  %v6680_v60 = vsub.f32 %v5125_v13, %v3895_v53  ;;  %v6683_v18 = vsub.f32 %v6631_v1, %v3895_v53  ;;  %v6686_v57 = vsub.f32 %v6640_v27, %v3895_v53 }
 0x3a6   :  { %v4238_v22 = vmul.f32 %v5376_v35, %v4158_v19  ;;  %v6688_v40 = vsub.f32 %v5127_v33, %v3895_v53  ;;  %v6690_v43 = vsub.f32 %v5129_v21, %v3895_v53  ;;  %v6692_v34 = vsub.f32 %v5126_v45, %v3895_v53 }
 0x3a7   :  { %v6694_v16 = vsub.f32 %v5128_v7, %v3895_v53  ;;  %v6696_v39 = vsub.f32 %v5131_v4, %v3895_v53  ;;  %v6698_v10 = vsub.f32 %v5133_v42, %v3895_v53  ;;  %v6700_v13 = vsub.f32 %v5130_v28, %v3895_v53 }
 0x3a8   :  { %v4243_v1 = vrot.slane %v4238_v22, %v5752_v24  ;;  %v6703_v29 = vsub.f32 %v5132_v63, %v3895_v53  ;;  %v3918_v42 = vmul.f32 %v6683_v18, %v6683_v18  ;;  %v3919_v23 = vmul.f32 %v6686_v57, %v6686_v57 }
 0x3a9   :  { %v3920_v12 = vmul.f32 %v6688_v40, %v6688_v40  ;;  %v3921_v61 = vmul.f32 %v6690_v43, %v6690_v43  ;;  %v3922_v38 = vmul.f32 %v6692_v34, %v6692_v34  ;;  %v3923_v31 = vmul.f32 %v6694_v16, %v6694_v16 }
 0x3aa   :  { %v4245_v27 = vmul.f32 %v4243_v1, %v6561_v0  ;;  %v4246_v33 = vmul.f32 %v4243_v1, %v6563_v46  ;;  %v4247_v21 = vmul.f32 %v4243_v1, %v6565_v50  ;;  %v4248_v45 = vmul.f32 %v4243_v1, %v6567_v48 }
 0x3ab   :  { %v4249_v7 = vmul.f32 %v4243_v1, %v6569_v52  ;;  %v4250_v4 = vmul.f32 %v4243_v1, %v6571_v55  ;;  %v4251_v32 = vmul.f32 %v4243_v1, %v6573_v26  ;;  %v4252_v28 = vmul.f32 %v4243_v1, %v6575_v44 }
 0x3ac   :  { %v4253_v58 = vmul.f32 %v4243_v1, %v6577_v54  ;;  %v4254_v63 = vmul.f32 %v4243_v1, %v6579_v15  ;;  %v4255_v0 = vmul.f32 %v4243_v1, %v6581_v56  ;;  %v4256_v46 = vmul.f32 %v4243_v1, %v6583_v2 }
 0x3ad   :  { %v4257_v50 = vmul.f32 %v4243_v1, %v6585_v62  ;;  %v4258_v48 = vmul.f32 %v4243_v1, %v6587_v17  ;;  %v4259_v52 = vmul.f32 %v4243_v1, %v6589_v9  ;;  %v4260_v55 = vmul.f32 %v4243_v1, %v6591_v14 }
 0x3ae   :  { %v3912_v26 = vmul.f32 %v6666_v5, %v6666_v5  ;;  %v3913_v44 = vmul.f32 %v6669_v49, %v6669_v49  ;;  %v3914_v54 = vmul.f32 %v6672_v36, %v6672_v36  ;;  %v3915_v56 = vmul.f32 %v6675_v3, %v6675_v3 }
 0x3af   :  { %v3916_v62 = vmul.f32 %v6678_v11, %v6678_v11  ;;  %v3917_v9 = vmul.f32 %v6680_v60, %v6680_v60  ;;  %v3924_v47 = vmul.f32 %v6696_v39, %v6696_v39  ;;  %v3925_v41 = vmul.f32 %v6698_v10, %v6698_v10 }
 0x3b0   :  { %v3928_v15 = vadd.f32 %v3913_v44, %v3912_v26  ;;  %v3926_v53 = vmul.f32 %v6700_v13, %v6700_v13  ;;  %v3927_v35 = vmul.f32 %v6703_v29, %v6703_v29 }
 0x3b2   :  { %v3929_v2 = vadd.f32 %v3928_v15, %v3914_v54 }
 0x3b4   :  { %v3930_v17 = vadd.f32 %v3929_v2, %v3915_v56 }
 0x3b6   :  { %v3931_v14 = vadd.f32 %v3930_v17, %v3916_v62 }
 0x3b8   :  { %v3932_v59 = vadd.f32 %v3931_v14, %v3917_v9  ;;  %v4573_v9 = vld [vmem:[%s6852_s9] ss:$0 sm:$0xff] }
 0x3b9   :  { %v3872_v14 = vld [vmem:[%s6848_s5] sm:$0x1] }
 0x3ba   :  { %v3933_v6 = vadd.f32 %v3932_v59, %v3918_v42  ;;  %v4267_v59 = vadd.f32 %v4573_v9, %v4245_v27 }
 0x3bc   :  { %v3934_v25 = vadd.f32 %v3933_v6, %v3919_v23  ;;  %v4268_v23 = vadd.f32 %v4573_v9, %v4246_v33  ;;  %v4269_v6 = vadd.f32 %v4573_v9, %v4247_v21 }
 0x3be   :  { %v3935_v20 = vadd.f32 %v3934_v25, %v3920_v12  ;;  %v4270_v12 = vadd.f32 %v4573_v9, %v4248_v45  ;;  %v4271_v25 = vadd.f32 %v4573_v9, %v4249_v7  ;;  %v4564_v7 = vld [vmem:[%s6849_s6] ss:$0 sm:$0xff] }
 0x3c0   :  { %v3936_v37 = vadd.f32 %v3935_v20, %v3921_v61  ;;  %v4272_v20 = vadd.f32 %v4573_v9, %v4250_v4 }
 0x3c2   :  { %v3937_v30 = vadd.f32 %v3936_v37, %v3922_v38  ;;  %v4273_v38 = vadd.f32 %v4573_v9, %v4251_v32  ;;  %v4274_v37 = vadd.f32 %v4573_v9, %v4252_v28 }
 0x3c4   :  { %v3938_v8 = vadd.f32 %v3937_v30, %v3923_v31  ;;  %v4275_v31 = vadd.f32 %v4573_v9, %v4253_v58  ;;  %v4276_v30 = vadd.f32 %v4573_v9, %v4254_v63 }
 0x3c6   :  { %v3939_v51 = vadd.f32 %v3938_v8, %v3924_v47  ;;  %v4277_v47 = vadd.f32 %v4573_v9, %v4255_v0  ;;  %v4278_v8 = vadd.f32 %v4573_v9, %v4256_v46 }
 0x3c8   :  { %v3940_v19 = vadd.f32 %v3939_v51, %v3925_v41  ;;  %v4279_v51 = vadd.f32 %v4573_v9, %v4257_v50 }
 0x3ca   :  { %v3941_v22 = vadd.f32 %v3940_v19, %v3926_v53  ;;  %v4280_v53 = vadd.f32 %v4573_v9, %v4258_v48  ;;  %v4281_v19 = vadd.f32 %v4573_v9, %v4259_v52 }
 0x3cc   :  { %v3942_v1 = vadd.f32 %v3941_v22, %v3927_v35  ;;  %v4282_v35 = vadd.f32 %v4573_v9, %v4260_v55 }
 0x3ce   :  { %v3943_v26 = vrot.slane %v3942_v1, 4 }
 0x3d0   :  { %v3944_v44 = vadd.f32 %v3943_v26, %v3942_v1 }
 0x3d2   :  { %v3945_v54 = vrot.slane %v3944_v44, 2 }
 0x3d4   :  { %v3946_v15 = vadd.f32 %v3945_v54, %v3944_v44 }
 0x3d6   :  { %v3947_v56 = vrot.slane %v3946_v15, 1 }
 0x3d8   :  { %v3948_v2 = vadd.f32 %v3947_v56, %v3946_v15 }
 0x3da   :  { %v3949_v62 = vmul.f32 0.0078125, %v3948_v2 }
 0x3dc   :  { %v3950_v17 = vadd.f32 1e-05, %v3949_v62 }
 0x3de   :  { %5377 = vrsqrt.f32 %v3950_v17 }
 0x3e8   :  { %v5378_v42 = vpop.eup %5377 }
 0x3e9   :  { %v3952_v61 = vmul.f32 %v5378_v42, %v3872_v14 }
 0x3eb   :  { %v3957_v41 = vrot.slane %v3952_v61, %v5752_v24 }
 0x3ed   :  { %v3959_v27 = vmul.f32 %v3957_v41, %v6666_v5  ;;  %v3960_v33 = vmul.f32 %v3957_v41, %v6669_v49  ;;  %v3961_v21 = vmul.f32 %v3957_v41, %v6672_v36  ;;  %v3962_v45 = vmul.f32 %v3957_v41, %v6675_v3 }
 0x3ee   :  { %v3963_v4 = vmul.f32 %v3957_v41, %v6678_v11  ;;  %v3964_v24 = vmul.f32 %v3957_v41, %v6680_v60  ;;  %v3965_v32 = vmul.f32 %v3957_v41, %v6683_v18  ;;  %v3966_v28 = vmul.f32 %v3957_v41, %v6686_v57 }
 0x3ef   :  { %v3967_v5 = vmul.f32 %v3957_v41, %v6688_v40  ;;  %v3968_v49 = vmul.f32 %v3957_v41, %v6690_v43  ;;  %v3969_v36 = vmul.f32 %v3957_v41, %v6692_v34  ;;  %v3970_v3 = vmul.f32 %v3957_v41, %v6694_v16 }
 0x3f0   :  { %v3971_v58 = vmul.f32 %v3957_v41, %v6696_v39  ;;  %v3972_v63 = vmul.f32 %v3957_v41, %v6698_v10  ;;  %v3973_v11 = vmul.f32 %v3957_v41, %v6700_v13  ;;  %v3974_v60 = vmul.f32 %v3957_v41, %v6703_v29 }
 0x3f1   :  { %v3981_v18 = vadd.f32 %v4564_v7, %v3959_v27  ;;  %v3982_v0 = vadd.f32 %v4564_v7, %v3960_v33  ;;  %v3983_v57 = vadd.f32 %v4564_v7, %v3961_v21  ;;  %v3984_v46 = vadd.f32 %v4564_v7, %v3962_v45 }
 0x3f2   :  { %v3985_v40 = vadd.f32 %v4564_v7, %v3963_v4  ;;  %v3986_v50 = vadd.f32 %v4564_v7, %v3964_v24  ;;  %v3987_v43 = vadd.f32 %v4564_v7, %v3965_v32  ;;  %v3988_v48 = vadd.f32 %v4564_v7, %v3966_v28 }
 0x3f3   :  { %v3989_v34 = vadd.f32 %v4564_v7, %v3967_v5  ;;  %v3990_v52 = vadd.f32 %v4564_v7, %v3968_v49  ;;  %v3991_v16 = vadd.f32 %v4564_v7, %v3969_v36  ;;  %v3992_v55 = vadd.f32 %v4564_v7, %v3970_v3 }
 0x3f4   :  { %v3993_v39 = vadd.f32 %v4564_v7, %v3971_v58  ;;  %v3994_v22 = vadd.f32 %v4564_v7, %v3972_v63  ;;  %v3995_v10 = vadd.f32 %v4564_v7, %v3973_v11  ;;  %v3996_v1 = vadd.f32 %v4564_v7, %v3974_v60 }
 0x3f5   :  { %v4283_v13 = vadd.f32 %v4267_v59, %v3981_v18  ;;  %v4284_v26 = vadd.f32 %v4268_v23, %v3982_v0  ;;  %v4285_v29 = vadd.f32 %v4269_v6, %v3983_v57  ;;  %v4286_v44 = vadd.f32 %v4270_v12, %v3984_v46 }
 0x3f6   :  { %v4287_v54 = vadd.f32 %v4271_v25, %v3985_v40  ;;  %v4288_v15 = vadd.f32 %v4272_v20, %v3986_v50  ;;  %v4289_v56 = vadd.f32 %v4273_v38, %v3987_v43  ;;  %v4290_v2 = vadd.f32 %v4274_v37, %v3988_v48 }
 0x3f7   :  { %v4291_v62 = vadd.f32 %v4275_v31, %v3989_v34  ;;  %v4292_v17 = vadd.f32 %v4276_v30, %v3990_v52  ;;  %v4293_v9 = vadd.f32 %v4277_v47, %v3991_v16  ;;  %v4294_v14 = vadd.f32 %v4278_v8, %v3992_v55 }
 0x3f8   :  { %v4295_v42 = vadd.f32 %v4279_v51, %v3993_v39  ;;  %v4296_v61 = vadd.f32 %v4280_v53, %v3994_v22  ;;  %v4297_v41 = vadd.f32 %v4281_v19, %v3995_v10  ;;  %v4298_v27 = vadd.f32 %v4282_v35, %v3996_v1 }
 0x3f9   :  { %v4299_v33 = vmax.f32 %v4283_v13, 0.0  ;;  %v4300_v21 = vmax.f32 %v4284_v26, 0.0  ;;  %v4301_v45 = vmax.f32 %v4285_v29, 0.0  ;;  %v4302_v7 = vmax.f32 %v4286_v44, 0.0 }
 0x3fa   :  { %v4303_v59 = vmax.f32 %v4287_v54, 0.0  ;;  %v4304_v23 = vmax.f32 %v4288_v15, 0.0  ;;  %v4305_v6 = vmax.f32 %v4289_v56, 0.0  ;;  %v4306_v12 = vmax.f32 %v4290_v2, 0.0 }
 0x3fb   :  { %v4307_v25 = vmax.f32 %v4291_v62, 0.0  ;;  %v4308_v20 = vmax.f32 %v4292_v17, 0.0  ;;  %v4309_v38 = vmax.f32 %v4293_v9, 0.0  ;;  %v4310_v37 = vmax.f32 %v4294_v14, 0.0  ;;  %4316 = vst.msk [vmem:[%s6853_s10] sm:$0xff] %vm4315_vm12, %v4299_v33  ;;  %4317 = vst.msk [vmem:[%s6853_s10 + $0x8] sm:$0xff] %vm4315_vm12, %v4300_v21 }
 0x3fc   :  { %4318 = vst.msk [vmem:[%s6853_s10 + $0x10] sm:$0xff] %vm4315_vm12, %v4301_v45  ;;  %4319 = vst.msk [vmem:[%s6853_s10 + $0x18] sm:$0xff] %vm4315_vm12, %v4302_v7  ;;  %v4311_v31 = vmax.f32 %v4295_v42, 0.0  ;;  %v4312_v30 = vmax.f32 %v4296_v61, 0.0  ;;  %v4313_v47 = vmax.f32 %v4297_v41, 0.0  ;;  %v4314_v8 = vmax.f32 %v4298_v27, 0.0 }
 0x3fd   :  { %4320 = vst.msk [vmem:[%s6853_s10 + $0x20] sm:$0xff] %vm4315_vm12, %v4303_v59  ;;  %4321 = vst.msk [vmem:[%s6853_s10 + $0x28] sm:$0xff] %vm4315_vm12, %v4304_v23 }
 0x3fe   :  { %4322 = vst.msk [vmem:[%s6853_s10 + $0x30] sm:$0xff] %vm4315_vm12, %v4305_v6  ;;  %4323 = vst.msk [vmem:[%s6853_s10 + $0x38] sm:$0xff] %vm4315_vm12, %v4306_v12 }
 0x3ff   :  { %4324 = vst.msk [vmem:[%s6853_s10 + $0x40] sm:$0xff] %vm4315_vm12, %v4307_v25  ;;  %4325 = vst.msk [vmem:[%s6853_s10 + $0x48] sm:$0xff] %vm4315_vm12, %v4308_v20 }
 0x400   :  { %4326 = vst.msk [vmem:[%s6853_s10 + $0x50] sm:$0xff] %vm4315_vm12, %v4309_v38  ;;  %4327 = vst.msk [vmem:[%s6853_s10 + $0x58] sm:$0xff] %vm4315_vm12, %v4310_v37 }
 0x401   :  { %4328 = vst.msk [vmem:[%s6853_s10 + $0x60] sm:$0xff] %vm4315_vm12, %v4311_v31  ;;  %4329 = vst.msk [vmem:[%s6853_s10 + $0x68] sm:$0xff] %vm4315_vm12, %v4312_v30 }
 0x402   :  { %4330 = vst.msk [vmem:[%s6853_s10 + $0x70] sm:$0xff] %vm4315_vm12, %v4313_v47  ;;  %4331 = vst.msk [vmem:[%s6853_s10 + $0x78] sm:$0xff] %vm4315_vm12, %v4314_v8 }
 0x403   :  { %4336 = vsyncpa [#allocation4], 1 }
 0x404   :  { %4337 = vsyncpa [#allocation6], 1 }
 0x405   :  { %4338 = vsyncpa [#allocation9], 1 }

</bundles_post_ra>
